<compile_context>
chip_gen: v6e
topology: v6e:2x2x1
jax: 0.10.0
libtpu: 0.0.40
codegen_flags: <defaults>
</compile_context>

<pallas_src>
import functools

import jax
import jax.numpy as jnp
import numpy as np
from jax.experimental import pallas as pl
from jax.experimental.pallas import tpu as pltpu


# ----------------------------- fused kernel -------------------------------- #

def fused_lstm_ae_kernel(x_ref,        # (T*Bp, D)    time-major, batch padded
                         w_ih_e_ref,   # (4, D, H)    encoder W_ih^T, per gate
                         w_hh_e_ref,   # (4, H, H)    encoder W_hh^T, per gate
                         b_e_ref,      # (4, 1, H)    encoder b_ih + b_hh, per gate
                         w_ih_d_ref,   # (4, H, H2)   decoder W_ih^T, per gate
                         w_hh_d_ref,   # (4, H2, H2)  decoder W_hh^T, per gate
                         b_d_ref,      # (4, 1, H2)   decoder b_ih + b_hh, per gate
                         w_out_ref,    # (H2, Dp)     Linear weight^T, lane-padded
                         b_out_ref,    # (1, Dp)      Linear bias, lane-padded
                         out_ref,      # (T*Bp, Dp)   reconstruction, lane-dense
                         zx_scr,       # VMEM (4, T*Bp, H) hoisted encoder x-proj
                         *, T, Bp):
    H = w_hh_e_ref.shape[1]
    H2 = w_hh_d_ref.shape[1]
    unroll = min(T, 8)

    # (1) Hoisted encoder input projection, per gate (off the serial chain).
    x = x_ref[...]
    for g in range(4):
        zx_scr[g, :, :] = (
            jnp.dot(x, w_ih_e_ref[g], preferred_element_type=jnp.float32)
            + b_e_ref[g])

    def gate_step(zx, h, c, w_hh):
        """One LSTM cell update from per-gate pre-computed x-projections.

        No lane-misaligned result slicing: each gate is its own (Bp, H) block,
        sigmoid only on i/f/o, tanh only on g.
        """
        zi = zx[0] + jnp.dot(h, w_hh[0], preferred_element_type=jnp.float32)
        zf = zx[1] + jnp.dot(h, w_hh[1], preferred_element_type=jnp.float32)
        zg = zx[2] + jnp.dot(h, w_hh[2], preferred_element_type=jnp.float32)
        zo = zx[3] + jnp.dot(h, w_hh[3], preferred_element_type=jnp.float32)
        i = jax.nn.sigmoid(zi)
        f = jax.nn.sigmoid(zf)
        g = jnp.tanh(zg)
        o = jax.nn.sigmoid(zo)
        c_new = f * c + i * g
        h_new = o * jnp.tanh(c_new)
        return h_new, c_new

    # Hold the per-gate recurrence weights resident across the loops.
    w_hh_e = [w_hh_e_ref[g] for g in range(4)]

    # (2) Serial encoder recurrence: per step only h @ W_hh_g + zx[g, t] + gates.
    def enc_step(t, carry):
        h, c = carry
        row = pl.multiple_of(t * Bp, Bp)
        zx = [zx_scr[g, pl.ds(row, Bp), :] for g in range(4)]
        return gate_step(zx, h, c, w_hh_e)

    h0 = jnp.zeros((Bp, H), jnp.float32)
    c0 = jnp.zeros((Bp, H), jnp.float32)
    h_last, _ = jax.lax.fori_loop(0, T, enc_step, (h0, c0), unroll=unroll)

    # (3) Decoder input is h_last at EVERY timestep -> project it once per gate.
    zx_d = [jnp.dot(h_last, w_ih_d_ref[g], preferred_element_type=jnp.float32)
            + b_d_ref[g] for g in range(4)]                   # 4 x (Bp, H2)
    w_hh_d = [w_hh_d_ref[g] for g in range(4)]
    w_out = w_out_ref[...]
    b_out = b_out_ref[...]

    # (4) Serial decoder recurrence with fused, lane-dense output projection.
    #     The out-proj depends only on h_new (off the h/c dependency chain) and
    #     its (Bp, Dp=128) store is unmasked — no decoder-hidden scratch needed.
    def dec_step(t, carry):
        h, c = carry
        h_new, c_new = gate_step(zx_d, h, c, w_hh_d)
        row = pl.multiple_of(t * Bp, Bp)
        out_ref[pl.ds(row, Bp), :] = (
            jnp.dot(h_new, w_out, preferred_element_type=jnp.float32) + b_out)
        return (h_new, c_new)

    h0d = jnp.zeros((Bp, H2), jnp.float32)
    c0d = jnp.zeros((Bp, H2), jnp.float32)
    jax.lax.fori_loop(0, T, dec_step, (h0d, c0d), unroll=unroll)


# ------------------------------- wrapper ------------------------------------ #

def _split_gates(a, H):
    """Split trailing 4H gate columns (PyTorch order i,f,g,o) -> leading axis 4."""
    return jnp.stack([a[..., g * H:(g + 1) * H] for g in range(4)], axis=0)


def _vmem_padded_bytes(shape, itemsize=4):
    """f32 VMEM footprint estimate with (8, 128) tile padding."""
    shape = tuple(int(s) for s in shape)
    if len(shape) < 2:
        shape = (1,) * (2 - len(shape)) + shape
    lead = 1
    for s in shape[:-2]:
        lead *= s
    sub = -(-shape[-2] // 8) * 8
    lane = -(-shape[-1] // 128) * 128
    return lead * sub * lane * itemsize


@jax.jit
def lstm_network_forward(x, params):
    """LSTMNetwork.forward: x [B, T, D] -> (x_dec [B, T, D], ())."""
    B, T, D = x.shape
    pe, pd = params["encoder"], params["decoder"]
    H = pe["w_hh_t"].shape[0]
    H2 = pd["w_hh_t"].shape[0]

    # Pad batch to a multiple of 8 (full sublanes, aligned dynamic slices) and
    # the output feature dim to a multiple of 128 (lane-dense stores).
    Bp = ((B + 7) // 8) * 8
    Dp = ((D + 127) // 128) * 128

    x_tm = jnp.transpose(x, (1, 0, 2))                       # [T, B, D]
    x_tm = jnp.pad(x_tm, ((0, 0), (0, Bp - B), (0, 0)))      # [T, Bp, D]
    x2d = x_tm.reshape(T * Bp, D)                            # time-major flat

    # Per-gate weight layout (no lane-misaligned slicing inside the kernel).
    w_ih_e = _split_gates(pe["w_ih_t"], H)                   # (4, D, H)
    w_hh_e = _split_gates(pe["w_hh_t"], H)                   # (4, H, H)
    b_e = _split_gates(pe["b"], H)                           # (4, 1, H)
    w_ih_d = _split_gates(pd["w_ih_t"], H2)                  # (4, H, H2)
    w_hh_d = _split_gates(pd["w_hh_t"], H2)                  # (4, H2, H2)
    b_d = _split_gates(pd["b"], H2)                          # (4, 1, H2)

    # Lane-dense epilogue weights (zero-padded output columns).
    w_out_p = jnp.pad(pd["w_out_t"], ((0, 0), (0, Dp - D)))  # (H2, Dp)
    b_out_p = jnp.pad(pd["b_out"], ((0, 0), (0, Dp - D)))    # (1, Dp)

    operands = (x2d, w_ih_e, w_hh_e, b_e, w_ih_d, w_hh_d, b_d, w_out_p, b_out_p)

    # Explicit VMEM budget: single-buffered operands + output + scratch, x2 margin.
    vmem_need = sum(_vmem_padded_bytes(a.shape) for a in operands)
    vmem_need += _vmem_padded_bytes((T * Bp, Dp))            # output
    vmem_need += _vmem_padded_bytes((4, T * Bp, H))          # zx scratch
    vmem_limit = int(min(64 << 20, max(16 << 20, 2 * vmem_need + (2 << 20))))

    kernel = functools.partial(fused_lstm_ae_kernel, T=T, Bp=Bp)

    # No grid: single invocation, whole arrays resident in VMEM (single-buffered,
    # no pointless pipeline double-buffering).
    vmem_spec = pl.BlockSpec(memory_space=pltpu.MemorySpace.VMEM)

    out2d = pl.pallas_call(
        kernel,
        out_shape=jax.ShapeDtypeStruct((T * Bp, Dp), jnp.float32),
        in_specs=[vmem_spec] * len(operands),
        out_specs=vmem_spec,
        scratch_shapes=[pltpu.VMEM((4, T * Bp, H), jnp.float32)],
        compiler_params=pltpu.CompilerParams(vmem_limit_bytes=vmem_limit),
    )(*operands)

    x_dec_tm = out2d.reshape(T, Bp, Dp)[:, :B, :D]           # drop padding
    x_dec = jnp.transpose(x_dec_tm, (1, 0, 2))               # [B, T, D]
    return x_dec, ()                                         # forward -> (x_dec, [])


# ------------------------ deterministic parameter init --------------------- #

def init_params(key, D, H, H2):
    def uni(k, shape, bound):
        return jax.random.uniform(k, shape, jnp.float32, -bound, bound)

    ks = jax.random.split(key, 12)
    be, bd = 1.0 / np.sqrt(H), 1.0 / np.sqrt(H2)
    enc = {
        "w_ih_t": uni(ks[0], (D, 4 * H), be),       # = W_ih^T
        "w_hh_t": uni(ks[1], (H, 4 * H), be),       # = W_hh^T
        "b": uni(ks[2], (1, 4 * H), be) + uni(ks[3], (1, 4 * H), be),  # b_ih+b_hh
    }
    dec = {
        "w_ih_t": uni(ks[4], (H, 4 * H2), bd),
        "w_hh_t": uni(ks[5], (H2, 4 * H2), bd),
        "b": uni(ks[6], (1, 4 * H2), bd) + uni(ks[7], (1, 4 * H2), bd),
        "w_out_t": uni(ks[8], (H2, D), bd),         # Linear weight^T
        "b_out": uni(ks[9], (1, D), bd),
    }
    return {"encoder": enc, "decoder": dec}


# ------------------------------ pure-JAX reference ------------------------- #

def _ref_lstm_gates(z, c, H):
    i = jax.nn.sigmoid(z[:, 0 * H:1 * H])
    f = jax.nn.sigmoid(z[:, 1 * H:2 * H])
    g = jnp.tanh(z[:, 2 * H:3 * H])
    o = jax.nn.sigmoid(z[:, 3 * H:4 * H])
    c_new = f * c + i * g
    h_new = o * jnp.tanh(c_new)
    return h_new, c_new


def _ref_lstm(x_tm, w_ih_t, w_hh_t, b, H):
    B = x_tm.shape[1]
    h0 = jnp.zeros((B, H), jnp.float32)
    c0 = jnp.zeros((B, H), jnp.float32)

    def step(carry, x_t):
        h, c = carry
        z = (jnp.dot(x_t, w_ih_t, preferred_element_type=jnp.float32)
             + jnp.dot(h, w_hh_t, preferred_element_type=jnp.float32) + b)
        h_new, c_new = _ref_lstm_gates(z, c, H)
        return (h_new, c_new), h_new

    _, hs = jax.lax.scan(step, (h0, c0), x_tm)
    return hs


def ref_forward(x, params):
    x_tm = jnp.transpose(x, (1, 0, 2))
    pe, pd = params["encoder"], params["decoder"]
    H = pe["w_hh_t"].shape[0]
    H2 = pd["w_hh_t"].shape[0]
    enc_seq = _ref_lstm(x_tm, pe["w_ih_t"], pe["w_hh_t"], pe["b"], H)
    h_last = enc_seq[-1]
    x_enc = jnp.broadcast_to(h_last[None], (x_tm.shape[0],) + h_last.shape)
    dec_seq = _ref_lstm(x_enc, pd["w_ih_t"], pd["w_hh_t"], pd["b"], H2)
    x_dec_tm = dec_seq @ pd["w_out_t"] + pd["b_out"]
    return jnp.transpose(x_dec_tm, (1, 0, 2))


# ----------------------------------- main ----------------------------------- #

if __name__ == "__main__":
    B, T, D = 2, 8, 4      # batch, sequence length, feature dim
    H, H2 = 32, 32         # encoder / decoder hidden sizes

    key = jax.random.PRNGKey(0)
    k_x, k_p = jax.random.split(key)
    x = jax.random.normal(k_x, (B, T, D), jnp.float32)
    params = init_params(k_p, D, H, H2)

    x_dec, extras = lstm_network_forward(x, params)
    x_dec = jax.block_until_ready(x_dec)

    x_ref = jax.block_until_ready(ref_forward(x, params))
    np.testing.assert_allclose(np.asarray(x_dec), np.asarray(x_ref),
                               rtol=1e-5, atol=1e-5)
    assert x_dec.shape == (B, T, D)

    print("KERNEL_OK")
</pallas_src>

<mosaic_0001>
module attributes {stable_mosaic.version = 11 : i64} {
  func.func @fused_lstm_ae_kernel(%arg0: memref<64x4xf32, #tpu.memory_space<vmem>>, %arg1: memref<4x4x32xf32, #tpu.memory_space<vmem>>, %arg2: memref<4x32x32xf32, #tpu.memory_space<vmem>>, %arg3: memref<4x1x32xf32, #tpu.memory_space<vmem>>, %arg4: memref<4x32x32xf32, #tpu.memory_space<vmem>>, %arg5: memref<4x32x32xf32, #tpu.memory_space<vmem>>, %arg6: memref<4x1x32xf32, #tpu.memory_space<vmem>>, %arg7: memref<32x128xf32, #tpu.memory_space<vmem>>, %arg8: memref<1x128xf32, #tpu.memory_space<vmem>>, %arg9: memref<64x128xf32, #tpu.memory_space<vmem>>, %arg10: memref<4x64x32xf32, #tpu.memory_space<vmem>>) attributes {dimension_semantics = [], scalar_prefetch = 0 : i64, scratch_operands = 1 : i64, tpu.core_type = #tpu.core_type<tc>} {
    %c0 = arith.constant 0 : index
    %c0_0 = arith.constant 0 : index
    %0 = vector.load %arg0[%c0, %c0_0] : memref<64x4xf32, #tpu.memory_space<vmem>>, vector<64x4xf32>
    %c0_1 = arith.constant 0 : index
    %c0_2 = arith.constant 0 : index
    %c0_3 = arith.constant 0 : index
    %1 = vector.load %arg1[%c0_1, %c0_2, %c0_3] : memref<4x4x32xf32, #tpu.memory_space<vmem>>, vector<1x4x32xf32>
    %2 = vector.shape_cast %1 : vector<1x4x32xf32> to vector<4x32xf32>
    %cst = arith.constant dense<0.000000e+00> : vector<64x32xf32>
    %3 = tpu.matmul %0, %2, %cst {dimension_numbers = #tpu.dot_dimension_numbers<[1], [0], [0], [1], [0, 0, 1, 1], [], []>} : vector<64x4xf32>, vector<4x32xf32>, vector<64x32xf32> -> vector<64x32xf32>
    %c0_4 = arith.constant 0 : index
    %c0_5 = arith.constant 0 : index
    %c0_6 = arith.constant 0 : index
    %4 = vector.load %arg3[%c0_4, %c0_5, %c0_6] : memref<4x1x32xf32, #tpu.memory_space<vmem>>, vector<1x1x32xf32>
    %5 = vector.shape_cast %4 : vector<1x1x32xf32> to vector<1x32xf32>
    %6 = vector.broadcast %5 : vector<1x32xf32> to vector<64x32xf32>
    %7 = arith.addf %3, %6 : vector<64x32xf32>
    %c0_7 = arith.constant 0 : index
    %c0_8 = arith.constant 0 : index
    %c0_9 = arith.constant 0 : index
    %8 = vector.load %arg10[%c0_7, %c0_8, %c0_9] : memref<4x64x32xf32, #tpu.memory_space<vmem>>, vector<1x64x32xf32>
    %9 = vector.shape_cast %8 : vector<1x64x32xf32> to vector<64x32xf32>
    %10 = vector.shape_cast %7 : vector<64x32xf32> to vector<1x64x32xf32>
    tpu.vector_store %arg10[%c0_7, %c0_8, %c0_9], %10 {strides = array<i32>} : memref<4x64x32xf32, #tpu.memory_space<vmem>>, vector<1x64x32xf32>,
    %c1 = arith.constant 1 : index
    %c0_10 = arith.constant 0 : index
    %c0_11 = arith.constant 0 : index
    %11 = vector.load %arg1[%c1, %c0_10, %c0_11] : memref<4x4x32xf32, #tpu.memory_space<vmem>>, vector<1x4x32xf32>
    %12 = vector.shape_cast %11 : vector<1x4x32xf32> to vector<4x32xf32>
    %cst_12 = arith.constant dense<0.000000e+00> : vector<64x32xf32>
    %13 = tpu.matmul %0, %12, %cst_12 {dimension_numbers = #tpu.dot_dimension_numbers<[1], [0], [0], [1], [0, 0, 1, 1], [], []>} : vector<64x4xf32>, vector<4x32xf32>, vector<64x32xf32> -> vector<64x32xf32>
    %c1_13 = arith.constant 1 : index
    %c0_14 = arith.constant 0 : index
    %c0_15 = arith.constant 0 : index
    %14 = vector.load %arg3[%c1_13, %c0_14, %c0_15] : memref<4x1x32xf32, #tpu.memory_space<vmem>>, vector<1x1x32xf32>
    %15 = vector.shape_cast %14 : vector<1x1x32xf32> to vector<1x32xf32>
    %16 = vector.broadcast %15 : vector<1x32xf32> to vector<64x32xf32>
    %17 = arith.addf %13, %16 : vector<64x32xf32>
    %c1_16 = arith.constant 1 : index
    %c0_17 = arith.constant 0 : index
    %c0_18 = arith.constant 0 : index
    %18 = vector.load %arg10[%c1_16, %c0_17, %c0_18] : memref<4x64x32xf32, #tpu.memory_space<vmem>>, vector<1x64x32xf32>
    %19 = vector.shape_cast %18 : vector<1x64x32xf32> to vector<64x32xf32>
    %20 = vector.shape_cast %17 : vector<64x32xf32> to vector<1x64x32xf32>
    tpu.vector_store %arg10[%c1_16, %c0_17, %c0_18], %20 {strides = array<i32>} : memref<4x64x32xf32, #tpu.memory_space<vmem>>, vector<1x64x32xf32>,
    %c2 = arith.constant 2 : index
    %c0_19 = arith.constant 0 : index
    %c0_20 = arith.constant 0 : index
    %21 = vector.load %arg1[%c2, %c0_19, %c0_20] : memref<4x4x32xf32, #tpu.memory_space<vmem>>, vector<1x4x32xf32>
    %22 = vector.shape_cast %21 : vector<1x4x32xf32> to vector<4x32xf32>
    %cst_21 = arith.constant dense<0.000000e+00> : vector<64x32xf32>
    %23 = tpu.matmul %0, %22, %cst_21 {dimension_numbers = #tpu.dot_dimension_numbers<[1], [0], [0], [1], [0, 0, 1, 1], [], []>} : vector<64x4xf32>, vector<4x32xf32>, vector<64x32xf32> -> vector<64x32xf32>
    %c2_22 = arith.constant 2 : index
    %c0_23 = arith.constant 0 : index
    %c0_24 = arith.constant 0 : index
    %24 = vector.load %arg3[%c2_22, %c0_23, %c0_24] : memref<4x1x32xf32, #tpu.memory_space<vmem>>, vector<1x1x32xf32>
    %25 = vector.shape_cast %24 : vector<1x1x32xf32> to vector<1x32xf32>
    %26 = vector.broadcast %25 : vector<1x32xf32> to vector<64x32xf32>
    %27 = arith.addf %23, %26 : vector<64x32xf32>
    %c2_25 = arith.constant 2 : index
    %c0_26 = arith.constant 0 : index
    %c0_27 = arith.constant 0 : index
    %28 = vector.load %arg10[%c2_25, %c0_26, %c0_27] : memref<4x64x32xf32, #tpu.memory_space<vmem>>, vector<1x64x32xf32>
    %29 = vector.shape_cast %28 : vector<1x64x32xf32> to vector<64x32xf32>
    %30 = vector.shape_cast %27 : vector<64x32xf32> to vector<1x64x32xf32>
    tpu.vector_store %arg10[%c2_25, %c0_26, %c0_27], %30 {strides = array<i32>} : memref<4x64x32xf32, #tpu.memory_space<vmem>>, vector<1x64x32xf32>,
    %c3 = arith.constant 3 : index
    %c0_28 = arith.constant 0 : index
    %c0_29 = arith.constant 0 : index
    %31 = vector.load %arg1[%c3, %c0_28, %c0_29] : memref<4x4x32xf32, #tpu.memory_space<vmem>>, vector<1x4x32xf32>
    %32 = vector.shape_cast %31 : vector<1x4x32xf32> to vector<4x32xf32>
    %cst_30 = arith.constant dense<0.000000e+00> : vector<64x32xf32>
    %33 = tpu.matmul %0, %32, %cst_30 {dimension_numbers = #tpu.dot_dimension_numbers<[1], [0], [0], [1], [0, 0, 1, 1], [], []>} : vector<64x4xf32>, vector<4x32xf32>, vector<64x32xf32> -> vector<64x32xf32>
    %c3_31 = arith.constant 3 : index
    %c0_32 = arith.constant 0 : index
    %c0_33 = arith.constant 0 : index
    %34 = vector.load %arg3[%c3_31, %c0_32, %c0_33] : memref<4x1x32xf32, #tpu.memory_space<vmem>>, vector<1x1x32xf32>
    %35 = vector.shape_cast %34 : vector<1x1x32xf32> to vector<1x32xf32>
    %36 = vector.broadcast %35 : vector<1x32xf32> to vector<64x32xf32>
    %37 = arith.addf %33, %36 : vector<64x32xf32>
    %c3_34 = arith.constant 3 : index
    %c0_35 = arith.constant 0 : index
    %c0_36 = arith.constant 0 : index
    %38 = vector.load %arg10[%c3_34, %c0_35, %c0_36] : memref<4x64x32xf32, #tpu.memory_space<vmem>>, vector<1x64x32xf32>
    %39 = vector.shape_cast %38 : vector<1x64x32xf32> to vector<64x32xf32>
    %40 = vector.shape_cast %37 : vector<64x32xf32> to vector<1x64x32xf32>
    tpu.vector_store %arg10[%c3_34, %c0_35, %c0_36], %40 {strides = array<i32>} : memref<4x64x32xf32, #tpu.memory_space<vmem>>, vector<1x64x32xf32>,
    %c0_37 = arith.constant 0 : index
    %c0_38 = arith.constant 0 : index
    %c0_39 = arith.constant 0 : index
    %41 = vector.load %arg2[%c0_37, %c0_38, %c0_39] : memref<4x32x32xf32, #tpu.memory_space<vmem>>, vector<1x32x32xf32>
    %42 = vector.shape_cast %41 : vector<1x32x32xf32> to vector<32x32xf32>
    %c1_40 = arith.constant 1 : index
    %c0_41 = arith.constant 0 : index
    %c0_42 = arith.constant 0 : index
    %43 = vector.load %arg2[%c1_40, %c0_41, %c0_42] : memref<4x32x32xf32, #tpu.memory_space<vmem>>, vector<1x32x32xf32>
    %44 = vector.shape_cast %43 : vector<1x32x32xf32> to vector<32x32xf32>
    %c2_43 = arith.constant 2 : index
    %c0_44 = arith.constant 0 : index
    %c0_45 = arith.constant 0 : index
    %45 = vector.load %arg2[%c2_43, %c0_44, %c0_45] : memref<4x32x32xf32, #tpu.memory_space<vmem>>, vector<1x32x32xf32>
    %46 = vector.shape_cast %45 : vector<1x32x32xf32> to vector<32x32xf32>
    %c3_46 = arith.constant 3 : index
    %c0_47 = arith.constant 0 : index
    %c0_48 = arith.constant 0 : index
    %47 = vector.load %arg2[%c3_46, %c0_47, %c0_48] : memref<4x32x32xf32, #tpu.memory_space<vmem>>, vector<1x32x32xf32>
    %48 = vector.shape_cast %47 : vector<1x32x32xf32> to vector<32x32xf32>
    %cst_49 = arith.constant 0.000000e+00 : f32
    %49 = vector.broadcast %cst_49 : f32 to vector<8x32xf32>
    %cst_50 = arith.constant 0.000000e+00 : f32
    %50 = vector.broadcast %cst_50 : f32 to vector<8x32xf32>
    %c0_i32 = arith.constant 0 : i32
    %c8_i32 = arith.constant 8 : i32
    %51 = arith.muli %c0_i32, %c8_i32 : i32
    %52 = tpu.assume_multiple %51, 8 : i32
    %c0_51 = arith.constant 0 : index
    %53 = arith.index_cast %52 : i32 to index
    %c0_52 = arith.constant 0 : index
    %54 = vector.load %arg10[%c0_51, %53, %c0_52] : memref<4x64x32xf32, #tpu.memory_space<vmem>>, vector<1x8x32xf32>
    %55 = vector.shape_cast %54 : vector<1x8x32xf32> to vector<8x32xf32>
    %c1_53 = arith.constant 1 : index
    %56 = arith.index_cast %52 : i32 to index
    %c0_54 = arith.constant 0 : index
    %57 = vector.load %arg10[%c1_53, %56, %c0_54] : memref<4x64x32xf32, #tpu.memory_space<vmem>>, vector<1x8x32xf32>
    %58 = vector.shape_cast %57 : vector<1x8x32xf32> to vector<8x32xf32>
    %c2_55 = arith.constant 2 : index
    %59 = arith.index_cast %52 : i32 to index
    %c0_56 = arith.constant 0 : index
    %60 = vector.load %arg10[%c2_55, %59, %c0_56] : memref<4x64x32xf32, #tpu.memory_space<vmem>>, vector<1x8x32xf32>
    %61 = vector.shape_cast %60 : vector<1x8x32xf32> to vector<8x32xf32>
    %c3_57 = arith.constant 3 : index
    %62 = arith.index_cast %52 : i32 to index
    %c0_58 = arith.constant 0 : index
    %63 = vector.load %arg10[%c3_57, %62, %c0_58] : memref<4x64x32xf32, #tpu.memory_space<vmem>>, vector<1x8x32xf32>
    %64 = vector.shape_cast %63 : vector<1x8x32xf32> to vector<8x32xf32>
    %cst_59 = arith.constant dense<0.000000e+00> : vector<8x32xf32>
    %65 = tpu.matmul %49, %42, %cst_59 {dimension_numbers = #tpu.dot_dimension_numbers<[1], [0], [0], [1], [0, 0, 1, 1], [], []>} : vector<8x32xf32>, vector<32x32xf32>, vector<8x32xf32> -> vector<8x32xf32>
    %66 = arith.addf %55, %65 : vector<8x32xf32>
    %cst_60 = arith.constant dense<0.000000e+00> : vector<8x32xf32>
    %67 = tpu.matmul %49, %44, %cst_60 {dimension_numbers = #tpu.dot_dimension_numbers<[1], [0], [0], [1], [0, 0, 1, 1], [], []>} : vector<8x32xf32>, vector<32x32xf32>, vector<8x32xf32> -> vector<8x32xf32>
    %68 = arith.addf %58, %67 : vector<8x32xf32>
    %cst_61 = arith.constant dense<0.000000e+00> : vector<8x32xf32>
    %69 = tpu.matmul %49, %46, %cst_61 {dimension_numbers = #tpu.dot_dimension_numbers<[1], [0], [0], [1], [0, 0, 1, 1], [], []>} : vector<8x32xf32>, vector<32x32xf32>, vector<8x32xf32> -> vector<8x32xf32>
    %70 = arith.addf %61, %69 : vector<8x32xf32>
    %cst_62 = arith.constant dense<0.000000e+00> : vector<8x32xf32>
    %71 = tpu.matmul %49, %48, %cst_62 {dimension_numbers = #tpu.dot_dimension_numbers<[1], [0], [0], [1], [0, 0, 1, 1], [], []>} : vector<8x32xf32>, vector<32x32xf32>, vector<8x32xf32> -> vector<8x32xf32>
    %72 = arith.addf %64, %71 : vector<8x32xf32>
    %73 = arith.negf %66 : vector<8x32xf32>
    %74 = math.exp %73 : vector<8x32xf32>
    %cst_63 = arith.constant 1.000000e+00 : f32
    %75 = vector.broadcast %cst_63 : f32 to vector<8x32xf32>
    %76 = arith.addf %75, %74 : vector<8x32xf32>
    %77 = arith.divf %75, %76 : vector<8x32xf32>
    %78 = arith.negf %68 : vector<8x32xf32>
    %79 = math.exp %78 : vector<8x32xf32>
    %cst_64 = arith.constant 1.000000e+00 : f32
    %80 = vector.broadcast %cst_64 : f32 to vector<8x32xf32>
    %81 = arith.addf %80, %79 : vector<8x32xf32>
    %82 = arith.divf %80, %81 : vector<8x32xf32>
    %83 = math.tanh %70 : vector<8x32xf32>
    %84 = arith.negf %72 : vector<8x32xf32>
    %85 = math.exp %84 : vector<8x32xf32>
    %cst_65 = arith.constant 1.000000e+00 : f32
    %86 = vector.broadcast %cst_65 : f32 to vector<8x32xf32>
    %87 = arith.addf %86, %85 : vector<8x32xf32>
    %88 = arith.divf %86, %87 : vector<8x32xf32>
    %89 = arith.mulf %82, %50 : vector<8x32xf32>
    %90 = arith.mulf %77, %83 : vector<8x32xf32>
    %91 = arith.addf %89, %90 : vector<8x32xf32>
    %92 = math.tanh %91 : vector<8x32xf32>
    %93 = arith.mulf %88, %92 : vector<8x32xf32>
    %c1_i32 = arith.constant 1 : i32
    %c8_i32_66 = arith.constant 8 : i32
    %94 = arith.muli %c1_i32, %c8_i32_66 : i32
    %95 = tpu.assume_multiple %94, 8 : i32
    %c0_67 = arith.constant 0 : index
    %96 = arith.index_cast %95 : i32 to index
    %c0_68 = arith.constant 0 : index
    %97 = vector.load %arg10[%c0_67, %96, %c0_68] : memref<4x64x32xf32, #tpu.memory_space<vmem>>, vector<1x8x32xf32>
    %98 = vector.shape_cast %97 : vector<1x8x32xf32> to vector<8x32xf32>
    %c1_69 = arith.constant 1 : index
    %99 = arith.index_cast %95 : i32 to index
    %c0_70 = arith.constant 0 : index
    %100 = vector.load %arg10[%c1_69, %99, %c0_70] : memref<4x64x32xf32, #tpu.memory_space<vmem>>, vector<1x8x32xf32>
    %101 = vector.shape_cast %100 : vector<1x8x32xf32> to vector<8x32xf32>
    %c2_71 = arith.constant 2 : index
    %102 = arith.index_cast %95 : i32 to index
    %c0_72 = arith.constant 0 : index
    %103 = vector.load %arg10[%c2_71, %102, %c0_72] : memref<4x64x32xf32, #tpu.memory_space<vmem>>, vector<1x8x32xf32>
    %104 = vector.shape_cast %103 : vector<1x8x32xf32> to vector<8x32xf32>
    %c3_73 = arith.constant 3 : index
    %105 = arith.index_cast %95 : i32 to index
    %c0_74 = arith.constant 0 : index
    %106 = vector.load %arg10[%c3_73, %105, %c0_74] : memref<4x64x32xf32, #tpu.memory_space<vmem>>, vector<1x8x32xf32>
    %107 = vector.shape_cast %106 : vector<1x8x32xf32> to vector<8x32xf32>
    %cst_75 = arith.constant dense<0.000000e+00> : vector<8x32xf32>
    %108 = tpu.matmul %93, %42, %cst_75 {dimension_numbers = #tpu.dot_dimension_numbers<[1], [0], [0], [1], [0, 0, 1, 1], [], []>} : vector<8x32xf32>, vector<32x32xf32>, vector<8x32xf32> -> vector<8x32xf32>
    %109 = arith.addf %98, %108 : vector<8x32xf32>
    %cst_76 = arith.constant dense<0.000000e+00> : vector<8x32xf32>
    %110 = tpu.matmul %93, %44, %cst_76 {dimension_numbers = #tpu.dot_dimension_numbers<[1], [0], [0], [1], [0, 0, 1, 1], [], []>} : vector<8x32xf32>, vector<32x32xf32>, vector<8x32xf32> -> vector<8x32xf32>
    %111 = arith.addf %101, %110 : vector<8x32xf32>
    %cst_77 = arith.constant dense<0.000000e+00> : vector<8x32xf32>
    %112 = tpu.matmul %93, %46, %cst_77 {dimension_numbers = #tpu.dot_dimension_numbers<[1], [0], [0], [1], [0, 0, 1, 1], [], []>} : vector<8x32xf32>, vector<32x32xf32>, vector<8x32xf32> -> vector<8x32xf32>
    %113 = arith.addf %104, %112 : vector<8x32xf32>
    %cst_78 = arith.constant dense<0.000000e+00> : vector<8x32xf32>
    %114 = tpu.matmul %93, %48, %cst_78 {dimension_numbers = #tpu.dot_dimension_numbers<[1], [0], [0], [1], [0, 0, 1, 1], [], []>} : vector<8x32xf32>, vector<32x32xf32>, vector<8x32xf32> -> vector<8x32xf32>
    %115 = arith.addf %107, %114 : vector<8x32xf32>
    %116 = arith.negf %109 : vector<8x32xf32>
    %117 = math.exp %116 : vector<8x32xf32>
    %cst_79 = arith.constant 1.000000e+00 : f32
    %118 = vector.broadcast %cst_79 : f32 to vector<8x32xf32>
    %119 = arith.addf %118, %117 : vector<8x32xf32>
    %120 = arith.divf %118, %119 : vector<8x32xf32>
    %121 = arith.negf %111 : vector<8x32xf32>
    %122 = math.exp %121 : vector<8x32xf32>
    %cst_80 = arith.constant 1.000000e+00 : f32
    %123 = vector.broadcast %cst_80 : f32 to vector<8x32xf32>
    %124 = arith.addf %123, %122 : vector<8x32xf32>
    %125 = arith.divf %123, %124 : vector<8x32xf32>
    %126 = math.tanh %113 : vector<8x32xf32>
    %127 = arith.negf %115 : vector<8x32xf32>
    %128 = math.exp %127 : vector<8x32xf32>
    %cst_81 = arith.constant 1.000000e+00 : f32
    %129 = vector.broadcast %cst_81 : f32 to vector<8x32xf32>
    %130 = arith.addf %129, %128 : vector<8x32xf32>
    %131 = arith.divf %129, %130 : vector<8x32xf32>
    %132 = arith.mulf %125, %91 : vector<8x32xf32>
    %133 = arith.mulf %120, %126 : vector<8x32xf32>
    %134 = arith.addf %132, %133 : vector<8x32xf32>
    %135 = math.tanh %134 : vector<8x32xf32>
    %136 = arith.mulf %131, %135 : vector<8x32xf32>
    %c2_i32 = arith.constant 2 : i32
    %c8_i32_82 = arith.constant 8 : i32
    %137 = arith.muli %c2_i32, %c8_i32_82 : i32
    %138 = tpu.assume_multiple %137, 8 : i32
    %c0_83 = arith.constant 0 : index
    %139 = arith.index_cast %138 : i32 to index
    %c0_84 = arith.constant 0 : index
    %140 = vector.load %arg10[%c0_83, %139, %c0_84] : memref<4x64x32xf32, #tpu.memory_space<vmem>>, vector<1x8x32xf32>
    %141 = vector.shape_cast %140 : vector<1x8x32xf32> to vector<8x32xf32>
    %c1_85 = arith.constant 1 : index
    %142 = arith.index_cast %138 : i32 to index
    %c0_86 = arith.constant 0 : index
    %143 = vector.load %arg10[%c1_85, %142, %c0_86] : memref<4x64x32xf32, #tpu.memory_space<vmem>>, vector<1x8x32xf32>
    %144 = vector.shape_cast %143 : vector<1x8x32xf32> to vector<8x32xf32>
    %c2_87 = arith.constant 2 : index
    %145 = arith.index_cast %138 : i32 to index
    %c0_88 = arith.constant 0 : index
    %146 = vector.load %arg10[%c2_87, %145, %c0_88] : memref<4x64x32xf32, #tpu.memory_space<vmem>>, vector<1x8x32xf32>
    %147 = vector.shape_cast %146 : vector<1x8x32xf32> to vector<8x32xf32>
    %c3_89 = arith.constant 3 : index
    %148 = arith.index_cast %138 : i32 to index
    %c0_90 = arith.constant 0 : index
    %149 = vector.load %arg10[%c3_89, %148, %c0_90] : memref<4x64x32xf32, #tpu.memory_space<vmem>>, vector<1x8x32xf32>
    %150 = vector.shape_cast %149 : vector<1x8x32xf32> to vector<8x32xf32>
    %cst_91 = arith.constant dense<0.000000e+00> : vector<8x32xf32>
    %151 = tpu.matmul %136, %42, %cst_91 {dimension_numbers = #tpu.dot_dimension_numbers<[1], [0], [0], [1], [0, 0, 1, 1], [], []>} : vector<8x32xf32>, vector<32x32xf32>, vector<8x32xf32> -> vector<8x32xf32>
    %152 = arith.addf %141, %151 : vector<8x32xf32>
    %cst_92 = arith.constant dense<0.000000e+00> : vector<8x32xf32>
    %153 = tpu.matmul %136, %44, %cst_92 {dimension_numbers = #tpu.dot_dimension_numbers<[1], [0], [0], [1], [0, 0, 1, 1], [], []>} : vector<8x32xf32>, vector<32x32xf32>, vector<8x32xf32> -> vector<8x32xf32>
    %154 = arith.addf %144, %153 : vector<8x32xf32>
    %cst_93 = arith.constant dense<0.000000e+00> : vector<8x32xf32>
    %155 = tpu.matmul %136, %46, %cst_93 {dimension_numbers = #tpu.dot_dimension_numbers<[1], [0], [0], [1], [0, 0, 1, 1], [], []>} : vector<8x32xf32>, vector<32x32xf32>, vector<8x32xf32> -> vector<8x32xf32>
    %156 = arith.addf %147, %155 : vector<8x32xf32>
    %cst_94 = arith.constant dense<0.000000e+00> : vector<8x32xf32>
    %157 = tpu.matmul %136, %48, %cst_94 {dimension_numbers = #tpu.dot_dimension_numbers<[1], [0], [0], [1], [0, 0, 1, 1], [], []>} : vector<8x32xf32>, vector<32x32xf32>, vector<8x32xf32> -> vector<8x32xf32>
    %158 = arith.addf %150, %157 : vector<8x32xf32>
    %159 = arith.negf %152 : vector<8x32xf32>
    %160 = math.exp %159 : vector<8x32xf32>
    %cst_95 = arith.constant 1.000000e+00 : f32
    %161 = vector.broadcast %cst_95 : f32 to vector<8x32xf32>
    %162 = arith.addf %161, %160 : vector<8x32xf32>
    %163 = arith.divf %161, %162 : vector<8x32xf32>
    %164 = arith.negf %154 : vector<8x32xf32>
    %165 = math.exp %164 : vector<8x32xf32>
    %cst_96 = arith.constant 1.000000e+00 : f32
    %166 = vector.broadcast %cst_96 : f32 to vector<8x32xf32>
    %167 = arith.addf %166, %165 : vector<8x32xf32>
    %168 = arith.divf %166, %167 : vector<8x32xf32>
    %169 = math.tanh %156 : vector<8x32xf32>
    %170 = arith.negf %158 : vector<8x32xf32>
    %171 = math.exp %170 : vector<8x32xf32>
    %cst_97 = arith.constant 1.000000e+00 : f32
    %172 = vector.broadcast %cst_97 : f32 to vector<8x32xf32>
    %173 = arith.addf %172, %171 : vector<8x32xf32>
    %174 = arith.divf %172, %173 : vector<8x32xf32>
    %175 = arith.mulf %168, %134 : vector<8x32xf32>
    %176 = arith.mulf %163, %169 : vector<8x32xf32>
    %177 = arith.addf %175, %176 : vector<8x32xf32>
    %178 = math.tanh %177 : vector<8x32xf32>
    %179 = arith.mulf %174, %178 : vector<8x32xf32>
    %c3_i32 = arith.constant 3 : i32
    %c8_i32_98 = arith.constant 8 : i32
    %180 = arith.muli %c3_i32, %c8_i32_98 : i32
    %181 = tpu.assume_multiple %180, 8 : i32
    %c0_99 = arith.constant 0 : index
    %182 = arith.index_cast %181 : i32 to index
    %c0_100 = arith.constant 0 : index
    %183 = vector.load %arg10[%c0_99, %182, %c0_100] : memref<4x64x32xf32, #tpu.memory_space<vmem>>, vector<1x8x32xf32>
    %184 = vector.shape_cast %183 : vector<1x8x32xf32> to vector<8x32xf32>
    %c1_101 = arith.constant 1 : index
    %185 = arith.index_cast %181 : i32 to index
    %c0_102 = arith.constant 0 : index
    %186 = vector.load %arg10[%c1_101, %185, %c0_102] : memref<4x64x32xf32, #tpu.memory_space<vmem>>, vector<1x8x32xf32>
    %187 = vector.shape_cast %186 : vector<1x8x32xf32> to vector<8x32xf32>
    %c2_103 = arith.constant 2 : index
    %188 = arith.index_cast %181 : i32 to index
    %c0_104 = arith.constant 0 : index
    %189 = vector.load %arg10[%c2_103, %188, %c0_104] : memref<4x64x32xf32, #tpu.memory_space<vmem>>, vector<1x8x32xf32>
    %190 = vector.shape_cast %189 : vector<1x8x32xf32> to vector<8x32xf32>
    %c3_105 = arith.constant 3 : index
    %191 = arith.index_cast %181 : i32 to index
    %c0_106 = arith.constant 0 : index
    %192 = vector.load %arg10[%c3_105, %191, %c0_106] : memref<4x64x32xf32, #tpu.memory_space<vmem>>, vector<1x8x32xf32>
    %193 = vector.shape_cast %192 : vector<1x8x32xf32> to vector<8x32xf32>
    %cst_107 = arith.constant dense<0.000000e+00> : vector<8x32xf32>
    %194 = tpu.matmul %179, %42, %cst_107 {dimension_numbers = #tpu.dot_dimension_numbers<[1], [0], [0], [1], [0, 0, 1, 1], [], []>} : vector<8x32xf32>, vector<32x32xf32>, vector<8x32xf32> -> vector<8x32xf32>
    %195 = arith.addf %184, %194 : vector<8x32xf32>
    %cst_108 = arith.constant dense<0.000000e+00> : vector<8x32xf32>
    %196 = tpu.matmul %179, %44, %cst_108 {dimension_numbers = #tpu.dot_dimension_numbers<[1], [0], [0], [1], [0, 0, 1, 1], [], []>} : vector<8x32xf32>, vector<32x32xf32>, vector<8x32xf32> -> vector<8x32xf32>
    %197 = arith.addf %187, %196 : vector<8x32xf32>
    %cst_109 = arith.constant dense<0.000000e+00> : vector<8x32xf32>
    %198 = tpu.matmul %179, %46, %cst_109 {dimension_numbers = #tpu.dot_dimension_numbers<[1], [0], [0], [1], [0, 0, 1, 1], [], []>} : vector<8x32xf32>, vector<32x32xf32>, vector<8x32xf32> -> vector<8x32xf32>
    %199 = arith.addf %190, %198 : vector<8x32xf32>
    %cst_110 = arith.constant dense<0.000000e+00> : vector<8x32xf32>
    %200 = tpu.matmul %179, %48, %cst_110 {dimension_numbers = #tpu.dot_dimension_numbers<[1], [0], [0], [1], [0, 0, 1, 1], [], []>} : vector<8x32xf32>, vector<32x32xf32>, vector<8x32xf32> -> vector<8x32xf32>
    %201 = arith.addf %193, %200 : vector<8x32xf32>
    %202 = arith.negf %195 : vector<8x32xf32>
    %203 = math.exp %202 : vector<8x32xf32>
    %cst_111 = arith.constant 1.000000e+00 : f32
    %204 = vector.broadcast %cst_111 : f32 to vector<8x32xf32>
    %205 = arith.addf %204, %203 : vector<8x32xf32>
    %206 = arith.divf %204, %205 : vector<8x32xf32>
    %207 = arith.negf %197 : vector<8x32xf32>
    %208 = math.exp %207 : vector<8x32xf32>
    %cst_112 = arith.constant 1.000000e+00 : f32
    %209 = vector.broadcast %cst_112 : f32 to vector<8x32xf32>
    %210 = arith.addf %209, %208 : vector<8x32xf32>
    %211 = arith.divf %209, %210 : vector<8x32xf32>
    %212 = math.tanh %199 : vector<8x32xf32>
    %213 = arith.negf %201 : vector<8x32xf32>
    %214 = math.exp %213 : vector<8x32xf32>
    %cst_113 = arith.constant 1.000000e+00 : f32
    %215 = vector.broadcast %cst_113 : f32 to vector<8x32xf32>
    %216 = arith.addf %215, %214 : vector<8x32xf32>
    %217 = arith.divf %215, %216 : vector<8x32xf32>
    %218 = arith.mulf %211, %177 : vector<8x32xf32>
    %219 = arith.mulf %206, %212 : vector<8x32xf32>
    %220 = arith.addf %218, %219 : vector<8x32xf32>
    %221 = math.tanh %220 : vector<8x32xf32>
    %222 = arith.mulf %217, %221 : vector<8x32xf32>
    %c4_i32 = arith.constant 4 : i32
    %c8_i32_114 = arith.constant 8 : i32
    %223 = arith.muli %c4_i32, %c8_i32_114 : i32
    %224 = tpu.assume_multiple %223, 8 : i32
    %c0_115 = arith.constant 0 : index
    %225 = arith.index_cast %224 : i32 to index
    %c0_116 = arith.constant 0 : index
    %226 = vector.load %arg10[%c0_115, %225, %c0_116] : memref<4x64x32xf32, #tpu.memory_space<vmem>>, vector<1x8x32xf32>
    %227 = vector.shape_cast %226 : vector<1x8x32xf32> to vector<8x32xf32>
    %c1_117 = arith.constant 1 : index
    %228 = arith.index_cast %224 : i32 to index
    %c0_118 = arith.constant 0 : index
    %229 = vector.load %arg10[%c1_117, %228, %c0_118] : memref<4x64x32xf32, #tpu.memory_space<vmem>>, vector<1x8x32xf32>
    %230 = vector.shape_cast %229 : vector<1x8x32xf32> to vector<8x32xf32>
    %c2_119 = arith.constant 2 : index
    %231 = arith.index_cast %224 : i32 to index
    %c0_120 = arith.constant 0 : index
    %232 = vector.load %arg10[%c2_119, %231, %c0_120] : memref<4x64x32xf32, #tpu.memory_space<vmem>>, vector<1x8x32xf32>
    %233 = vector.shape_cast %232 : vector<1x8x32xf32> to vector<8x32xf32>
    %c3_121 = arith.constant 3 : index
    %234 = arith.index_cast %224 : i32 to index
    %c0_122 = arith.constant 0 : index
    %235 = vector.load %arg10[%c3_121, %234, %c0_122] : memref<4x64x32xf32, #tpu.memory_space<vmem>>, vector<1x8x32xf32>
    %236 = vector.shape_cast %235 : vector<1x8x32xf32> to vector<8x32xf32>
    %cst_123 = arith.constant dense<0.000000e+00> : vector<8x32xf32>
    %237 = tpu.matmul %222, %42, %cst_123 {dimension_numbers = #tpu.dot_dimension_numbers<[1], [0], [0], [1], [0, 0, 1, 1], [], []>} : vector<8x32xf32>, vector<32x32xf32>, vector<8x32xf32> -> vector<8x32xf32>
    %238 = arith.addf %227, %237 : vector<8x32xf32>
    %cst_124 = arith.constant dense<0.000000e+00> : vector<8x32xf32>
    %239 = tpu.matmul %222, %44, %cst_124 {dimension_numbers = #tpu.dot_dimension_numbers<[1], [0], [0], [1], [0, 0, 1, 1], [], []>} : vector<8x32xf32>, vector<32x32xf32>, vector<8x32xf32> -> vector<8x32xf32>
    %240 = arith.addf %230, %239 : vector<8x32xf32>
    %cst_125 = arith.constant dense<0.000000e+00> : vector<8x32xf32>
    %241 = tpu.matmul %222, %46, %cst_125 {dimension_numbers = #tpu.dot_dimension_numbers<[1], [0], [0], [1], [0, 0, 1, 1], [], []>} : vector<8x32xf32>, vector<32x32xf32>, vector<8x32xf32> -> vector<8x32xf32>
    %242 = arith.addf %233, %241 : vector<8x32xf32>
    %cst_126 = arith.constant dense<0.000000e+00> : vector<8x32xf32>
    %243 = tpu.matmul %222, %48, %cst_126 {dimension_numbers = #tpu.dot_dimension_numbers<[1], [0], [0], [1], [0, 0, 1, 1], [], []>} : vector<8x32xf32>, vector<32x32xf32>, vector<8x32xf32> -> vector<8x32xf32>
    %244 = arith.addf %236, %243 : vector<8x32xf32>
    %245 = arith.negf %238 : vector<8x32xf32>
    %246 = math.exp %245 : vector<8x32xf32>
    %cst_127 = arith.constant 1.000000e+00 : f32
    %247 = vector.broadcast %cst_127 : f32 to vector<8x32xf32>
    %248 = arith.addf %247, %246 : vector<8x32xf32>
    %249 = arith.divf %247, %248 : vector<8x32xf32>
    %250 = arith.negf %240 : vector<8x32xf32>
    %251 = math.exp %250 : vector<8x32xf32>
    %cst_128 = arith.constant 1.000000e+00 : f32
    %252 = vector.broadcast %cst_128 : f32 to vector<8x32xf32>
    %253 = arith.addf %252, %251 : vector<8x32xf32>
    %254 = arith.divf %252, %253 : vector<8x32xf32>
    %255 = math.tanh %242 : vector<8x32xf32>
    %256 = arith.negf %244 : vector<8x32xf32>
    %257 = math.exp %256 : vector<8x32xf32>
    %cst_129 = arith.constant 1.000000e+00 : f32
    %258 = vector.broadcast %cst_129 : f32 to vector<8x32xf32>
    %259 = arith.addf %258, %257 : vector<8x32xf32>
    %260 = arith.divf %258, %259 : vector<8x32xf32>
    %261 = arith.mulf %254, %220 : vector<8x32xf32>
    %262 = arith.mulf %249, %255 : vector<8x32xf32>
    %263 = arith.addf %261, %262 : vector<8x32xf32>
    %264 = math.tanh %263 : vector<8x32xf32>
    %265 = arith.mulf %260, %264 : vector<8x32xf32>
    %c5_i32 = arith.constant 5 : i32
    %c8_i32_130 = arith.constant 8 : i32
    %266 = arith.muli %c5_i32, %c8_i32_130 : i32
    %267 = tpu.assume_multiple %266, 8 : i32
    %c0_131 = arith.constant 0 : index
    %268 = arith.index_cast %267 : i32 to index
    %c0_132 = arith.constant 0 : index
    %269 = vector.load %arg10[%c0_131, %268, %c0_132] : memref<4x64x32xf32, #tpu.memory_space<vmem>>, vector<1x8x32xf32>
    %270 = vector.shape_cast %269 : vector<1x8x32xf32> to vector<8x32xf32>
    %c1_133 = arith.constant 1 : index
    %271 = arith.index_cast %267 : i32 to index
    %c0_134 = arith.constant 0 : index
    %272 = vector.load %arg10[%c1_133, %271, %c0_134] : memref<4x64x32xf32, #tpu.memory_space<vmem>>, vector<1x8x32xf32>
    %273 = vector.shape_cast %272 : vector<1x8x32xf32> to vector<8x32xf32>
    %c2_135 = arith.constant 2 : index
    %274 = arith.index_cast %267 : i32 to index
    %c0_136 = arith.constant 0 : index
    %275 = vector.load %arg10[%c2_135, %274, %c0_136] : memref<4x64x32xf32, #tpu.memory_space<vmem>>, vector<1x8x32xf32>
    %276 = vector.shape_cast %275 : vector<1x8x32xf32> to vector<8x32xf32>
    %c3_137 = arith.constant 3 : index
    %277 = arith.index_cast %267 : i32 to index
    %c0_138 = arith.constant 0 : index
    %278 = vector.load %arg10[%c3_137, %277, %c0_138] : memref<4x64x32xf32, #tpu.memory_space<vmem>>, vector<1x8x32xf32>
    %279 = vector.shape_cast %278 : vector<1x8x32xf32> to vector<8x32xf32>
    %cst_139 = arith.constant dense<0.000000e+00> : vector<8x32xf32>
    %280 = tpu.matmul %265, %42, %cst_139 {dimension_numbers = #tpu.dot_dimension_numbers<[1], [0], [0], [1], [0, 0, 1, 1], [], []>} : vector<8x32xf32>, vector<32x32xf32>, vector<8x32xf32> -> vector<8x32xf32>
    %281 = arith.addf %270, %280 : vector<8x32xf32>
    %cst_140 = arith.constant dense<0.000000e+00> : vector<8x32xf32>
    %282 = tpu.matmul %265, %44, %cst_140 {dimension_numbers = #tpu.dot_dimension_numbers<[1], [0], [0], [1], [0, 0, 1, 1], [], []>} : vector<8x32xf32>, vector<32x32xf32>, vector<8x32xf32> -> vector<8x32xf32>
    %283 = arith.addf %273, %282 : vector<8x32xf32>
    %cst_141 = arith.constant dense<0.000000e+00> : vector<8x32xf32>
    %284 = tpu.matmul %265, %46, %cst_141 {dimension_numbers = #tpu.dot_dimension_numbers<[1], [0], [0], [1], [0, 0, 1, 1], [], []>} : vector<8x32xf32>, vector<32x32xf32>, vector<8x32xf32> -> vector<8x32xf32>
    %285 = arith.addf %276, %284 : vector<8x32xf32>
    %cst_142 = arith.constant dense<0.000000e+00> : vector<8x32xf32>
    %286 = tpu.matmul %265, %48, %cst_142 {dimension_numbers = #tpu.dot_dimension_numbers<[1], [0], [0], [1], [0, 0, 1, 1], [], []>} : vector<8x32xf32>, vector<32x32xf32>, vector<8x32xf32> -> vector<8x32xf32>
    %287 = arith.addf %279, %286 : vector<8x32xf32>
    %288 = arith.negf %281 : vector<8x32xf32>
    %289 = math.exp %288 : vector<8x32xf32>
    %cst_143 = arith.constant 1.000000e+00 : f32
    %290 = vector.broadcast %cst_143 : f32 to vector<8x32xf32>
    %291 = arith.addf %290, %289 : vector<8x32xf32>
    %292 = arith.divf %290, %291 : vector<8x32xf32>
    %293 = arith.negf %283 : vector<8x32xf32>
    %294 = math.exp %293 : vector<8x32xf32>
    %cst_144 = arith.constant 1.000000e+00 : f32
    %295 = vector.broadcast %cst_144 : f32 to vector<8x32xf32>
    %296 = arith.addf %295, %294 : vector<8x32xf32>
    %297 = arith.divf %295, %296 : vector<8x32xf32>
    %298 = math.tanh %285 : vector<8x32xf32>
    %299 = arith.negf %287 : vector<8x32xf32>
    %300 = math.exp %299 : vector<8x32xf32>
    %cst_145 = arith.constant 1.000000e+00 : f32
    %301 = vector.broadcast %cst_145 : f32 to vector<8x32xf32>
    %302 = arith.addf %301, %300 : vector<8x32xf32>
    %303 = arith.divf %301, %302 : vector<8x32xf32>
    %304 = arith.mulf %297, %263 : vector<8x32xf32>
    %305 = arith.mulf %292, %298 : vector<8x32xf32>
    %306 = arith.addf %304, %305 : vector<8x32xf32>
    %307 = math.tanh %306 : vector<8x32xf32>
    %308 = arith.mulf %303, %307 : vector<8x32xf32>
    %c6_i32 = arith.constant 6 : i32
    %c8_i32_146 = arith.constant 8 : i32
    %309 = arith.muli %c6_i32, %c8_i32_146 : i32
    %310 = tpu.assume_multiple %309, 8 : i32
    %c0_147 = arith.constant 0 : index
    %311 = arith.index_cast %310 : i32 to index
    %c0_148 = arith.constant 0 : index
    %312 = vector.load %arg10[%c0_147, %311, %c0_148] : memref<4x64x32xf32, #tpu.memory_space<vmem>>, vector<1x8x32xf32>
    %313 = vector.shape_cast %312 : vector<1x8x32xf32> to vector<8x32xf32>
    %c1_149 = arith.constant 1 : index
    %314 = arith.index_cast %310 : i32 to index
    %c0_150 = arith.constant 0 : index
    %315 = vector.load %arg10[%c1_149, %314, %c0_150] : memref<4x64x32xf32, #tpu.memory_space<vmem>>, vector<1x8x32xf32>
    %316 = vector.shape_cast %315 : vector<1x8x32xf32> to vector<8x32xf32>
    %c2_151 = arith.constant 2 : index
    %317 = arith.index_cast %310 : i32 to index
    %c0_152 = arith.constant 0 : index
    %318 = vector.load %arg10[%c2_151, %317, %c0_152] : memref<4x64x32xf32, #tpu.memory_space<vmem>>, vector<1x8x32xf32>
    %319 = vector.shape_cast %318 : vector<1x8x32xf32> to vector<8x32xf32>
    %c3_153 = arith.constant 3 : index
    %320 = arith.index_cast %310 : i32 to index
    %c0_154 = arith.constant 0 : index
    %321 = vector.load %arg10[%c3_153, %320, %c0_154] : memref<4x64x32xf32, #tpu.memory_space<vmem>>, vector<1x8x32xf32>
    %322 = vector.shape_cast %321 : vector<1x8x32xf32> to vector<8x32xf32>
    %cst_155 = arith.constant dense<0.000000e+00> : vector<8x32xf32>
    %323 = tpu.matmul %308, %42, %cst_155 {dimension_numbers = #tpu.dot_dimension_numbers<[1], [0], [0], [1], [0, 0, 1, 1], [], []>} : vector<8x32xf32>, vector<32x32xf32>, vector<8x32xf32> -> vector<8x32xf32>
    %324 = arith.addf %313, %323 : vector<8x32xf32>
    %cst_156 = arith.constant dense<0.000000e+00> : vector<8x32xf32>
    %325 = tpu.matmul %308, %44, %cst_156 {dimension_numbers = #tpu.dot_dimension_numbers<[1], [0], [0], [1], [0, 0, 1, 1], [], []>} : vector<8x32xf32>, vector<32x32xf32>, vector<8x32xf32> -> vector<8x32xf32>
    %326 = arith.addf %316, %325 : vector<8x32xf32>
    %cst_157 = arith.constant dense<0.000000e+00> : vector<8x32xf32>
    %327 = tpu.matmul %308, %46, %cst_157 {dimension_numbers = #tpu.dot_dimension_numbers<[1], [0], [0], [1], [0, 0, 1, 1], [], []>} : vector<8x32xf32>, vector<32x32xf32>, vector<8x32xf32> -> vector<8x32xf32>
    %328 = arith.addf %319, %327 : vector<8x32xf32>
    %cst_158 = arith.constant dense<0.000000e+00> : vector<8x32xf32>
    %329 = tpu.matmul %308, %48, %cst_158 {dimension_numbers = #tpu.dot_dimension_numbers<[1], [0], [0], [1], [0, 0, 1, 1], [], []>} : vector<8x32xf32>, vector<32x32xf32>, vector<8x32xf32> -> vector<8x32xf32>
    %330 = arith.addf %322, %329 : vector<8x32xf32>
    %331 = arith.negf %324 : vector<8x32xf32>
    %332 = math.exp %331 : vector<8x32xf32>
    %cst_159 = arith.constant 1.000000e+00 : f32
    %333 = vector.broadcast %cst_159 : f32 to vector<8x32xf32>
    %334 = arith.addf %333, %332 : vector<8x32xf32>
    %335 = arith.divf %333, %334 : vector<8x32xf32>
    %336 = arith.negf %326 : vector<8x32xf32>
    %337 = math.exp %336 : vector<8x32xf32>
    %cst_160 = arith.constant 1.000000e+00 : f32
    %338 = vector.broadcast %cst_160 : f32 to vector<8x32xf32>
    %339 = arith.addf %338, %337 : vector<8x32xf32>
    %340 = arith.divf %338, %339 : vector<8x32xf32>
    %341 = math.tanh %328 : vector<8x32xf32>
    %342 = arith.negf %330 : vector<8x32xf32>
    %343 = math.exp %342 : vector<8x32xf32>
    %cst_161 = arith.constant 1.000000e+00 : f32
    %344 = vector.broadcast %cst_161 : f32 to vector<8x32xf32>
    %345 = arith.addf %344, %343 : vector<8x32xf32>
    %346 = arith.divf %344, %345 : vector<8x32xf32>
    %347 = arith.mulf %340, %306 : vector<8x32xf32>
    %348 = arith.mulf %335, %341 : vector<8x32xf32>
    %349 = arith.addf %347, %348 : vector<8x32xf32>
    %350 = math.tanh %349 : vector<8x32xf32>
    %351 = arith.mulf %346, %350 : vector<8x32xf32>
    %c7_i32 = arith.constant 7 : i32
    %c8_i32_162 = arith.constant 8 : i32
    %352 = arith.muli %c7_i32, %c8_i32_162 : i32
    %353 = tpu.assume_multiple %352, 8 : i32
    %c0_163 = arith.constant 0 : index
    %354 = arith.index_cast %353 : i32 to index
    %c0_164 = arith.constant 0 : index
    %355 = vector.load %arg10[%c0_163, %354, %c0_164] : memref<4x64x32xf32, #tpu.memory_space<vmem>>, vector<1x8x32xf32>
    %356 = vector.shape_cast %355 : vector<1x8x32xf32> to vector<8x32xf32>
    %c1_165 = arith.constant 1 : index
    %357 = arith.index_cast %353 : i32 to index
    %c0_166 = arith.constant 0 : index
    %358 = vector.load %arg10[%c1_165, %357, %c0_166] : memref<4x64x32xf32, #tpu.memory_space<vmem>>, vector<1x8x32xf32>
    %359 = vector.shape_cast %358 : vector<1x8x32xf32> to vector<8x32xf32>
    %c2_167 = arith.constant 2 : index
    %360 = arith.index_cast %353 : i32 to index
    %c0_168 = arith.constant 0 : index
    %361 = vector.load %arg10[%c2_167, %360, %c0_168] : memref<4x64x32xf32, #tpu.memory_space<vmem>>, vector<1x8x32xf32>
    %362 = vector.shape_cast %361 : vector<1x8x32xf32> to vector<8x32xf32>
    %c3_169 = arith.constant 3 : index
    %363 = arith.index_cast %353 : i32 to index
    %c0_170 = arith.constant 0 : index
    %364 = vector.load %arg10[%c3_169, %363, %c0_170] : memref<4x64x32xf32, #tpu.memory_space<vmem>>, vector<1x8x32xf32>
    %365 = vector.shape_cast %364 : vector<1x8x32xf32> to vector<8x32xf32>
    %cst_171 = arith.constant dense<0.000000e+00> : vector<8x32xf32>
    %366 = tpu.matmul %351, %42, %cst_171 {dimension_numbers = #tpu.dot_dimension_numbers<[1], [0], [0], [1], [0, 0, 1, 1], [], []>} : vector<8x32xf32>, vector<32x32xf32>, vector<8x32xf32> -> vector<8x32xf32>
    %367 = arith.addf %356, %366 : vector<8x32xf32>
    %cst_172 = arith.constant dense<0.000000e+00> : vector<8x32xf32>
    %368 = tpu.matmul %351, %44, %cst_172 {dimension_numbers = #tpu.dot_dimension_numbers<[1], [0], [0], [1], [0, 0, 1, 1], [], []>} : vector<8x32xf32>, vector<32x32xf32>, vector<8x32xf32> -> vector<8x32xf32>
    %369 = arith.addf %359, %368 : vector<8x32xf32>
    %cst_173 = arith.constant dense<0.000000e+00> : vector<8x32xf32>
    %370 = tpu.matmul %351, %46, %cst_173 {dimension_numbers = #tpu.dot_dimension_numbers<[1], [0], [0], [1], [0, 0, 1, 1], [], []>} : vector<8x32xf32>, vector<32x32xf32>, vector<8x32xf32> -> vector<8x32xf32>
    %371 = arith.addf %362, %370 : vector<8x32xf32>
    %cst_174 = arith.constant dense<0.000000e+00> : vector<8x32xf32>
    %372 = tpu.matmul %351, %48, %cst_174 {dimension_numbers = #tpu.dot_dimension_numbers<[1], [0], [0], [1], [0, 0, 1, 1], [], []>} : vector<8x32xf32>, vector<32x32xf32>, vector<8x32xf32> -> vector<8x32xf32>
    %373 = arith.addf %365, %372 : vector<8x32xf32>
    %374 = arith.negf %367 : vector<8x32xf32>
    %375 = math.exp %374 : vector<8x32xf32>
    %cst_175 = arith.constant 1.000000e+00 : f32
    %376 = vector.broadcast %cst_175 : f32 to vector<8x32xf32>
    %377 = arith.addf %376, %375 : vector<8x32xf32>
    %378 = arith.divf %376, %377 : vector<8x32xf32>
    %379 = arith.negf %369 : vector<8x32xf32>
    %380 = math.exp %379 : vector<8x32xf32>
    %cst_176 = arith.constant 1.000000e+00 : f32
    %381 = vector.broadcast %cst_176 : f32 to vector<8x32xf32>
    %382 = arith.addf %381, %380 : vector<8x32xf32>
    %383 = arith.divf %381, %382 : vector<8x32xf32>
    %384 = math.tanh %371 : vector<8x32xf32>
    %385 = arith.negf %373 : vector<8x32xf32>
    %386 = math.exp %385 : vector<8x32xf32>
    %cst_177 = arith.constant 1.000000e+00 : f32
    %387 = vector.broadcast %cst_177 : f32 to vector<8x32xf32>
    %388 = arith.addf %387, %386 : vector<8x32xf32>
    %389 = arith.divf %387, %388 : vector<8x32xf32>
    %390 = arith.mulf %383, %349 : vector<8x32xf32>
    %391 = arith.mulf %378, %384 : vector<8x32xf32>
    %392 = arith.addf %390, %391 : vector<8x32xf32>
    %393 = math.tanh %392 : vector<8x32xf32>
    %394 = arith.mulf %389, %393 : vector<8x32xf32>
    %c8_i32_178 = arith.constant 8 : i32
    %c0_179 = arith.constant 0 : index
    %c0_180 = arith.constant 0 : index
    %c0_181 = arith.constant 0 : index
    %395 = vector.load %arg4[%c0_179, %c0_180, %c0_181] : memref<4x32x32xf32, #tpu.memory_space<vmem>>, vector<1x32x32xf32>
    %396 = vector.shape_cast %395 : vector<1x32x32xf32> to vector<32x32xf32>
    %cst_182 = arith.constant dense<0.000000e+00> : vector<8x32xf32>
    %397 = tpu.matmul %394, %396, %cst_182 {dimension_numbers = #tpu.dot_dimension_numbers<[1], [0], [0], [1], [0, 0, 1, 1], [], []>} : vector<8x32xf32>, vector<32x32xf32>, vector<8x32xf32> -> vector<8x32xf32>
    %c0_183 = arith.constant 0 : index
    %c0_184 = arith.constant 0 : index
    %c0_185 = arith.constant 0 : index
    %398 = vector.load %arg6[%c0_183, %c0_184, %c0_185] : memref<4x1x32xf32, #tpu.memory_space<vmem>>, vector<1x1x32xf32>
    %399 = vector.shape_cast %398 : vector<1x1x32xf32> to vector<1x32xf32>
    %400 = vector.broadcast %399 : vector<1x32xf32> to vector<8x32xf32>
    %401 = arith.addf %397, %400 : vector<8x32xf32>
    %c1_186 = arith.constant 1 : index
    %c0_187 = arith.constant 0 : index
    %c0_188 = arith.constant 0 : index
    %402 = vector.load %arg4[%c1_186, %c0_187, %c0_188] : memref<4x32x32xf32, #tpu.memory_space<vmem>>, vector<1x32x32xf32>
    %403 = vector.shape_cast %402 : vector<1x32x32xf32> to vector<32x32xf32>
    %cst_189 = arith.constant dense<0.000000e+00> : vector<8x32xf32>
    %404 = tpu.matmul %394, %403, %cst_189 {dimension_numbers = #tpu.dot_dimension_numbers<[1], [0], [0], [1], [0, 0, 1, 1], [], []>} : vector<8x32xf32>, vector<32x32xf32>, vector<8x32xf32> -> vector<8x32xf32>
    %c1_190 = arith.constant 1 : index
    %c0_191 = arith.constant 0 : index
    %c0_192 = arith.constant 0 : index
    %405 = vector.load %arg6[%c1_190, %c0_191, %c0_192] : memref<4x1x32xf32, #tpu.memory_space<vmem>>, vector<1x1x32xf32>
    %406 = vector.shape_cast %405 : vector<1x1x32xf32> to vector<1x32xf32>
    %407 = vector.broadcast %406 : vector<1x32xf32> to vector<8x32xf32>
    %408 = arith.addf %404, %407 : vector<8x32xf32>
    %c2_193 = arith.constant 2 : index
    %c0_194 = arith.constant 0 : index
    %c0_195 = arith.constant 0 : index
    %409 = vector.load %arg4[%c2_193, %c0_194, %c0_195] : memref<4x32x32xf32, #tpu.memory_space<vmem>>, vector<1x32x32xf32>
    %410 = vector.shape_cast %409 : vector<1x32x32xf32> to vector<32x32xf32>
    %cst_196 = arith.constant dense<0.000000e+00> : vector<8x32xf32>
    %411 = tpu.matmul %394, %410, %cst_196 {dimension_numbers = #tpu.dot_dimension_numbers<[1], [0], [0], [1], [0, 0, 1, 1], [], []>} : vector<8x32xf32>, vector<32x32xf32>, vector<8x32xf32> -> vector<8x32xf32>
    %c2_197 = arith.constant 2 : index
    %c0_198 = arith.constant 0 : index
    %c0_199 = arith.constant 0 : index
    %412 = vector.load %arg6[%c2_197, %c0_198, %c0_199] : memref<4x1x32xf32, #tpu.memory_space<vmem>>, vector<1x1x32xf32>
    %413 = vector.shape_cast %412 : vector<1x1x32xf32> to vector<1x32xf32>
    %414 = vector.broadcast %413 : vector<1x32xf32> to vector<8x32xf32>
    %415 = arith.addf %411, %414 : vector<8x32xf32>
    %c3_200 = arith.constant 3 : index
    %c0_201 = arith.constant 0 : index
    %c0_202 = arith.constant 0 : index
    %416 = vector.load %arg4[%c3_200, %c0_201, %c0_202] : memref<4x32x32xf32, #tpu.memory_space<vmem>>, vector<1x32x32xf32>
    %417 = vector.shape_cast %416 : vector<1x32x32xf32> to vector<32x32xf32>
    %cst_203 = arith.constant dense<0.000000e+00> : vector<8x32xf32>
    %418 = tpu.matmul %394, %417, %cst_203 {dimension_numbers = #tpu.dot_dimension_numbers<[1], [0], [0], [1], [0, 0, 1, 1], [], []>} : vector<8x32xf32>, vector<32x32xf32>, vector<8x32xf32> -> vector<8x32xf32>
    %c3_204 = arith.constant 3 : index
    %c0_205 = arith.constant 0 : index
    %c0_206 = arith.constant 0 : index
    %419 = vector.load %arg6[%c3_204, %c0_205, %c0_206] : memref<4x1x32xf32, #tpu.memory_space<vmem>>, vector<1x1x32xf32>
    %420 = vector.shape_cast %419 : vector<1x1x32xf32> to vector<1x32xf32>
    %421 = vector.broadcast %420 : vector<1x32xf32> to vector<8x32xf32>
    %422 = arith.addf %418, %421 : vector<8x32xf32>
    %c0_207 = arith.constant 0 : index
    %c0_208 = arith.constant 0 : index
    %c0_209 = arith.constant 0 : index
    %423 = vector.load %arg5[%c0_207, %c0_208, %c0_209] : memref<4x32x32xf32, #tpu.memory_space<vmem>>, vector<1x32x32xf32>
    %424 = vector.shape_cast %423 : vector<1x32x32xf32> to vector<32x32xf32>
    %c1_210 = arith.constant 1 : index
    %c0_211 = arith.constant 0 : index
    %c0_212 = arith.constant 0 : index
    %425 = vector.load %arg5[%c1_210, %c0_211, %c0_212] : memref<4x32x32xf32, #tpu.memory_space<vmem>>, vector<1x32x32xf32>
    %426 = vector.shape_cast %425 : vector<1x32x32xf32> to vector<32x32xf32>
    %c2_213 = arith.constant 2 : index
    %c0_214 = arith.constant 0 : index
    %c0_215 = arith.constant 0 : index
    %427 = vector.load %arg5[%c2_213, %c0_214, %c0_215] : memref<4x32x32xf32, #tpu.memory_space<vmem>>, vector<1x32x32xf32>
    %428 = vector.shape_cast %427 : vector<1x32x32xf32> to vector<32x32xf32>
    %c3_216 = arith.constant 3 : index
    %c0_217 = arith.constant 0 : index
    %c0_218 = arith.constant 0 : index
    %429 = vector.load %arg5[%c3_216, %c0_217, %c0_218] : memref<4x32x32xf32, #tpu.memory_space<vmem>>, vector<1x32x32xf32>
    %430 = vector.shape_cast %429 : vector<1x32x32xf32> to vector<32x32xf32>
    %c0_219 = arith.constant 0 : index
    %c0_220 = arith.constant 0 : index
    %431 = vector.load %arg7[%c0_219, %c0_220] : memref<32x128xf32, #tpu.memory_space<vmem>>, vector<32x128xf32>
    %c0_221 = arith.constant 0 : index
    %c0_222 = arith.constant 0 : index
    %432 = vector.load %arg8[%c0_221, %c0_222] : memref<1x128xf32, #tpu.memory_space<vmem>>, vector<1x128xf32>
    %cst_223 = arith.constant 0.000000e+00 : f32
    %433 = vector.broadcast %cst_223 : f32 to vector<8x32xf32>
    %cst_224 = arith.constant 0.000000e+00 : f32
    %434 = vector.broadcast %cst_224 : f32 to vector<8x32xf32>
    %c0_i32_225 = arith.constant 0 : i32
    %cst_226 = arith.constant dense<0.000000e+00> : vector<8x32xf32>
    %435 = tpu.matmul %433, %424, %cst_226 {dimension_numbers = #tpu.dot_dimension_numbers<[1], [0], [0], [1], [0, 0, 1, 1], [], []>} : vector<8x32xf32>, vector<32x32xf32>, vector<8x32xf32> -> vector<8x32xf32>
    %436 = arith.addf %401, %435 : vector<8x32xf32>
    %cst_227 = arith.constant dense<0.000000e+00> : vector<8x32xf32>
    %437 = tpu.matmul %433, %426, %cst_227 {dimension_numbers = #tpu.dot_dimension_numbers<[1], [0], [0], [1], [0, 0, 1, 1], [], []>} : vector<8x32xf32>, vector<32x32xf32>, vector<8x32xf32> -> vector<8x32xf32>
    %438 = arith.addf %408, %437 : vector<8x32xf32>
    %cst_228 = arith.constant dense<0.000000e+00> : vector<8x32xf32>
    %439 = tpu.matmul %433, %428, %cst_228 {dimension_numbers = #tpu.dot_dimension_numbers<[1], [0], [0], [1], [0, 0, 1, 1], [], []>} : vector<8x32xf32>, vector<32x32xf32>, vector<8x32xf32> -> vector<8x32xf32>
    %440 = arith.addf %415, %439 : vector<8x32xf32>
    %cst_229 = arith.constant dense<0.000000e+00> : vector<8x32xf32>
    %441 = tpu.matmul %433, %430, %cst_229 {dimension_numbers = #tpu.dot_dimension_numbers<[1], [0], [0], [1], [0, 0, 1, 1], [], []>} : vector<8x32xf32>, vector<32x32xf32>, vector<8x32xf32> -> vector<8x32xf32>
    %442 = arith.addf %422, %441 : vector<8x32xf32>
    %443 = arith.negf %436 : vector<8x32xf32>
    %444 = math.exp %443 : vector<8x32xf32>
    %cst_230 = arith.constant 1.000000e+00 : f32
    %445 = vector.broadcast %cst_230 : f32 to vector<8x32xf32>
    %446 = arith.addf %445, %444 : vector<8x32xf32>
    %447 = arith.divf %445, %446 : vector<8x32xf32>
    %448 = arith.negf %438 : vector<8x32xf32>
    %449 = math.exp %448 : vector<8x32xf32>
    %cst_231 = arith.constant 1.000000e+00 : f32
    %450 = vector.broadcast %cst_231 : f32 to vector<8x32xf32>
    %451 = arith.addf %450, %449 : vector<8x32xf32>
    %452 = arith.divf %450, %451 : vector<8x32xf32>
    %453 = math.tanh %440 : vector<8x32xf32>
    %454 = arith.negf %442 : vector<8x32xf32>
    %455 = math.exp %454 : vector<8x32xf32>
    %cst_232 = arith.constant 1.000000e+00 : f32
    %456 = vector.broadcast %cst_232 : f32 to vector<8x32xf32>
    %457 = arith.addf %456, %455 : vector<8x32xf32>
    %458 = arith.divf %456, %457 : vector<8x32xf32>
    %459 = arith.mulf %452, %434 : vector<8x32xf32>
    %460 = arith.mulf %447, %453 : vector<8x32xf32>
    %461 = arith.addf %459, %460 : vector<8x32xf32>
    %462 = math.tanh %461 : vector<8x32xf32>
    %463 = arith.mulf %458, %462 : vector<8x32xf32>
    %c8_i32_233 = arith.constant 8 : i32
    %464 = arith.muli %c0_i32_225, %c8_i32_233 : i32
    %465 = tpu.assume_multiple %464, 8 : i32
    %cst_234 = arith.constant dense<0.000000e+00> : vector<8x128xf32>
    %466 = tpu.matmul %463, %431, %cst_234 {dimension_numbers = #tpu.dot_dimension_numbers<[1], [0], [0], [1], [0, 0, 1, 1], [], []>} : vector<8x32xf32>, vector<32x128xf32>, vector<8x128xf32> -> vector<8x128xf32>
    %467 = vector.broadcast %432 : vector<1x128xf32> to vector<8x128xf32>
    %468 = arith.addf %466, %467 : vector<8x128xf32>
    %469 = arith.index_cast %465 : i32 to index
    %c0_235 = arith.constant 0 : index
    %470 = vector.load %arg9[%469, %c0_235] : memref<64x128xf32, #tpu.memory_space<vmem>>, vector<8x128xf32>
    tpu.vector_store %arg9[%469, %c0_235], %468 {strides = array<i32>} : memref<64x128xf32, #tpu.memory_space<vmem>>, vector<8x128xf32>,
    %c1_i32_236 = arith.constant 1 : i32
    %cst_237 = arith.constant dense<0.000000e+00> : vector<8x32xf32>
    %471 = tpu.matmul %463, %424, %cst_237 {dimension_numbers = #tpu.dot_dimension_numbers<[1], [0], [0], [1], [0, 0, 1, 1], [], []>} : vector<8x32xf32>, vector<32x32xf32>, vector<8x32xf32> -> vector<8x32xf32>
    %472 = arith.addf %401, %471 : vector<8x32xf32>
    %cst_238 = arith.constant dense<0.000000e+00> : vector<8x32xf32>
    %473 = tpu.matmul %463, %426, %cst_238 {dimension_numbers = #tpu.dot_dimension_numbers<[1], [0], [0], [1], [0, 0, 1, 1], [], []>} : vector<8x32xf32>, vector<32x32xf32>, vector<8x32xf32> -> vector<8x32xf32>
    %474 = arith.addf %408, %473 : vector<8x32xf32>
    %cst_239 = arith.constant dense<0.000000e+00> : vector<8x32xf32>
    %475 = tpu.matmul %463, %428, %cst_239 {dimension_numbers = #tpu.dot_dimension_numbers<[1], [0], [0], [1], [0, 0, 1, 1], [], []>} : vector<8x32xf32>, vector<32x32xf32>, vector<8x32xf32> -> vector<8x32xf32>
    %476 = arith.addf %415, %475 : vector<8x32xf32>
    %cst_240 = arith.constant dense<0.000000e+00> : vector<8x32xf32>
    %477 = tpu.matmul %463, %430, %cst_240 {dimension_numbers = #tpu.dot_dimension_numbers<[1], [0], [0], [1], [0, 0, 1, 1], [], []>} : vector<8x32xf32>, vector<32x32xf32>, vector<8x32xf32> -> vector<8x32xf32>
    %478 = arith.addf %422, %477 : vector<8x32xf32>
    %479 = arith.negf %472 : vector<8x32xf32>
    %480 = math.exp %479 : vector<8x32xf32>
    %cst_241 = arith.constant 1.000000e+00 : f32
    %481 = vector.broadcast %cst_241 : f32 to vector<8x32xf32>
    %482 = arith.addf %481, %480 : vector<8x32xf32>
    %483 = arith.divf %481, %482 : vector<8x32xf32>
    %484 = arith.negf %474 : vector<8x32xf32>
    %485 = math.exp %484 : vector<8x32xf32>
    %cst_242 = arith.constant 1.000000e+00 : f32
    %486 = vector.broadcast %cst_242 : f32 to vector<8x32xf32>
    %487 = arith.addf %486, %485 : vector<8x32xf32>
    %488 = arith.divf %486, %487 : vector<8x32xf32>
    %489 = math.tanh %476 : vector<8x32xf32>
    %490 = arith.negf %478 : vector<8x32xf32>
    %491 = math.exp %490 : vector<8x32xf32>
    %cst_243 = arith.constant 1.000000e+00 : f32
    %492 = vector.broadcast %cst_243 : f32 to vector<8x32xf32>
    %493 = arith.addf %492, %491 : vector<8x32xf32>
    %494 = arith.divf %492, %493 : vector<8x32xf32>
    %495 = arith.mulf %488, %461 : vector<8x32xf32>
    %496 = arith.mulf %483, %489 : vector<8x32xf32>
    %497 = arith.addf %495, %496 : vector<8x32xf32>
    %498 = math.tanh %497 : vector<8x32xf32>
    %499 = arith.mulf %494, %498 : vector<8x32xf32>
    %c8_i32_244 = arith.constant 8 : i32
    %500 = arith.muli %c1_i32_236, %c8_i32_244 : i32
    %501 = tpu.assume_multiple %500, 8 : i32
    %cst_245 = arith.constant dense<0.000000e+00> : vector<8x128xf32>
    %502 = tpu.matmul %499, %431, %cst_245 {dimension_numbers = #tpu.dot_dimension_numbers<[1], [0], [0], [1], [0, 0, 1, 1], [], []>} : vector<8x32xf32>, vector<32x128xf32>, vector<8x128xf32> -> vector<8x128xf32>
    %503 = vector.broadcast %432 : vector<1x128xf32> to vector<8x128xf32>
    %504 = arith.addf %502, %503 : vector<8x128xf32>
    %505 = arith.index_cast %501 : i32 to index
    %c0_246 = arith.constant 0 : index
    %506 = vector.load %arg9[%505, %c0_246] : memref<64x128xf32, #tpu.memory_space<vmem>>, vector<8x128xf32>
    tpu.vector_store %arg9[%505, %c0_246], %504 {strides = array<i32>} : memref<64x128xf32, #tpu.memory_space<vmem>>, vector<8x128xf32>,
    %c2_i32_247 = arith.constant 2 : i32
    %cst_248 = arith.constant dense<0.000000e+00> : vector<8x32xf32>
    %507 = tpu.matmul %499, %424, %cst_248 {dimension_numbers = #tpu.dot_dimension_numbers<[1], [0], [0], [1], [0, 0, 1, 1], [], []>} : vector<8x32xf32>, vector<32x32xf32>, vector<8x32xf32> -> vector<8x32xf32>
    %508 = arith.addf %401, %507 : vector<8x32xf32>
    %cst_249 = arith.constant dense<0.000000e+00> : vector<8x32xf32>
    %509 = tpu.matmul %499, %426, %cst_249 {dimension_numbers = #tpu.dot_dimension_numbers<[1], [0], [0], [1], [0, 0, 1, 1], [], []>} : vector<8x32xf32>, vector<32x32xf32>, vector<8x32xf32> -> vector<8x32xf32>
    %510 = arith.addf %408, %509 : vector<8x32xf32>
    %cst_250 = arith.constant dense<0.000000e+00> : vector<8x32xf32>
    %511 = tpu.matmul %499, %428, %cst_250 {dimension_numbers = #tpu.dot_dimension_numbers<[1], [0], [0], [1], [0, 0, 1, 1], [], []>} : vector<8x32xf32>, vector<32x32xf32>, vector<8x32xf32> -> vector<8x32xf32>
    %512 = arith.addf %415, %511 : vector<8x32xf32>
    %cst_251 = arith.constant dense<0.000000e+00> : vector<8x32xf32>
    %513 = tpu.matmul %499, %430, %cst_251 {dimension_numbers = #tpu.dot_dimension_numbers<[1], [0], [0], [1], [0, 0, 1, 1], [], []>} : vector<8x32xf32>, vector<32x32xf32>, vector<8x32xf32> -> vector<8x32xf32>
    %514 = arith.addf %422, %513 : vector<8x32xf32>
    %515 = arith.negf %508 : vector<8x32xf32>
    %516 = math.exp %515 : vector<8x32xf32>
    %cst_252 = arith.constant 1.000000e+00 : f32
    %517 = vector.broadcast %cst_252 : f32 to vector<8x32xf32>
    %518 = arith.addf %517, %516 : vector<8x32xf32>
    %519 = arith.divf %517, %518 : vector<8x32xf32>
    %520 = arith.negf %510 : vector<8x32xf32>
    %521 = math.exp %520 : vector<8x32xf32>
    %cst_253 = arith.constant 1.000000e+00 : f32
    %522 = vector.broadcast %cst_253 : f32 to vector<8x32xf32>
    %523 = arith.addf %522, %521 : vector<8x32xf32>
    %524 = arith.divf %522, %523 : vector<8x32xf32>
    %525 = math.tanh %512 : vector<8x32xf32>
    %526 = arith.negf %514 : vector<8x32xf32>
    %527 = math.exp %526 : vector<8x32xf32>
    %cst_254 = arith.constant 1.000000e+00 : f32
    %528 = vector.broadcast %cst_254 : f32 to vector<8x32xf32>
    %529 = arith.addf %528, %527 : vector<8x32xf32>
    %530 = arith.divf %528, %529 : vector<8x32xf32>
    %531 = arith.mulf %524, %497 : vector<8x32xf32>
    %532 = arith.mulf %519, %525 : vector<8x32xf32>
    %533 = arith.addf %531, %532 : vector<8x32xf32>
    %534 = math.tanh %533 : vector<8x32xf32>
    %535 = arith.mulf %530, %534 : vector<8x32xf32>
    %c8_i32_255 = arith.constant 8 : i32
    %536 = arith.muli %c2_i32_247, %c8_i32_255 : i32
    %537 = tpu.assume_multiple %536, 8 : i32
    %cst_256 = arith.constant dense<0.000000e+00> : vector<8x128xf32>
    %538 = tpu.matmul %535, %431, %cst_256 {dimension_numbers = #tpu.dot_dimension_numbers<[1], [0], [0], [1], [0, 0, 1, 1], [], []>} : vector<8x32xf32>, vector<32x128xf32>, vector<8x128xf32> -> vector<8x128xf32>
    %539 = vector.broadcast %432 : vector<1x128xf32> to vector<8x128xf32>
    %540 = arith.addf %538, %539 : vector<8x128xf32>
    %541 = arith.index_cast %537 : i32 to index
    %c0_257 = arith.constant 0 : index
    %542 = vector.load %arg9[%541, %c0_257] : memref<64x128xf32, #tpu.memory_space<vmem>>, vector<8x128xf32>
    tpu.vector_store %arg9[%541, %c0_257], %540 {strides = array<i32>} : memref<64x128xf32, #tpu.memory_space<vmem>>, vector<8x128xf32>,
    %c3_i32_258 = arith.constant 3 : i32
    %cst_259 = arith.constant dense<0.000000e+00> : vector<8x32xf32>
    %543 = tpu.matmul %535, %424, %cst_259 {dimension_numbers = #tpu.dot_dimension_numbers<[1], [0], [0], [1], [0, 0, 1, 1], [], []>} : vector<8x32xf32>, vector<32x32xf32>, vector<8x32xf32> -> vector<8x32xf32>
    %544 = arith.addf %401, %543 : vector<8x32xf32>
    %cst_260 = arith.constant dense<0.000000e+00> : vector<8x32xf32>
    %545 = tpu.matmul %535, %426, %cst_260 {dimension_numbers = #tpu.dot_dimension_numbers<[1], [0], [0], [1], [0, 0, 1, 1], [], []>} : vector<8x32xf32>, vector<32x32xf32>, vector<8x32xf32> -> vector<8x32xf32>
    %546 = arith.addf %408, %545 : vector<8x32xf32>
    %cst_261 = arith.constant dense<0.000000e+00> : vector<8x32xf32>
    %547 = tpu.matmul %535, %428, %cst_261 {dimension_numbers = #tpu.dot_dimension_numbers<[1], [0], [0], [1], [0, 0, 1, 1], [], []>} : vector<8x32xf32>, vector<32x32xf32>, vector<8x32xf32> -> vector<8x32xf32>
    %548 = arith.addf %415, %547 : vector<8x32xf32>
    %cst_262 = arith.constant dense<0.000000e+00> : vector<8x32xf32>
    %549 = tpu.matmul %535, %430, %cst_262 {dimension_numbers = #tpu.dot_dimension_numbers<[1], [0], [0], [1], [0, 0, 1, 1], [], []>} : vector<8x32xf32>, vector<32x32xf32>, vector<8x32xf32> -> vector<8x32xf32>
    %550 = arith.addf %422, %549 : vector<8x32xf32>
    %551 = arith.negf %544 : vector<8x32xf32>
    %552 = math.exp %551 : vector<8x32xf32>
    %cst_263 = arith.constant 1.000000e+00 : f32
    %553 = vector.broadcast %cst_263 : f32 to vector<8x32xf32>
    %554 = arith.addf %553, %552 : vector<8x32xf32>
    %555 = arith.divf %553, %554 : vector<8x32xf32>
    %556 = arith.negf %546 : vector<8x32xf32>
    %557 = math.exp %556 : vector<8x32xf32>
    %cst_264 = arith.constant 1.000000e+00 : f32
    %558 = vector.broadcast %cst_264 : f32 to vector<8x32xf32>
    %559 = arith.addf %558, %557 : vector<8x32xf32>
    %560 = arith.divf %558, %559 : vector<8x32xf32>
    %561 = math.tanh %548 : vector<8x32xf32>
    %562 = arith.negf %550 : vector<8x32xf32>
    %563 = math.exp %562 : vector<8x32xf32>
    %cst_265 = arith.constant 1.000000e+00 : f32
    %564 = vector.broadcast %cst_265 : f32 to vector<8x32xf32>
    %565 = arith.addf %564, %563 : vector<8x32xf32>
    %566 = arith.divf %564, %565 : vector<8x32xf32>
    %567 = arith.mulf %560, %533 : vector<8x32xf32>
    %568 = arith.mulf %555, %561 : vector<8x32xf32>
    %569 = arith.addf %567, %568 : vector<8x32xf32>
    %570 = math.tanh %569 : vector<8x32xf32>
    %571 = arith.mulf %566, %570 : vector<8x32xf32>
    %c8_i32_266 = arith.constant 8 : i32
    %572 = arith.muli %c3_i32_258, %c8_i32_266 : i32
    %573 = tpu.assume_multiple %572, 8 : i32
    %cst_267 = arith.constant dense<0.000000e+00> : vector<8x128xf32>
    %574 = tpu.matmul %571, %431, %cst_267 {dimension_numbers = #tpu.dot_dimension_numbers<[1], [0], [0], [1], [0, 0, 1, 1], [], []>} : vector<8x32xf32>, vector<32x128xf32>, vector<8x128xf32> -> vector<8x128xf32>
    %575 = vector.broadcast %432 : vector<1x128xf32> to vector<8x128xf32>
    %576 = arith.addf %574, %575 : vector<8x128xf32>
    %577 = arith.index_cast %573 : i32 to index
    %c0_268 = arith.constant 0 : index
    %578 = vector.load %arg9[%577, %c0_268] : memref<64x128xf32, #tpu.memory_space<vmem>>, vector<8x128xf32>
    tpu.vector_store %arg9[%577, %c0_268], %576 {strides = array<i32>} : memref<64x128xf32, #tpu.memory_space<vmem>>, vector<8x128xf32>,
    %c4_i32_269 = arith.constant 4 : i32
    %cst_270 = arith.constant dense<0.000000e+00> : vector<8x32xf32>
    %579 = tpu.matmul %571, %424, %cst_270 {dimension_numbers = #tpu.dot_dimension_numbers<[1], [0], [0], [1], [0, 0, 1, 1], [], []>} : vector<8x32xf32>, vector<32x32xf32>, vector<8x32xf32> -> vector<8x32xf32>
    %580 = arith.addf %401, %579 : vector<8x32xf32>
    %cst_271 = arith.constant dense<0.000000e+00> : vector<8x32xf32>
    %581 = tpu.matmul %571, %426, %cst_271 {dimension_numbers = #tpu.dot_dimension_numbers<[1], [0], [0], [1], [0, 0, 1, 1], [], []>} : vector<8x32xf32>, vector<32x32xf32>, vector<8x32xf32> -> vector<8x32xf32>
    %582 = arith.addf %408, %581 : vector<8x32xf32>
    %cst_272 = arith.constant dense<0.000000e+00> : vector<8x32xf32>
    %583 = tpu.matmul %571, %428, %cst_272 {dimension_numbers = #tpu.dot_dimension_numbers<[1], [0], [0], [1], [0, 0, 1, 1], [], []>} : vector<8x32xf32>, vector<32x32xf32>, vector<8x32xf32> -> vector<8x32xf32>
    %584 = arith.addf %415, %583 : vector<8x32xf32>
    %cst_273 = arith.constant dense<0.000000e+00> : vector<8x32xf32>
    %585 = tpu.matmul %571, %430, %cst_273 {dimension_numbers = #tpu.dot_dimension_numbers<[1], [0], [0], [1], [0, 0, 1, 1], [], []>} : vector<8x32xf32>, vector<32x32xf32>, vector<8x32xf32> -> vector<8x32xf32>
    %586 = arith.addf %422, %585 : vector<8x32xf32>
    %587 = arith.negf %580 : vector<8x32xf32>
    %588 = math.exp %587 : vector<8x32xf32>
    %cst_274 = arith.constant 1.000000e+00 : f32
    %589 = vector.broadcast %cst_274 : f32 to vector<8x32xf32>
    %590 = arith.addf %589, %588 : vector<8x32xf32>
    %591 = arith.divf %589, %590 : vector<8x32xf32>
    %592 = arith.negf %582 : vector<8x32xf32>
    %593 = math.exp %592 : vector<8x32xf32>
    %cst_275 = arith.constant 1.000000e+00 : f32
    %594 = vector.broadcast %cst_275 : f32 to vector<8x32xf32>
    %595 = arith.addf %594, %593 : vector<8x32xf32>
    %596 = arith.divf %594, %595 : vector<8x32xf32>
    %597 = math.tanh %584 : vector<8x32xf32>
    %598 = arith.negf %586 : vector<8x32xf32>
    %599 = math.exp %598 : vector<8x32xf32>
    %cst_276 = arith.constant 1.000000e+00 : f32
    %600 = vector.broadcast %cst_276 : f32 to vector<8x32xf32>
    %601 = arith.addf %600, %599 : vector<8x32xf32>
    %602 = arith.divf %600, %601 : vector<8x32xf32>
    %603 = arith.mulf %596, %569 : vector<8x32xf32>
    %604 = arith.mulf %591, %597 : vector<8x32xf32>
    %605 = arith.addf %603, %604 : vector<8x32xf32>
    %606 = math.tanh %605 : vector<8x32xf32>
    %607 = arith.mulf %602, %606 : vector<8x32xf32>
    %c8_i32_277 = arith.constant 8 : i32
    %608 = arith.muli %c4_i32_269, %c8_i32_277 : i32
    %609 = tpu.assume_multiple %608, 8 : i32
    %cst_278 = arith.constant dense<0.000000e+00> : vector<8x128xf32>
    %610 = tpu.matmul %607, %431, %cst_278 {dimension_numbers = #tpu.dot_dimension_numbers<[1], [0], [0], [1], [0, 0, 1, 1], [], []>} : vector<8x32xf32>, vector<32x128xf32>, vector<8x128xf32> -> vector<8x128xf32>
    %611 = vector.broadcast %432 : vector<1x128xf32> to vector<8x128xf32>
    %612 = arith.addf %610, %611 : vector<8x128xf32>
    %613 = arith.index_cast %609 : i32 to index
    %c0_279 = arith.constant 0 : index
    %614 = vector.load %arg9[%613, %c0_279] : memref<64x128xf32, #tpu.memory_space<vmem>>, vector<8x128xf32>
    tpu.vector_store %arg9[%613, %c0_279], %612 {strides = array<i32>} : memref<64x128xf32, #tpu.memory_space<vmem>>, vector<8x128xf32>,
    %c5_i32_280 = arith.constant 5 : i32
    %cst_281 = arith.constant dense<0.000000e+00> : vector<8x32xf32>
    %615 = tpu.matmul %607, %424, %cst_281 {dimension_numbers = #tpu.dot_dimension_numbers<[1], [0], [0], [1], [0, 0, 1, 1], [], []>} : vector<8x32xf32>, vector<32x32xf32>, vector<8x32xf32> -> vector<8x32xf32>
    %616 = arith.addf %401, %615 : vector<8x32xf32>
    %cst_282 = arith.constant dense<0.000000e+00> : vector<8x32xf32>
    %617 = tpu.matmul %607, %426, %cst_282 {dimension_numbers = #tpu.dot_dimension_numbers<[1], [0], [0], [1], [0, 0, 1, 1], [], []>} : vector<8x32xf32>, vector<32x32xf32>, vector<8x32xf32> -> vector<8x32xf32>
    %618 = arith.addf %408, %617 : vector<8x32xf32>
    %cst_283 = arith.constant dense<0.000000e+00> : vector<8x32xf32>
    %619 = tpu.matmul %607, %428, %cst_283 {dimension_numbers = #tpu.dot_dimension_numbers<[1], [0], [0], [1], [0, 0, 1, 1], [], []>} : vector<8x32xf32>, vector<32x32xf32>, vector<8x32xf32> -> vector<8x32xf32>
    %620 = arith.addf %415, %619 : vector<8x32xf32>
    %cst_284 = arith.constant dense<0.000000e+00> : vector<8x32xf32>
    %621 = tpu.matmul %607, %430, %cst_284 {dimension_numbers = #tpu.dot_dimension_numbers<[1], [0], [0], [1], [0, 0, 1, 1], [], []>} : vector<8x32xf32>, vector<32x32xf32>, vector<8x32xf32> -> vector<8x32xf32>
    %622 = arith.addf %422, %621 : vector<8x32xf32>
    %623 = arith.negf %616 : vector<8x32xf32>
    %624 = math.exp %623 : vector<8x32xf32>
    %cst_285 = arith.constant 1.000000e+00 : f32
    %625 = vector.broadcast %cst_285 : f32 to vector<8x32xf32>
    %626 = arith.addf %625, %624 : vector<8x32xf32>
    %627 = arith.divf %625, %626 : vector<8x32xf32>
    %628 = arith.negf %618 : vector<8x32xf32>
    %629 = math.exp %628 : vector<8x32xf32>
    %cst_286 = arith.constant 1.000000e+00 : f32
    %630 = vector.broadcast %cst_286 : f32 to vector<8x32xf32>
    %631 = arith.addf %630, %629 : vector<8x32xf32>
    %632 = arith.divf %630, %631 : vector<8x32xf32>
    %633 = math.tanh %620 : vector<8x32xf32>
    %634 = arith.negf %622 : vector<8x32xf32>
    %635 = math.exp %634 : vector<8x32xf32>
    %cst_287 = arith.constant 1.000000e+00 : f32
    %636 = vector.broadcast %cst_287 : f32 to vector<8x32xf32>
    %637 = arith.addf %636, %635 : vector<8x32xf32>
    %638 = arith.divf %636, %637 : vector<8x32xf32>
    %639 = arith.mulf %632, %605 : vector<8x32xf32>
    %640 = arith.mulf %627, %633 : vector<8x32xf32>
    %641 = arith.addf %639, %640 : vector<8x32xf32>
    %642 = math.tanh %641 : vector<8x32xf32>
    %643 = arith.mulf %638, %642 : vector<8x32xf32>
    %c8_i32_288 = arith.constant 8 : i32
    %644 = arith.muli %c5_i32_280, %c8_i32_288 : i32
    %645 = tpu.assume_multiple %644, 8 : i32
    %cst_289 = arith.constant dense<0.000000e+00> : vector<8x128xf32>
    %646 = tpu.matmul %643, %431, %cst_289 {dimension_numbers = #tpu.dot_dimension_numbers<[1], [0], [0], [1], [0, 0, 1, 1], [], []>} : vector<8x32xf32>, vector<32x128xf32>, vector<8x128xf32> -> vector<8x128xf32>
    %647 = vector.broadcast %432 : vector<1x128xf32> to vector<8x128xf32>
    %648 = arith.addf %646, %647 : vector<8x128xf32>
    %649 = arith.index_cast %645 : i32 to index
    %c0_290 = arith.constant 0 : index
    %650 = vector.load %arg9[%649, %c0_290] : memref<64x128xf32, #tpu.memory_space<vmem>>, vector<8x128xf32>
    tpu.vector_store %arg9[%649, %c0_290], %648 {strides = array<i32>} : memref<64x128xf32, #tpu.memory_space<vmem>>, vector<8x128xf32>,
    %c6_i32_291 = arith.constant 6 : i32
    %cst_292 = arith.constant dense<0.000000e+00> : vector<8x32xf32>
    %651 = tpu.matmul %643, %424, %cst_292 {dimension_numbers = #tpu.dot_dimension_numbers<[1], [0], [0], [1], [0, 0, 1, 1], [], []>} : vector<8x32xf32>, vector<32x32xf32>, vector<8x32xf32> -> vector<8x32xf32>
    %652 = arith.addf %401, %651 : vector<8x32xf32>
    %cst_293 = arith.constant dense<0.000000e+00> : vector<8x32xf32>
    %653 = tpu.matmul %643, %426, %cst_293 {dimension_numbers = #tpu.dot_dimension_numbers<[1], [0], [0], [1], [0, 0, 1, 1], [], []>} : vector<8x32xf32>, vector<32x32xf32>, vector<8x32xf32> -> vector<8x32xf32>
    %654 = arith.addf %408, %653 : vector<8x32xf32>
    %cst_294 = arith.constant dense<0.000000e+00> : vector<8x32xf32>
    %655 = tpu.matmul %643, %428, %cst_294 {dimension_numbers = #tpu.dot_dimension_numbers<[1], [0], [0], [1], [0, 0, 1, 1], [], []>} : vector<8x32xf32>, vector<32x32xf32>, vector<8x32xf32> -> vector<8x32xf32>
    %656 = arith.addf %415, %655 : vector<8x32xf32>
    %cst_295 = arith.constant dense<0.000000e+00> : vector<8x32xf32>
    %657 = tpu.matmul %643, %430, %cst_295 {dimension_numbers = #tpu.dot_dimension_numbers<[1], [0], [0], [1], [0, 0, 1, 1], [], []>} : vector<8x32xf32>, vector<32x32xf32>, vector<8x32xf32> -> vector<8x32xf32>
    %658 = arith.addf %422, %657 : vector<8x32xf32>
    %659 = arith.negf %652 : vector<8x32xf32>
    %660 = math.exp %659 : vector<8x32xf32>
    %cst_296 = arith.constant 1.000000e+00 : f32
    %661 = vector.broadcast %cst_296 : f32 to vector<8x32xf32>
    %662 = arith.addf %661, %660 : vector<8x32xf32>
    %663 = arith.divf %661, %662 : vector<8x32xf32>
    %664 = arith.negf %654 : vector<8x32xf32>
    %665 = math.exp %664 : vector<8x32xf32>
    %cst_297 = arith.constant 1.000000e+00 : f32
    %666 = vector.broadcast %cst_297 : f32 to vector<8x32xf32>
    %667 = arith.addf %666, %665 : vector<8x32xf32>
    %668 = arith.divf %666, %667 : vector<8x32xf32>
    %669 = math.tanh %656 : vector<8x32xf32>
    %670 = arith.negf %658 : vector<8x32xf32>
    %671 = math.exp %670 : vector<8x32xf32>
    %cst_298 = arith.constant 1.000000e+00 : f32
    %672 = vector.broadcast %cst_298 : f32 to vector<8x32xf32>
    %673 = arith.addf %672, %671 : vector<8x32xf32>
    %674 = arith.divf %672, %673 : vector<8x32xf32>
    %675 = arith.mulf %668, %641 : vector<8x32xf32>
    %676 = arith.mulf %663, %669 : vector<8x32xf32>
    %677 = arith.addf %675, %676 : vector<8x32xf32>
    %678 = math.tanh %677 : vector<8x32xf32>
    %679 = arith.mulf %674, %678 : vector<8x32xf32>
    %c8_i32_299 = arith.constant 8 : i32
    %680 = arith.muli %c6_i32_291, %c8_i32_299 : i32
    %681 = tpu.assume_multiple %680, 8 : i32
    %cst_300 = arith.constant dense<0.000000e+00> : vector<8x128xf32>
    %682 = tpu.matmul %679, %431, %cst_300 {dimension_numbers = #tpu.dot_dimension_numbers<[1], [0], [0], [1], [0, 0, 1, 1], [], []>} : vector<8x32xf32>, vector<32x128xf32>, vector<8x128xf32> -> vector<8x128xf32>
    %683 = vector.broadcast %432 : vector<1x128xf32> to vector<8x128xf32>
    %684 = arith.addf %682, %683 : vector<8x128xf32>
    %685 = arith.index_cast %681 : i32 to index
    %c0_301 = arith.constant 0 : index
    %686 = vector.load %arg9[%685, %c0_301] : memref<64x128xf32, #tpu.memory_space<vmem>>, vector<8x128xf32>
    tpu.vector_store %arg9[%685, %c0_301], %684 {strides = array<i32>} : memref<64x128xf32, #tpu.memory_space<vmem>>, vector<8x128xf32>,
    %c7_i32_302 = arith.constant 7 : i32
    %cst_303 = arith.constant dense<0.000000e+00> : vector<8x32xf32>
    %687 = tpu.matmul %679, %424, %cst_303 {dimension_numbers = #tpu.dot_dimension_numbers<[1], [0], [0], [1], [0, 0, 1, 1], [], []>} : vector<8x32xf32>, vector<32x32xf32>, vector<8x32xf32> -> vector<8x32xf32>
    %688 = arith.addf %401, %687 : vector<8x32xf32>
    %cst_304 = arith.constant dense<0.000000e+00> : vector<8x32xf32>
    %689 = tpu.matmul %679, %426, %cst_304 {dimension_numbers = #tpu.dot_dimension_numbers<[1], [0], [0], [1], [0, 0, 1, 1], [], []>} : vector<8x32xf32>, vector<32x32xf32>, vector<8x32xf32> -> vector<8x32xf32>
    %690 = arith.addf %408, %689 : vector<8x32xf32>
    %cst_305 = arith.constant dense<0.000000e+00> : vector<8x32xf32>
    %691 = tpu.matmul %679, %428, %cst_305 {dimension_numbers = #tpu.dot_dimension_numbers<[1], [0], [0], [1], [0, 0, 1, 1], [], []>} : vector<8x32xf32>, vector<32x32xf32>, vector<8x32xf32> -> vector<8x32xf32>
    %692 = arith.addf %415, %691 : vector<8x32xf32>
    %cst_306 = arith.constant dense<0.000000e+00> : vector<8x32xf32>
    %693 = tpu.matmul %679, %430, %cst_306 {dimension_numbers = #tpu.dot_dimension_numbers<[1], [0], [0], [1], [0, 0, 1, 1], [], []>} : vector<8x32xf32>, vector<32x32xf32>, vector<8x32xf32> -> vector<8x32xf32>
    %694 = arith.addf %422, %693 : vector<8x32xf32>
    %695 = arith.negf %688 : vector<8x32xf32>
    %696 = math.exp %695 : vector<8x32xf32>
    %cst_307 = arith.constant 1.000000e+00 : f32
    %697 = vector.broadcast %cst_307 : f32 to vector<8x32xf32>
    %698 = arith.addf %697, %696 : vector<8x32xf32>
    %699 = arith.divf %697, %698 : vector<8x32xf32>
    %700 = arith.negf %690 : vector<8x32xf32>
    %701 = math.exp %700 : vector<8x32xf32>
    %cst_308 = arith.constant 1.000000e+00 : f32
    %702 = vector.broadcast %cst_308 : f32 to vector<8x32xf32>
    %703 = arith.addf %702, %701 : vector<8x32xf32>
    %704 = arith.divf %702, %703 : vector<8x32xf32>
    %705 = math.tanh %692 : vector<8x32xf32>
    %706 = arith.negf %694 : vector<8x32xf32>
    %707 = math.exp %706 : vector<8x32xf32>
    %cst_309 = arith.constant 1.000000e+00 : f32
    %708 = vector.broadcast %cst_309 : f32 to vector<8x32xf32>
    %709 = arith.addf %708, %707 : vector<8x32xf32>
    %710 = arith.divf %708, %709 : vector<8x32xf32>
    %711 = arith.mulf %704, %677 : vector<8x32xf32>
    %712 = arith.mulf %699, %705 : vector<8x32xf32>
    %713 = arith.addf %711, %712 : vector<8x32xf32>
    %714 = math.tanh %713 : vector<8x32xf32>
    %715 = arith.mulf %710, %714 : vector<8x32xf32>
    %c8_i32_310 = arith.constant 8 : i32
    %716 = arith.muli %c7_i32_302, %c8_i32_310 : i32
    %717 = tpu.assume_multiple %716, 8 : i32
    %cst_311 = arith.constant dense<0.000000e+00> : vector<8x128xf32>
    %718 = tpu.matmul %715, %431, %cst_311 {dimension_numbers = #tpu.dot_dimension_numbers<[1], [0], [0], [1], [0, 0, 1, 1], [], []>} : vector<8x32xf32>, vector<32x128xf32>, vector<8x128xf32> -> vector<8x128xf32>
    %719 = vector.broadcast %432 : vector<1x128xf32> to vector<8x128xf32>
    %720 = arith.addf %718, %719 : vector<8x128xf32>
    %721 = arith.index_cast %717 : i32 to index
    %c0_312 = arith.constant 0 : index
    %722 = vector.load %arg9[%721, %c0_312] : memref<64x128xf32, #tpu.memory_space<vmem>>, vector<8x128xf32>
    tpu.vector_store %arg9[%721, %c0_312], %720 {strides = array<i32>} : memref<64x128xf32, #tpu.memory_space<vmem>>, vector<8x128xf32>,
    %c8_i32_313 = arith.constant 8 : i32
    return
  }
}

</mosaic_0001>

<bundles_post_ra>
// kernel: lstm_network_forward.1
= control target key start
LH: loop header
LB: loop body
LE: loop exit
PB: predicated region body
PF: predicated region fallthrough
CT: control target
= control target key end

     0   :  { %vm73_vm0 = vcmask 1043456   ;;  %vm48_vm1 = vcmask 31744   ;;  %v8436_v11 = vmov 0.0   ;;  %vm8437_vm2 = vmmov 0   ;;  %s9982_s1 = inlined_call_operand.vmem [shape: f32[4,4,32], index: 1, kind: input, shape index: {}]   ;;  %s9983_s0 = inlined_call_operand.vmem [shape: f32[64,4], index: 0, kind: input, shape index: {}]   ;;  %s9984_s2 = inlined_call_operand.vmem [shape: f32[4,32,32], index: 2, kind: input, shape index: {}]   ;;  %s9985_s3 = inlined_call_operand.vmem [shape: f32[4,1,32], index: 3, kind: input, shape index: {}]   ;;  %s9986_s4 = inlined_call_operand.vmem [shape: f32[4,32,32], index: 4, kind: input, shape index: {}]   ;;  %s9987_s5 = inlined_call_operand.vmem [shape: f32[4,32,32], index: 5, kind: input, shape index: {}]   ;;  %s9988_s7 = inlined_call_operand.vmem [shape: f32[32,128], index: 7, kind: input, shape index: {}]   ;;  %s9989_s6 = inlined_call_operand.vmem [shape: f32[4,1,32], index: 6, kind: input, shape index: {}]   ;;  %s9990_s8 = inlined_call_operand.vmem [shape: f32[1,128], index: 8, kind: input, shape index: {}]   ;;  %s9991_s9 = inlined_call_operand.vmem [shape: f32[64,128], index: 9, kind: output, shape index: {}]  }
   0x1   :  { %v40_v0 = vld [vmem:[%s9982_s1] sm:$0xf]  ;;  %v6630_v1 = vld [vmem:[%s9982_s1 + $0x4] sm:$0xf]  ;;  %v33_v3 = vld [vmem:[%s9983_s0 + $0x8] sm:$0xff]  ;;  %vm182_vm3 = vcmask 261120  }
   0x2   :  { %v32_v2 = vld [vmem:[%s9983_s0] sm:$0xff]  ;;  %7249 = vmatprep.subr.msk.mxu0 %vm73_vm0, %v40_v0  ;;  %7263 = vmatprep.subr.msk.mxu1 %vm73_vm0, %v6630_v1  ;;  %v6642_v4 = vld [vmem:[%s9982_s1 + $0x8] sm:$0xf]  ;;  %v6654_v5 = vld [vmem:[%s9982_s1 + $0xc] sm:$0xf] }
   0x3   :  { %7250 = vmatpush3.msk.msra.mxu0 %vm73_vm0, %v40_v0  ;;  %7251 = vmatprep.mubr.msk.f32.mxu0 %vm48_vm1, %v32_v2  ;;  %v34_v6 = vld [vmem:[%s9983_s0 + $0x10] sm:$0xff]  ;;  %v35_v7 = vld [vmem:[%s9983_s0 + $0x18] sm:$0xff]  ;;  %v36_v8 = vld [vmem:[%s9983_s0 + $0x20] sm:$0xff] }
   0x4   :  { %7264 = vmatpush3.msk.msra.mxu1 %vm73_vm0, %v6630_v1  ;;  %7265 = vmatprep.mubr.msk.f32.mxu1 %vm48_vm1, %v32_v2  ;;  %v37_v9 = vld [vmem:[%s9983_s0 + $0x28] sm:$0xff]  ;;  %v38_v10 = vld [vmem:[%s9983_s0 + $0x30] sm:$0xff]  ;;  %v39_v12 = vld [vmem:[%s9983_s0 + $0x38] sm:$0xff] }
   0x5   :  { %7252 = vmatmul.mubr.msk.f32.vlgmr.msra.gmra.mxu0 %vm48_vm1, %v33_v3  ;;  %7266 = vmatmul.mubr.msk.f32.vlgmr.msra.gmra.mxu1 %vm48_vm1, %v33_v3  ;;  %v8555_v13 = vld [vmem:[%s9984_s2 + $0x18] sm:$0xff]  ;;  %v8571_v15 = vld [vmem:[%s9984_s2 + $0x10] sm:$0xff]  ;;  %v8589_v17 = vld [vmem:[%s9984_s2 + $0x8] sm:$0xff] }
   0x6   :  { %7277 = vmatprep.subr.msk.mxu0 %vm73_vm0, %v6642_v4  ;;  %7291 = vmatprep.subr.msk.mxu1 %vm73_vm0, %v6654_v5  ;;  %v8560_v14 = vld [vmem:[%s9984_s2 + $0x38] sm:$0xff]  ;;  %v8576_v16 = vld [vmem:[%s9984_s2 + $0x30] sm:$0xff]  ;;  %v8594_v18 = vld [vmem:[%s9984_s2 + $0x28] sm:$0xff] }
   0x7   :  { %7278 = vmatpush3.msk.msra.mxu0 %vm73_vm0, %v6642_v4  ;;  %7292 = vmatpush3.msk.msra.mxu1 %vm73_vm0, %v6654_v5  ;;  %v8607_v19 = vld [vmem:[%s9984_s2] sm:$0xff]  ;;  %v8627_v21 = vld [vmem:[%s9984_s2 + $0x58] sm:$0xff]  ;;  %v8641_v23 = vld [vmem:[%s9984_s2 + $0x50] sm:$0xff] }
   0x8   :  { %7254 = vmatprep.mubr.msk.f32.mxu0 %vm48_vm1, %v34_v6  ;;  %7268 = vmatprep.mubr.msk.f32.mxu1 %vm48_vm1, %v34_v6  ;;  %v8612_v20 = vld [vmem:[%s9984_s2 + $0x20] sm:$0xff]  ;;  %v8632_v22 = vld [vmem:[%s9984_s2 + $0x78] sm:$0xff]  ;;  %v8646_v24 = vld [vmem:[%s9984_s2 + $0x70] sm:$0xff] }
   0x9   :  { %7255 = vmatmul.mubr.msk.f32.gmra.mxu0 %vm48_vm1, %v35_v7  ;;  %7269 = vmatmul.mubr.msk.f32.gmra.mxu1 %vm48_vm1, %v35_v7  ;;  %v8655_v25 = vld [vmem:[%s9984_s2 + $0x48] sm:$0xff]  ;;  %v8669_v27 = vld [vmem:[%s9984_s2 + $0x40] sm:$0xff] }
   0xa   :  { %7257 = vmatprep.mubr.msk.f32.mxu0 %vm48_vm1, %v36_v8  ;;  %7271 = vmatprep.mubr.msk.f32.mxu1 %vm48_vm1, %v36_v8  ;;  %v8660_v26 = vld [vmem:[%s9984_s2 + $0x68] sm:$0xff]  ;;  %v8676_v28 = vld [vmem:[%s9984_s2 + $0x60] sm:$0xff] }
   0xb   :  { %7305 = vmatprep.subr.mxu0 %v8436_v11  ;;  %7316 = vmatprep.subr.mxu1 %v8436_v11  ;;  %v6620_v29 = vld [vmem:[%s9985_s3] ss:$0 sm:$0xff]  ;;  %v6632_v30 = vld [vmem:[%s9985_s3 + $0x1] ss:$0 sm:$0xff]  ;;  %v6644_v61 = vld [vmem:[%s9985_s3 + $0x2] ss:$0 sm:$0xff] }
   0xc   :  { %v6656_v62 = vld [vmem:[%s9985_s3 + $0x3] ss:$0 sm:$0xff] }
   0xd   :  { %7258 = vmatmul.mubr.msk.f32.gmra.mxu0 %vm48_vm1, %v37_v9  ;;  %7272 = vmatmul.mubr.msk.f32.gmra.mxu1 %vm48_vm1, %v37_v9 }
   0xe   :  { %7260 = vmatprep.mubr.msk.f32.mxu0 %vm48_vm1, %v38_v10  ;;  %7274 = vmatprep.mubr.msk.f32.mxu1 %vm48_vm1, %v38_v10 }
  0x11   :  { %7261 = vmatmul.mubr.msk.f32.gmra.mxu0 %vm48_vm1, %v39_v12  ;;  %7275 = vmatmul.mubr.msk.f32.gmra.mxu1 %vm48_vm1, %v39_v12 }
  0x12   :  { %7279 = vmatprep.mubr.msk.f32.mxu0 %vm48_vm1, %v32_v2  ;;  %7293 = vmatprep.mubr.msk.f32.mxu1 %vm48_vm1, %v32_v2 }
  0x15   :  { %7280 = vmatmul.mubr.msk.f32.vlgmr.msra.gmra.mxu0 %vm48_vm1, %v33_v3  ;;  %7294 = vmatmul.mubr.msk.f32.vlgmr.msra.gmra.mxu1 %vm48_vm1, %v33_v3 }
  0x16   :  { %7306 = vmatpush3.msra.mxu0 %v8555_v13  ;;  %7317 = vmatpush3.msra.mxu1 %v8560_v14 }
  0x17   :  { %7282 = vmatprep.mubr.msk.f32.mxu0 %vm48_vm1, %v34_v6  ;;  %7296 = vmatprep.mubr.msk.f32.mxu1 %vm48_vm1, %v34_v6 }
  0x18   :  { %7307 = vmatprep.subr.mxu0 %v8436_v11  ;;  %7318 = vmatprep.subr.mxu1 %v8436_v11 }
  0x19   :  { %7283 = vmatmul.mubr.msk.f32.gmra.mxu0 %vm48_vm1, %v35_v7  ;;  %7297 = vmatmul.mubr.msk.f32.gmra.mxu1 %vm48_vm1, %v35_v7 }
  0x1a   :  { %7308 = vmatpush3.msra.mxu0 %v8571_v15  ;;  %7319 = vmatpush3.msra.mxu1 %v8576_v16 }
  0x1b   :  { %7285 = vmatprep.mubr.msk.f32.mxu0 %vm48_vm1, %v36_v8  ;;  %7299 = vmatprep.mubr.msk.f32.mxu1 %vm48_vm1, %v36_v8 }
  0x1c   :  { %7309 = vmatprep.subr.mxu0 %v8436_v11  ;;  %7320 = vmatprep.subr.mxu1 %v8436_v11 }
  0x1d   :  { %7286 = vmatmul.mubr.msk.f32.gmra.mxu0 %vm48_vm1, %v37_v9  ;;  %7300 = vmatmul.mubr.msk.f32.gmra.mxu1 %vm48_vm1, %v37_v9 }
  0x1e   :  { %7310 = vmatpush3.msra.mxu0 %v8589_v17  ;;  %7321 = vmatpush3.msra.mxu1 %v8594_v18 }
  0x1f   :  { %7288 = vmatprep.mubr.msk.f32.mxu0 %vm48_vm1, %v38_v10  ;;  %7302 = vmatprep.mubr.msk.f32.mxu1 %vm48_vm1, %v38_v10 }
  0x20   :  { %7311 = vmatprep.subr.mxu0 %v8436_v11  ;;  %7322 = vmatprep.subr.mxu1 %v8436_v11 }
  0x21   :  { %7289 = vmatmul.mubr.msk.f32.gmra.mxu0 %vm48_vm1, %v39_v12  ;;  %7303 = vmatmul.mubr.msk.f32.gmra.mxu1 %vm48_vm1, %v39_v12 }
  0x22   :  { %7312 = vmatpush3.msra.mxu0 %v8607_v19  ;;  %7323 = vmatpush3.msra.mxu1 %v8612_v20 }
  0x23   :  { %7313 = vmatprep.mubr.msk.f32.mxu0 %vm8437_vm2, %v8436_v11  ;;  %7324 = vmatprep.mubr.msk.f32.mxu1 %vm8437_vm2, %v8436_v11 }
  0x24   :  { %7327 = vmatprep.subr.mxu0 %v8436_v11  ;;  %7338 = vmatprep.subr.mxu1 %v8436_v11 }
  0x25   :  { %7314 = vmatmul.mubr.f32.vlgmr.msra.gmra.mxu0 %v8436_v11  ;;  %7325 = vmatmul.mubr.f32.vlgmr.msra.gmra.mxu1 %v8436_v11 }
  0x26   :  { %7328 = vmatpush3.msra.mxu0 %v8627_v21  ;;  %7339 = vmatpush3.msra.mxu1 %v8632_v22 }
  0x27   :  { %7329 = vmatprep.subr.mxu0 %v8436_v11  ;;  %7340 = vmatprep.subr.mxu1 %v8436_v11 }
  0x28   :  { %7330 = vmatpush3.msra.mxu0 %v8641_v23  ;;  %7341 = vmatpush3.msra.mxu1 %v8646_v24 }
  0x29   :  { %7331 = vmatprep.subr.mxu0 %v8436_v11  ;;  %7342 = vmatprep.subr.mxu1 %v8436_v11 }
  0x2a   :  { %7332 = vmatpush3.msra.mxu0 %v8655_v25  ;;  %7343 = vmatpush3.msra.mxu1 %v8660_v26 }
  0x2b   :  { %7333 = vmatprep.subr.mxu0 %v8436_v11  ;;  %7344 = vmatprep.subr.mxu1 %v8436_v11 }
  0x2c   :  { %7334 = vmatpush3.msra.mxu0 %v8669_v27  ;;  %7335 = vmatprep.mubr.msk.f32.mxu0 %vm8437_vm2, %v8436_v11 }
  0x2d   :  { %7345 = vmatpush3.msra.mxu1 %v8676_v28  ;;  %7346 = vmatprep.mubr.msk.f32.mxu1 %vm8437_vm2, %v8436_v11 }
  0x2e   :  { %7336 = vmatmul.mubr.f32.vlgmr.msra.gmra.mxu0 %v8436_v11  ;;  %7347 = vmatmul.mubr.f32.vlgmr.msra.gmra.mxu1 %v8436_v11 }
  0x2f   :  { %7349 = vmatprep.subr.mxu0 %v8436_v11  ;;  %7360 = vmatprep.subr.mxu1 %v8436_v11 }
  0x30   :  { %7350 = vmatpush3.msra.mxu0 %v8555_v13  ;;  %7361 = vmatpush3.msra.mxu1 %v8560_v14 }
  0x31   :  { %7351 = vmatprep.subr.mxu0 %v8436_v11  ;;  %7362 = vmatprep.subr.mxu1 %v8436_v11 }
  0x32   :  { %7352 = vmatpush3.msra.mxu0 %v8571_v15  ;;  %7363 = vmatpush3.msra.mxu1 %v8576_v16 }
  0x33   :  { %7353 = vmatprep.subr.mxu0 %v8436_v11  ;;  %7364 = vmatprep.subr.mxu1 %v8436_v11 }
  0x34   :  { %7354 = vmatpush3.msra.mxu0 %v8589_v17  ;;  %7365 = vmatpush3.msra.mxu1 %v8594_v18 }
  0x35   :  { %7355 = vmatprep.subr.mxu0 %v8436_v11  ;;  %7366 = vmatprep.subr.mxu1 %v8436_v11 }
  0x36   :  { %7356 = vmatpush3.msra.mxu0 %v8607_v19  ;;  %7367 = vmatpush3.msra.mxu1 %v8612_v20 }
  0x37   :  { %7357 = vmatprep.mubr.msk.f32.mxu0 %vm8437_vm2, %v8436_v11  ;;  %7368 = vmatprep.mubr.msk.f32.mxu1 %vm8437_vm2, %v8436_v11 }
  0x38   :  { %7371 = vmatprep.subr.mxu0 %v8436_v11  ;;  %7382 = vmatprep.subr.mxu1 %v8436_v11 }
  0xc5   :  { %v7253_v31 = vpop.f32.mrf.mxu0  ;;  %v7267_v32 = vpop.f32.mrf.mxu1 }
  0xc6   :  { %v149_v33 = vadd.f32 %v7253_v31, %v6620_v29  ;;  %v276_v34 = vadd.f32 %v7267_v32, %v6632_v30 }
  0xc7   :  { %v143_v35 = vpop.f32.mrf.mxu0  ;;  %v270_v36 = vpop.f32.mrf.mxu1 }
  0xc8   :  { %184 = vst.msk [vmem:[#allocation2 + $0x8] sm:$0xff] %vm182_vm3, %v149_v33  ;;  %311 = vst.msk [vmem:[#allocation2 + $0x48] sm:$0xff] %vm182_vm3, %v276_v34  ;;  %v144_v37 = vadd.f32 %v6620_v29, %v143_v35  ;;  %v271_v38 = vadd.f32 %v6632_v30, %v270_v36 }
  0xc9   :  { %v7256_v39 = vpop.f32.mrf.mxu0  ;;  %v7270_v40 = vpop.f32.mrf.mxu1 }
  0xca   :  { %183 = vst.msk [vmem:[#allocation2] sm:$0xff] %vm182_vm3, %v144_v37  ;;  %310 = vst.msk [vmem:[#allocation2 + $0x40] sm:$0xff] %vm182_vm3, %v271_v38  ;;  %v159_v41 = vadd.f32 %v7256_v39, %v6620_v29  ;;  %v286_v42 = vadd.f32 %v7270_v40, %v6632_v30 }
  0xcb   :  { %v153_v43 = vpop.f32.mrf.mxu0  ;;  %v280_v44 = vpop.f32.mrf.mxu1 }
  0xcc   :  { %186 = vst.msk [vmem:[#allocation2 + $0x18] sm:$0xff] %vm182_vm3, %v159_v41  ;;  %313 = vst.msk [vmem:[#allocation2 + $0x58] sm:$0xff] %vm182_vm3, %v286_v42  ;;  %v154_v45 = vadd.f32 %v6620_v29, %v153_v43  ;;  %v281_v46 = vadd.f32 %v6632_v30, %v280_v44 }
  0xcd   :  { %v7259_v47 = vpop.f32.mrf.mxu0  ;;  %v7273_v48 = vpop.f32.mrf.mxu1 }
  0xce   :  { %185 = vst.msk [vmem:[#allocation2 + $0x10] sm:$0xff] %vm182_vm3, %v154_v45  ;;  %312 = vst.msk [vmem:[#allocation2 + $0x50] sm:$0xff] %vm182_vm3, %v281_v46  ;;  %v169_v49 = vadd.f32 %v7259_v47, %v6620_v29  ;;  %v296_v50 = vadd.f32 %v7273_v48, %v6632_v30 }
  0xcf   :  { %v163_v51 = vpop.f32.mrf.mxu0  ;;  %v290_v52 = vpop.f32.mrf.mxu1 }
  0xd0   :  { %188 = vst.msk [vmem:[#allocation2 + $0x28] sm:$0xff] %vm182_vm3, %v169_v49  ;;  %315 = vst.msk [vmem:[#allocation2 + $0x68] sm:$0xff] %vm182_vm3, %v296_v50  ;;  %v164_v53 = vadd.f32 %v6620_v29, %v163_v51  ;;  %v291_v54 = vadd.f32 %v6632_v30, %v290_v52 }
  0xd1   :  { %v7262_v55 = vpop.f32.mrf.mxu0  ;;  %v7276_v56 = vpop.f32.mrf.mxu1  ;;  %v591_v50 = vld [vmem:[#allocation2] sm:$0xff] }
  0xd2   :  { %187 = vst.msk [vmem:[#allocation2 + $0x20] sm:$0xff] %vm182_vm3, %v164_v53  ;;  %314 = vst.msk [vmem:[#allocation2 + $0x60] sm:$0xff] %vm182_vm3, %v291_v54  ;;  %v179_v57 = vadd.f32 %v7262_v55, %v6620_v29  ;;  %v306_v58 = vadd.f32 %v7276_v56, %v6632_v30  ;;  %v594_v52 = vld [vmem:[#allocation2 + $0x40] sm:$0xff] }
  0xd3   :  { %v173_v59 = vpop.f32.mrf.mxu0  ;;  %v300_v60 = vpop.f32.mrf.mxu1 }
  0xd4   :  { %190 = vst.msk [vmem:[#allocation2 + $0x38] sm:$0xff] %vm182_vm3, %v179_v57  ;;  %317 = vst.msk [vmem:[#allocation2 + $0x78] sm:$0xff] %vm182_vm3, %v306_v58  ;;  %v174_v63 = vadd.f32 %v6620_v29, %v173_v59  ;;  %v301_v0 = vadd.f32 %v6632_v30, %v300_v60 }
  0xd5   :  { %v7281_v1 = vpop.f32.mrf.mxu0  ;;  %v7295_v2 = vpop.f32.mrf.mxu1 }
  0xd6   :  { %189 = vst.msk [vmem:[#allocation2 + $0x30] sm:$0xff] %vm182_vm3, %v174_v63  ;;  %316 = vst.msk [vmem:[#allocation2 + $0x70] sm:$0xff] %vm182_vm3, %v301_v0  ;;  %v403_v3 = vadd.f32 %v7281_v1, %v6644_v61  ;;  %v530_v4 = vadd.f32 %v7295_v2, %v6656_v62 }
  0xd7   :  { %v397_v5 = vpop.f32.mrf.mxu0  ;;  %v524_v6 = vpop.f32.mrf.mxu1 }
  0xd8   :  { %438 = vst.msk [vmem:[#allocation2 + $0x88] sm:$0xff] %vm182_vm3, %v403_v3  ;;  %565 = vst.msk [vmem:[#allocation2 + $0xc8] sm:$0xff] %vm182_vm3, %v530_v4  ;;  %v398_v7 = vadd.f32 %v6644_v61, %v397_v5  ;;  %v525_v8 = vadd.f32 %v6656_v62, %v524_v6 }
  0xd9   :  { %v7284_v9 = vpop.f32.mrf.mxu0  ;;  %v7298_v10 = vpop.f32.mrf.mxu1 }
  0xda   :  { %437 = vst.msk [vmem:[#allocation2 + $0x80] sm:$0xff] %vm182_vm3, %v398_v7  ;;  %564 = vst.msk [vmem:[#allocation2 + $0xc0] sm:$0xff] %vm182_vm3, %v525_v8  ;;  %v413_v12 = vadd.f32 %v7284_v9, %v6644_v61  ;;  %v540_v29 = vadd.f32 %v7298_v10, %v6656_v62 }
  0xdb   :  { %v407_v30 = vpop.f32.mrf.mxu0  ;;  %v534_v31 = vpop.f32.mrf.mxu1 }
  0xdc   :  { %440 = vst.msk [vmem:[#allocation2 + $0x98] sm:$0xff] %vm182_vm3, %v413_v12  ;;  %567 = vst.msk [vmem:[#allocation2 + $0xd8] sm:$0xff] %vm182_vm3, %v540_v29  ;;  %v408_v32 = vadd.f32 %v6644_v61, %v407_v30  ;;  %v535_v33 = vadd.f32 %v6656_v62, %v534_v31 }
  0xdd   :  { %v7287_v34 = vpop.f32.mrf.mxu0  ;;  %v7301_v35 = vpop.f32.mrf.mxu1 }
  0xde   :  { %439 = vst.msk [vmem:[#allocation2 + $0x90] sm:$0xff] %vm182_vm3, %v408_v32  ;;  %566 = vst.msk [vmem:[#allocation2 + $0xd0] sm:$0xff] %vm182_vm3, %v535_v33  ;;  %v423_v36 = vadd.f32 %v7287_v34, %v6644_v61  ;;  %v550_v37 = vadd.f32 %v7301_v35, %v6656_v62 }
  0xdf   :  { %v417_v38 = vpop.f32.mrf.mxu0  ;;  %v544_v39 = vpop.f32.mrf.mxu1 }
  0xe0   :  { %442 = vst.msk [vmem:[#allocation2 + $0xa8] sm:$0xff] %vm182_vm3, %v423_v36  ;;  %569 = vst.msk [vmem:[#allocation2 + $0xe8] sm:$0xff] %vm182_vm3, %v550_v37  ;;  %v418_v40 = vadd.f32 %v6644_v61, %v417_v38  ;;  %v545_v41 = vadd.f32 %v6656_v62, %v544_v39  ;;  %v913_v37 = vld [vmem:[#allocation2 + $0x8] sm:$0xff] }
  0xe1   :  { %v7290_v42 = vpop.f32.mrf.mxu0  ;;  %v7304_v43 = vpop.f32.mrf.mxu1  ;;  %v597_v2 = vld [vmem:[#allocation2 + $0x80] sm:$0xff]  ;;  %v916_v39 = vld [vmem:[#allocation2 + $0x48] sm:$0xff] }
  0xe2   :  { %441 = vst.msk [vmem:[#allocation2 + $0xa0] sm:$0xff] %vm182_vm3, %v418_v40  ;;  %568 = vst.msk [vmem:[#allocation2 + $0xe0] sm:$0xff] %vm182_vm3, %v545_v41  ;;  %v433_v44 = vadd.f32 %v7290_v42, %v6644_v61  ;;  %v560_v45 = vadd.f32 %v7304_v43, %v6656_v62 }
  0xe3   :  { %v427_v46 = vpop.f32.mrf.mxu0  ;;  %v554_v47 = vpop.f32.mrf.mxu1 }
  0xe4   :  { %444 = vst.msk [vmem:[#allocation2 + $0xb8] sm:$0xff] %vm182_vm3, %v433_v44  ;;  %571 = vst.msk [vmem:[#allocation2 + $0xf8] sm:$0xff] %vm182_vm3, %v560_v45  ;;  %v428_v48 = vadd.f32 %v6644_v61, %v427_v46  ;;  %v555_v49 = vadd.f32 %v6656_v62, %v554_v47  ;;  %v600_v61 = vld [vmem:[#allocation2 + $0xc0] sm:$0xff] }
  0xe5   :  { %v670_v51 = vpop.f32.mrf.mxu0  ;;  %v741_v53 = vpop.f32.mrf.mxu1 }
  0xe6   :  { %443 = vst.msk [vmem:[#allocation2 + $0xb0] sm:$0xff] %vm182_vm3, %v428_v48  ;;  %570 = vst.msk [vmem:[#allocation2 + $0xf0] sm:$0xff] %vm182_vm3, %v555_v49  ;;  %v674_v54 = vadd.f32 %v670_v51, %v591_v50  ;;  %v745_v55 = vadd.f32 %v741_v53, %v594_v52  ;;  %v922_v49 = vld [vmem:[#allocation2 + $0xc8] sm:$0xff] }
  0xe7   :  { %v7315_v56 = vpop.f32.mrf.mxu0  ;;  %v7326_v57 = vpop.f32.mrf.mxu1  ;;  %v919_v53 = vld [vmem:[#allocation2 + $0x88] sm:$0xff] }
  0xe8   :  { %v6678_v58 = vmul.f32 -1.442695, %v674_v54  ;;  %v6679_v59 = vmul.f32 -1.442695, %v745_v55 }
  0xea   :  { %8143 = vpow2.f32 %v6678_v58 }
  0xeb   :  { %8145 = vpow2.f32 %v6679_v59 }
  0xee   :  { %v812_v60 = vpop.f32.mrf.mxu0  ;;  %v883_v63 = vpop.f32.mrf.mxu1 }
  0xef   :  { %v887_v62 = vadd.f32 %v883_v63, %v600_v61  ;;  %v816_v4 = vadd.f32 %v812_v60, %v597_v2 }
  0xf0   :  { %v7337_v0 = vpop.f32.mrf.mxu0  ;;  %v7348_v1 = vpop.f32.mrf.mxu1 }
  0xf1   :  { %v6680_v3 = vmul.f32 -1.442695, %v887_v62 }
  0xf3   :  { %8147 = vpow2.f32 %v6680_v3 }
  0xf4   :  { %8149 = vtanh.f32 %v816_v4 }
  0xf7   :  { %v8144_v5 = vpop.eup %8143 }
  0xf8   :  { %v8146_v6 = vpop.eup %8145  ;;  %v891_v7 = vadd.f32 1.0, %v8144_v5 }
  0xf9   :  { %v897_v8 = vadd.f32 1.0, %v8146_v6 }
  0xfa   :  { %8151 = vrcp.f32 %v891_v7  ;;  %v1235_v7 = vld [vmem:[#allocation2 + $0x10] sm:$0xff] }
  0xfb   :  { %8153 = vrcp.f32 %v897_v8 }
 0x100   :  { %v8148_v9 = vpop.eup %8147 }
 0x101   :  { %v8150_v10 = vpop.eup %8149  ;;  %v904_v31 = vadd.f32 1.0, %v8148_v9  ;;  %v1238_v9 = vld [vmem:[#allocation2 + $0x50] sm:$0xff] }
 0x103   :  { %8155 = vrcp.f32 %v904_v31 }
 0x107   :  { %v8152_v12 = vpop.eup %8151 }
 0x108   :  { %v8154_v29 = vpop.eup %8153  ;;  %v908_v30 = vmul.f32 %v8152_v12, %v8150_v10 }
 0x109   :  { %v907_v32 = vmul.f32 0.0, %v8154_v29 }
 0x10b   :  { %v8754_v33 = vadd.f32 %v908_v30, %v907_v32 }
 0x10d   :  { %8157 = vtanh.f32 %v8754_v33 }
 0x110   :  { %v8156_v34 = vpop.eup %8155 }
 0x11a   :  { %v8158_v35 = vpop.eup %8157 }
 0x11b   :  { %v911_v36 = vmul.f32 %v8158_v35, %v8156_v34 }
 0x11d   :  { %7358 = vmatmul.mubr.msk.f32.vlgmr.msra.gmra.mxu0 %vm182_vm3, %v911_v36  ;;  %7369 = vmatmul.mubr.msk.f32.vlgmr.msra.gmra.mxu1 %vm182_vm3, %v911_v36 }
 0x11e   :  { %7372 = vmatpush3.msra.mxu0 %v8627_v21  ;;  %7383 = vmatpush3.msra.mxu1 %v8632_v22 }
 0x11f   :  { %7373 = vmatprep.subr.mxu0 %v8436_v11  ;;  %7384 = vmatprep.subr.mxu1 %v8436_v11 }
 0x120   :  { %7374 = vmatpush3.msra.mxu0 %v8641_v23  ;;  %7385 = vmatpush3.msra.mxu1 %v8646_v24 }
 0x121   :  { %7375 = vmatprep.subr.mxu0 %v8436_v11  ;;  %7386 = vmatprep.subr.mxu1 %v8436_v11 }
 0x122   :  { %7376 = vmatpush3.msra.mxu0 %v8655_v25  ;;  %7387 = vmatpush3.msra.mxu1 %v8660_v26 }
 0x123   :  { %7377 = vmatprep.subr.mxu0 %v8436_v11  ;;  %7388 = vmatprep.subr.mxu1 %v8436_v11 }
 0x124   :  { %7378 = vmatpush3.msra.mxu0 %v8669_v27  ;;  %7379 = vmatprep.mubr.msk.f32.mxu0 %vm8437_vm2, %v8436_v11 }
 0x125   :  { %7389 = vmatpush3.msra.mxu1 %v8676_v28  ;;  %7390 = vmatprep.mubr.msk.f32.mxu1 %vm8437_vm2, %v8436_v11 }
 0x126   :  { %7380 = vmatmul.mubr.msk.f32.vlgmr.msra.gmra.mxu0 %vm182_vm3, %v911_v36  ;;  %7391 = vmatmul.mubr.msk.f32.vlgmr.msra.gmra.mxu1 %vm182_vm3, %v911_v36  ;;  %v1244_v36 = vld [vmem:[#allocation2 + $0xd0] sm:$0xff] }
 0x127   :  { %7393 = vmatprep.subr.mxu0 %v8436_v11  ;;  %7404 = vmatprep.subr.mxu1 %v8436_v11 }
 0x128   :  { %7394 = vmatpush3.msra.mxu0 %v8555_v13  ;;  %7405 = vmatpush3.msra.mxu1 %v8560_v14 }
 0x129   :  { %7395 = vmatprep.subr.mxu0 %v8436_v11  ;;  %7406 = vmatprep.subr.mxu1 %v8436_v11 }
 0x12a   :  { %7396 = vmatpush3.msra.mxu0 %v8571_v15  ;;  %7407 = vmatpush3.msra.mxu1 %v8576_v16 }
 0x12b   :  { %7397 = vmatprep.subr.mxu0 %v8436_v11  ;;  %7408 = vmatprep.subr.mxu1 %v8436_v11 }
 0x12c   :  { %7398 = vmatpush3.msra.mxu0 %v8589_v17  ;;  %7409 = vmatpush3.msra.mxu1 %v8594_v18 }
 0x12d   :  { %7399 = vmatprep.subr.mxu0 %v8436_v11  ;;  %7410 = vmatprep.subr.mxu1 %v8436_v11 }
 0x12e   :  { %7400 = vmatpush3.msra.mxu0 %v8607_v19  ;;  %7411 = vmatpush3.msra.mxu1 %v8612_v20 }
 0x12f   :  { %7401 = vmatprep.mubr.msk.f32.mxu0 %vm8437_vm2, %v8436_v11  ;;  %7412 = vmatprep.mubr.msk.f32.mxu1 %vm8437_vm2, %v8436_v11 }
 0x130   :  { %7415 = vmatprep.subr.mxu0 %v8436_v11  ;;  %7426 = vmatprep.subr.mxu1 %v8436_v11 }
 0x1dd   :  { %v992_v38 = vpop.f32.mrf.mxu0  ;;  %v1063_v40 = vpop.f32.mrf.mxu1 }
 0x1de   :  { %v996_v41 = vadd.f32 %v992_v38, %v913_v37  ;;  %v1067_v42 = vadd.f32 %v1063_v40, %v916_v39  ;;  %v1241_v40 = vld [vmem:[#allocation2 + $0x90] sm:$0xff] }
 0x1df   :  { %v7359_v43 = vpop.f32.mrf.mxu0  ;;  %v7370_v44 = vpop.f32.mrf.mxu1 }
 0x1e0   :  { %v6685_v45 = vmul.f32 -1.442695, %v996_v41  ;;  %v6686_v46 = vmul.f32 -1.442695, %v1067_v42 }
 0x1e2   :  { %8159 = vpow2.f32 %v6685_v45 }
 0x1e3   :  { %8161 = vpow2.f32 %v6686_v46 }
 0x1e6   :  { %v1134_v47 = vpop.f32.mrf.mxu0  ;;  %v1205_v48 = vpop.f32.mrf.mxu1 }
 0x1e7   :  { %v1209_v50 = vadd.f32 %v1205_v48, %v922_v49  ;;  %v1138_v55 = vadd.f32 %v1134_v47, %v919_v53 }
 0x1e8   :  { %v7381_v51 = vpop.f32.mrf.mxu0  ;;  %v7392_v52 = vpop.f32.mrf.mxu1 }
 0x1e9   :  { %v6687_v54 = vmul.f32 -1.442695, %v1209_v50 }
 0x1eb   :  { %8163 = vpow2.f32 %v6687_v54 }
 0x1ec   :  { %8165 = vtanh.f32 %v1138_v55 }
 0x1ef   :  { %v8160_v56 = vpop.eup %8159 }
 0x1f0   :  { %v8162_v57 = vpop.eup %8161  ;;  %v1213_v58 = vadd.f32 1.0, %v8160_v56 }
 0x1f1   :  { %v1219_v59 = vadd.f32 1.0, %v8162_v57 }
 0x1f2   :  { %8167 = vrcp.f32 %v1213_v58  ;;  %v1557_v58 = vld [vmem:[#allocation2 + $0x18] sm:$0xff] }
 0x1f3   :  { %8169 = vrcp.f32 %v1219_v59 }
 0x1f8   :  { %v8164_v60 = vpop.eup %8163 }
 0x1f9   :  { %v8166_v63 = vpop.eup %8165  ;;  %v1226_v1 = vadd.f32 1.0, %v8164_v60  ;;  %v1560_v60 = vld [vmem:[#allocation2 + $0x58] sm:$0xff] }
 0x1fb   :  { %8171 = vrcp.f32 %v1226_v1 }
 0x1ff   :  { %v8168_v61 = vpop.eup %8167 }
 0x200   :  { %v8170_v62 = vpop.eup %8169  ;;  %v1230_v0 = vmul.f32 %v8168_v61, %v8166_v63 }
 0x201   :  { %v1229_v2 = vmul.f32 %v8170_v62, %v8754_v33 }
 0x203   :  { %v8802_v3 = vadd.f32 %v1230_v0, %v1229_v2 }
 0x205   :  { %8173 = vtanh.f32 %v8802_v3 }
 0x208   :  { %v8172_v4 = vpop.eup %8171 }
 0x212   :  { %v8174_v5 = vpop.eup %8173 }
 0x213   :  { %v1233_v6 = vmul.f32 %v8174_v5, %v8172_v4 }
 0x215   :  { %7402 = vmatmul.mubr.msk.f32.vlgmr.msra.gmra.mxu0 %vm182_vm3, %v1233_v6  ;;  %7413 = vmatmul.mubr.msk.f32.vlgmr.msra.gmra.mxu1 %vm182_vm3, %v1233_v6 }
 0x216   :  { %7416 = vmatpush3.msra.mxu0 %v8627_v21  ;;  %7427 = vmatpush3.msra.mxu1 %v8632_v22 }
 0x217   :  { %7417 = vmatprep.subr.mxu0 %v8436_v11  ;;  %7428 = vmatprep.subr.mxu1 %v8436_v11 }
 0x218   :  { %7418 = vmatpush3.msra.mxu0 %v8641_v23  ;;  %7429 = vmatpush3.msra.mxu1 %v8646_v24 }
 0x219   :  { %7419 = vmatprep.subr.mxu0 %v8436_v11  ;;  %7430 = vmatprep.subr.mxu1 %v8436_v11 }
 0x21a   :  { %7420 = vmatpush3.msra.mxu0 %v8655_v25  ;;  %7431 = vmatpush3.msra.mxu1 %v8660_v26 }
 0x21b   :  { %7421 = vmatprep.subr.mxu0 %v8436_v11  ;;  %7432 = vmatprep.subr.mxu1 %v8436_v11 }
 0x21c   :  { %7422 = vmatpush3.msra.mxu0 %v8669_v27  ;;  %7423 = vmatprep.mubr.msk.f32.mxu0 %vm8437_vm2, %v8436_v11 }
 0x21d   :  { %7433 = vmatpush3.msra.mxu1 %v8676_v28  ;;  %7434 = vmatprep.mubr.msk.f32.mxu1 %vm8437_vm2, %v8436_v11 }
 0x21e   :  { %7424 = vmatmul.mubr.msk.f32.vlgmr.msra.gmra.mxu0 %vm182_vm3, %v1233_v6  ;;  %7435 = vmatmul.mubr.msk.f32.vlgmr.msra.gmra.mxu1 %vm182_vm3, %v1233_v6  ;;  %v1566_v6 = vld [vmem:[#allocation2 + $0xd8] sm:$0xff] }
 0x21f   :  { %7437 = vmatprep.subr.mxu0 %v8436_v11  ;;  %7448 = vmatprep.subr.mxu1 %v8436_v11 }
 0x220   :  { %7438 = vmatpush3.msra.mxu0 %v8555_v13  ;;  %7449 = vmatpush3.msra.mxu1 %v8560_v14 }
 0x221   :  { %7439 = vmatprep.subr.mxu0 %v8436_v11  ;;  %7450 = vmatprep.subr.mxu1 %v8436_v11 }
 0x222   :  { %7440 = vmatpush3.msra.mxu0 %v8571_v15  ;;  %7451 = vmatpush3.msra.mxu1 %v8576_v16 }
 0x223   :  { %7441 = vmatprep.subr.mxu0 %v8436_v11  ;;  %7452 = vmatprep.subr.mxu1 %v8436_v11 }
 0x224   :  { %7442 = vmatpush3.msra.mxu0 %v8589_v17  ;;  %7453 = vmatpush3.msra.mxu1 %v8594_v18 }
 0x225   :  { %7443 = vmatprep.subr.mxu0 %v8436_v11  ;;  %7454 = vmatprep.subr.mxu1 %v8436_v11 }
 0x226   :  { %7444 = vmatpush3.msra.mxu0 %v8607_v19  ;;  %7455 = vmatpush3.msra.mxu1 %v8612_v20 }
 0x227   :  { %7445 = vmatprep.mubr.msk.f32.mxu0 %vm8437_vm2, %v8436_v11  ;;  %7456 = vmatprep.mubr.msk.f32.mxu1 %vm8437_vm2, %v8436_v11 }
 0x228   :  { %7459 = vmatprep.subr.mxu0 %v8436_v11  ;;  %7470 = vmatprep.subr.mxu1 %v8436_v11 }
 0x2d5   :  { %v1314_v8 = vpop.f32.mrf.mxu0  ;;  %v1385_v10 = vpop.f32.mrf.mxu1 }
 0x2d6   :  { %v1318_v12 = vadd.f32 %v1314_v8, %v1235_v7  ;;  %v1389_v29 = vadd.f32 %v1385_v10, %v1238_v9  ;;  %v1563_v10 = vld [vmem:[#allocation2 + $0x98] sm:$0xff] }
 0x2d7   :  { %v7403_v30 = vpop.f32.mrf.mxu0  ;;  %v7414_v31 = vpop.f32.mrf.mxu1 }
 0x2d8   :  { %v6692_v32 = vmul.f32 -1.442695, %v1318_v12  ;;  %v6693_v33 = vmul.f32 -1.442695, %v1389_v29 }
 0x2da   :  { %8175 = vpow2.f32 %v6692_v32 }
 0x2db   :  { %8177 = vpow2.f32 %v6693_v33 }
 0x2de   :  { %v1456_v34 = vpop.f32.mrf.mxu0  ;;  %v1527_v35 = vpop.f32.mrf.mxu1 }
 0x2df   :  { %v1531_v37 = vadd.f32 %v1527_v35, %v1244_v36  ;;  %v1460_v42 = vadd.f32 %v1456_v34, %v1241_v40 }
 0x2e0   :  { %v7425_v38 = vpop.f32.mrf.mxu0  ;;  %v7436_v39 = vpop.f32.mrf.mxu1 }
 0x2e1   :  { %v6694_v41 = vmul.f32 -1.442695, %v1531_v37 }
 0x2e3   :  { %8179 = vpow2.f32 %v6694_v41 }
 0x2e4   :  { %8181 = vtanh.f32 %v1460_v42 }
 0x2e7   :  { %v8176_v43 = vpop.eup %8175 }
 0x2e8   :  { %v8178_v44 = vpop.eup %8177  ;;  %v1535_v45 = vadd.f32 1.0, %v8176_v43 }
 0x2e9   :  { %v1541_v46 = vadd.f32 1.0, %v8178_v44 }
 0x2ea   :  { %8183 = vrcp.f32 %v1535_v45  ;;  %v1885_v45 = vld [vmem:[#allocation2 + $0xa0] sm:$0xff] }
 0x2eb   :  { %8185 = vrcp.f32 %v1541_v46 }
 0x2f0   :  { %v8180_v47 = vpop.eup %8179 }
 0x2f1   :  { %v8182_v48 = vpop.eup %8181  ;;  %v1548_v52 = vadd.f32 1.0, %v8180_v47 }
 0x2f3   :  { %8187 = vrcp.f32 %v1548_v52 }
 0x2f7   :  { %v8184_v49 = vpop.eup %8183 }
 0x2f8   :  { %v8186_v50 = vpop.eup %8185  ;;  %v1552_v51 = vmul.f32 %v8184_v49, %v8182_v48 }
 0x2f9   :  { %v1551_v53 = vmul.f32 %v8186_v50, %v8802_v3 }
 0x2fb   :  { %v8850_v54 = vadd.f32 %v1552_v51, %v1551_v53 }
 0x2fd   :  { %8189 = vtanh.f32 %v8850_v54 }
 0x300   :  { %v8188_v55 = vpop.eup %8187 }
 0x30a   :  { %v8190_v56 = vpop.eup %8189 }
 0x30b   :  { %v1555_v57 = vmul.f32 %v8190_v56, %v8188_v55 }
 0x30d   :  { %7446 = vmatmul.mubr.msk.f32.vlgmr.msra.gmra.mxu0 %vm182_vm3, %v1555_v57  ;;  %7457 = vmatmul.mubr.msk.f32.vlgmr.msra.gmra.mxu1 %vm182_vm3, %v1555_v57 }
 0x30e   :  { %7460 = vmatpush3.msra.mxu0 %v8627_v21  ;;  %7471 = vmatpush3.msra.mxu1 %v8632_v22 }
 0x30f   :  { %7461 = vmatprep.subr.mxu0 %v8436_v11  ;;  %7472 = vmatprep.subr.mxu1 %v8436_v11 }
 0x310   :  { %7462 = vmatpush3.msra.mxu0 %v8641_v23  ;;  %7473 = vmatpush3.msra.mxu1 %v8646_v24 }
 0x311   :  { %7463 = vmatprep.subr.mxu0 %v8436_v11  ;;  %7474 = vmatprep.subr.mxu1 %v8436_v11 }
 0x312   :  { %7464 = vmatpush3.msra.mxu0 %v8655_v25  ;;  %7475 = vmatpush3.msra.mxu1 %v8660_v26 }
 0x313   :  { %7465 = vmatprep.subr.mxu0 %v8436_v11  ;;  %7476 = vmatprep.subr.mxu1 %v8436_v11 }
 0x314   :  { %7466 = vmatpush3.msra.mxu0 %v8669_v27  ;;  %7467 = vmatprep.mubr.msk.f32.mxu0 %vm8437_vm2, %v8436_v11 }
 0x315   :  { %7477 = vmatpush3.msra.mxu1 %v8676_v28  ;;  %7478 = vmatprep.mubr.msk.f32.mxu1 %vm8437_vm2, %v8436_v11 }
 0x316   :  { %7468 = vmatmul.mubr.msk.f32.vlgmr.msra.gmra.mxu0 %vm182_vm3, %v1555_v57  ;;  %7479 = vmatmul.mubr.msk.f32.vlgmr.msra.gmra.mxu1 %vm182_vm3, %v1555_v57 }
 0x317   :  { %7481 = vmatprep.subr.mxu0 %v8436_v11  ;;  %7492 = vmatprep.subr.mxu1 %v8436_v11 }
 0x318   :  { %7482 = vmatpush3.msra.mxu0 %v8555_v13  ;;  %7493 = vmatpush3.msra.mxu1 %v8560_v14 }
 0x319   :  { %7483 = vmatprep.subr.mxu0 %v8436_v11  ;;  %7494 = vmatprep.subr.mxu1 %v8436_v11 }
 0x31a   :  { %7484 = vmatpush3.msra.mxu0 %v8571_v15  ;;  %7495 = vmatpush3.msra.mxu1 %v8576_v16 }
 0x31b   :  { %7485 = vmatprep.subr.mxu0 %v8436_v11  ;;  %7496 = vmatprep.subr.mxu1 %v8436_v11 }
 0x31c   :  { %7486 = vmatpush3.msra.mxu0 %v8589_v17  ;;  %7497 = vmatpush3.msra.mxu1 %v8594_v18 }
 0x31d   :  { %7487 = vmatprep.subr.mxu0 %v8436_v11  ;;  %7498 = vmatprep.subr.mxu1 %v8436_v11 }
 0x31e   :  { %7488 = vmatpush3.msra.mxu0 %v8607_v19  ;;  %7499 = vmatpush3.msra.mxu1 %v8612_v20 }
 0x31f   :  { %7489 = vmatprep.mubr.msk.f32.mxu0 %vm8437_vm2, %v8436_v11  ;;  %7500 = vmatprep.mubr.msk.f32.mxu1 %vm8437_vm2, %v8436_v11 }
 0x320   :  { %7503 = vmatprep.subr.mxu0 %v8436_v11  ;;  %7514 = vmatprep.subr.mxu1 %v8436_v11 }
 0x3cd   :  { %v1636_v59 = vpop.f32.mrf.mxu0  ;;  %v1707_v63 = vpop.f32.mrf.mxu1 }
 0x3ce   :  { %v1640_v61 = vadd.f32 %v1636_v59, %v1557_v58  ;;  %v1711_v62 = vadd.f32 %v1707_v63, %v1560_v60 }
 0x3cf   :  { %v7447_v0 = vpop.f32.mrf.mxu0  ;;  %v7458_v1 = vpop.f32.mrf.mxu1 }
 0x3d0   :  { %v6699_v2 = vmul.f32 -1.442695, %v1640_v61  ;;  %v6700_v3 = vmul.f32 -1.442695, %v1711_v62  ;;  %v8954_v62 = vld [vmem:[%s9984_s2 + $0x58] sm:$0xff]  ;;  %v8968_v1 = vld [vmem:[%s9984_s2 + $0x50] sm:$0xff] }
 0x3d1   :  { %v8960_v0 = vld [vmem:[%s9984_s2 + $0x78] sm:$0xff] }
 0x3d2   :  { %8191 = vpow2.f32 %v6699_v2  ;;  %v8974_v2 = vld [vmem:[%s9984_s2 + $0x70] sm:$0xff] }
 0x3d3   :  { %8193 = vpow2.f32 %v6700_v3  ;;  %v8982_v3 = vld [vmem:[%s9984_s2 + $0x48] sm:$0xff] }
 0x3d6   :  { %v1778_v4 = vpop.f32.mrf.mxu0  ;;  %v1849_v5 = vpop.f32.mrf.mxu1 }
 0x3d7   :  { %v1853_v7 = vadd.f32 %v1849_v5, %v1566_v6  ;;  %v1782_v29 = vadd.f32 %v1778_v4, %v1563_v10  ;;  %v8988_v4 = vld [vmem:[%s9984_s2 + $0x68] sm:$0xff]  ;;  %v8996_v5 = vld [vmem:[%s9984_s2 + $0x40] sm:$0xff]  ;;  %v9036_v10 = vld [vmem:[%s9984_s2 + $0x30] sm:$0xff] }
 0x3d8   :  { %v7469_v8 = vpop.f32.mrf.mxu0  ;;  %v7480_v9 = vpop.f32.mrf.mxu1  ;;  %v9004_v6 = vld [vmem:[%s9984_s2 + $0x60] sm:$0xff] }
 0x3d9   :  { %v6701_v12 = vmul.f32 -1.442695, %v1853_v7  ;;  %v9016_v7 = vld [vmem:[%s9984_s2 + $0x18] sm:$0xff]  ;;  %v9030_v9 = vld [vmem:[%s9984_s2 + $0x10] sm:$0xff] }
 0x3da   :  { %v9022_v8 = vld [vmem:[%s9984_s2 + $0x38] sm:$0xff] }
 0x3db   :  { %8195 = vpow2.f32 %v6701_v12  ;;  %v9044_v12 = vld [vmem:[%s9984_s2 + $0x8] sm:$0xff] }
 0x3dc   :  { %8197 = vtanh.f32 %v1782_v29  ;;  %v9050_v29 = vld [vmem:[%s9984_s2 + $0x28] sm:$0xff] }
 0x3df   :  { %v8192_v30 = vpop.eup %8191 }
 0x3e0   :  { %v8194_v31 = vpop.eup %8193  ;;  %v1857_v32 = vadd.f32 1.0, %v8192_v30  ;;  %v9058_v30 = vld [vmem:[%s9984_s2] sm:$0xff] }
 0x3e1   :  { %v1863_v33 = vadd.f32 1.0, %v8194_v31  ;;  %v9064_v31 = vld [vmem:[%s9984_s2 + $0x20] sm:$0xff] }
 0x3e2   :  { %8199 = vrcp.f32 %v1857_v32  ;;  %v2201_v32 = vld [vmem:[#allocation2 + $0x28] sm:$0xff] }
 0x3e3   :  { %8201 = vrcp.f32 %v1863_v33 }
 0x3e8   :  { %v8196_v34 = vpop.eup %8195 }
 0x3e9   :  { %v8198_v35 = vpop.eup %8197  ;;  %v1870_v39 = vadd.f32 1.0, %v8196_v34  ;;  %v2204_v34 = vld [vmem:[#allocation2 + $0x68] sm:$0xff] }
 0x3eb   :  { %8203 = vrcp.f32 %v1870_v39 }
 0x3ef   :  { %v8200_v36 = vpop.eup %8199 }
 0x3f0   :  { %v8202_v37 = vpop.eup %8201  ;;  %v1874_v38 = vmul.f32 %v8200_v36, %v8198_v35 }
 0x3f1   :  { %v1873_v40 = vmul.f32 %v8202_v37, %v8850_v54 }
 0x3f3   :  { %v8898_v41 = vadd.f32 %v1874_v38, %v1873_v40 }
 0x3f5   :  { %8205 = vtanh.f32 %v8898_v41 }
 0x3f8   :  { %v8204_v42 = vpop.eup %8203 }
 0x402   :  { %v8206_v43 = vpop.eup %8205 }
 0x403   :  { %v1877_v44 = vmul.f32 %v8206_v43, %v8204_v42 }
 0x405   :  { %7490 = vmatmul.mubr.msk.f32.vlgmr.msra.gmra.mxu0 %vm182_vm3, %v1877_v44  ;;  %7501 = vmatmul.mubr.msk.f32.vlgmr.msra.gmra.mxu1 %vm182_vm3, %v1877_v44 }
 0x406   :  { %7504 = vmatpush3.msra.mxu0 %v8627_v21  ;;  %7515 = vmatpush3.msra.mxu1 %v8632_v22 }
 0x407   :  { %7505 = vmatprep.subr.mxu0 %v8436_v11  ;;  %7516 = vmatprep.subr.mxu1 %v8436_v11 }
 0x408   :  { %7506 = vmatpush3.msra.mxu0 %v8641_v23  ;;  %7517 = vmatpush3.msra.mxu1 %v8646_v24 }
 0x409   :  { %7507 = vmatprep.subr.mxu0 %v8436_v11  ;;  %7518 = vmatprep.subr.mxu1 %v8436_v11 }
 0x40a   :  { %7508 = vmatpush3.msra.mxu0 %v8655_v25  ;;  %7519 = vmatpush3.msra.mxu1 %v8660_v26  ;;  %v1888_v25 = vld [vmem:[#allocation2 + $0xe0] sm:$0xff] }
 0x40b   :  { %7509 = vmatprep.subr.mxu0 %v8436_v11  ;;  %7520 = vmatprep.subr.mxu1 %v8436_v11 }
 0x40c   :  { %7510 = vmatpush3.msra.mxu0 %v8669_v27  ;;  %7511 = vmatprep.mubr.msk.f32.mxu0 %vm8437_vm2, %v8436_v11 }
 0x40d   :  { %7521 = vmatpush3.msra.mxu1 %v8676_v28  ;;  %7522 = vmatprep.mubr.msk.f32.mxu1 %vm8437_vm2, %v8436_v11 }
 0x40e   :  { %7512 = vmatmul.mubr.msk.f32.vlgmr.msra.gmra.mxu0 %vm182_vm3, %v1877_v44  ;;  %7523 = vmatmul.mubr.msk.f32.vlgmr.msra.gmra.mxu1 %vm182_vm3, %v1877_v44  ;;  %v2210_v44 = vld [vmem:[#allocation2 + $0xe8] sm:$0xff] }
 0x40f   :  { %7525 = vmatprep.subr.mxu0 %v8436_v11  ;;  %7536 = vmatprep.subr.mxu1 %v8436_v11 }
 0x410   :  { %7526 = vmatpush3.msra.mxu0 %v8555_v13  ;;  %7537 = vmatpush3.msra.mxu1 %v8560_v14  ;;  %v1879_v13 = vld [vmem:[#allocation2 + $0x20] sm:$0xff] }
 0x411   :  { %7527 = vmatprep.subr.mxu0 %v8436_v11  ;;  %7538 = vmatprep.subr.mxu1 %v8436_v11 }
 0x412   :  { %7528 = vmatpush3.msra.mxu0 %v8571_v15  ;;  %7539 = vmatpush3.msra.mxu1 %v8576_v16  ;;  %v1882_v15 = vld [vmem:[#allocation2 + $0x60] sm:$0xff] }
 0x413   :  { %7529 = vmatprep.subr.mxu0 %v8436_v11  ;;  %7540 = vmatprep.subr.mxu1 %v8436_v11 }
 0x414   :  { %7530 = vmatpush3.msra.mxu0 %v8589_v17  ;;  %7541 = vmatpush3.msra.mxu1 %v8594_v18 }
 0x415   :  { %7531 = vmatprep.subr.mxu0 %v8436_v11  ;;  %7542 = vmatprep.subr.mxu1 %v8436_v11 }
 0x416   :  { %7532 = vmatpush3.msra.mxu0 %v8607_v19  ;;  %7543 = vmatpush3.msra.mxu1 %v8612_v20 }
 0x417   :  { %7533 = vmatprep.mubr.msk.f32.mxu0 %vm8437_vm2, %v8436_v11  ;;  %7544 = vmatprep.mubr.msk.f32.mxu1 %vm8437_vm2, %v8436_v11 }
 0x418   :  { %7547 = vmatprep.subr.mxu0 %v8436_v11  ;;  %7558 = vmatprep.subr.mxu1 %v8436_v11 }
 0x4c5   :  { %v1958_v14 = vpop.f32.mrf.mxu0  ;;  %v2029_v16 = vpop.f32.mrf.mxu1 }
 0x4c6   :  { %v1962_v17 = vadd.f32 %v1958_v14, %v1879_v13  ;;  %v2033_v18 = vadd.f32 %v2029_v16, %v1882_v15  ;;  %v2207_v16 = vld [vmem:[#allocation2 + $0xa8] sm:$0xff] }
 0x4c7   :  { %v7491_v21 = vpop.f32.mrf.mxu0  ;;  %v7502_v19 = vpop.f32.mrf.mxu1 }
 0x4c8   :  { %v6706_v22 = vmul.f32 -1.442695, %v1962_v17  ;;  %v6707_v20 = vmul.f32 -1.442695, %v2033_v18 }
 0x4ca   :  { %8207 = vpow2.f32 %v6706_v22 }
 0x4cb   :  { %8209 = vpow2.f32 %v6707_v20 }
 0x4ce   :  { %v2100_v23 = vpop.f32.mrf.mxu0  ;;  %v2171_v24 = vpop.f32.mrf.mxu1 }
 0x4cf   :  { %v2175_v26 = vadd.f32 %v2171_v24, %v1888_v25  ;;  %v2104_v47 = vadd.f32 %v2100_v23, %v1885_v45 }
 0x4d0   :  { %v7513_v27 = vpop.f32.mrf.mxu0  ;;  %v7524_v28 = vpop.f32.mrf.mxu1 }
 0x4d1   :  { %v6708_v46 = vmul.f32 -1.442695, %v2175_v26 }
 0x4d3   :  { %8211 = vpow2.f32 %v6708_v46 }
 0x4d4   :  { %8213 = vtanh.f32 %v2104_v47 }
 0x4d7   :  { %v8208_v48 = vpop.eup %8207 }
 0x4d8   :  { %v8210_v49 = vpop.eup %8209  ;;  %v2179_v50 = vadd.f32 1.0, %v8208_v48 }
 0x4d9   :  { %v2185_v51 = vadd.f32 1.0, %v8210_v49 }
 0x4da   :  { %8215 = vrcp.f32 %v2179_v50  ;;  %v2523_v50 = vld [vmem:[#allocation2 + $0x30] sm:$0xff] }
 0x4db   :  { %8217 = vrcp.f32 %v2185_v51 }
 0x4e0   :  { %v8212_v52 = vpop.eup %8211 }
 0x4e1   :  { %v8214_v53 = vpop.eup %8213  ;;  %v2192_v57 = vadd.f32 1.0, %v8212_v52  ;;  %v2526_v52 = vld [vmem:[#allocation2 + $0x70] sm:$0xff] }
 0x4e3   :  { %8219 = vrcp.f32 %v2192_v57 }
 0x4e7   :  { %v8216_v54 = vpop.eup %8215 }
 0x4e8   :  { %v8218_v55 = vpop.eup %8217  ;;  %v2196_v56 = vmul.f32 %v8216_v54, %v8214_v53 }
 0x4e9   :  { %v2195_v58 = vmul.f32 %v8218_v55, %v8898_v41 }
 0x4eb   :  { %v8946_v59 = vadd.f32 %v2196_v56, %v2195_v58 }
 0x4ed   :  { %8221 = vtanh.f32 %v8946_v59 }
 0x4f0   :  { %v8220_v60 = vpop.eup %8219 }
 0x4fa   :  { %v8222_v63 = vpop.eup %8221 }
 0x4fb   :  { %v2199_v61 = vmul.f32 %v8222_v63, %v8220_v60 }
 0x4fd   :  { %7534 = vmatmul.mubr.msk.f32.vlgmr.msra.gmra.mxu0 %vm182_vm3, %v2199_v61  ;;  %7545 = vmatmul.mubr.msk.f32.vlgmr.msra.gmra.mxu1 %vm182_vm3, %v2199_v61 }
 0x4fe   :  { %7548 = vmatpush3.msra.mxu0 %v8954_v62  ;;  %7559 = vmatpush3.msra.mxu1 %v8960_v0 }
 0x4ff   :  { %7549 = vmatprep.subr.mxu0 %v8436_v11  ;;  %7560 = vmatprep.subr.mxu1 %v8436_v11 }
 0x500   :  { %7550 = vmatpush3.msra.mxu0 %v8968_v1  ;;  %7561 = vmatpush3.msra.mxu1 %v8974_v2 }
 0x501   :  { %7551 = vmatprep.subr.mxu0 %v8436_v11  ;;  %7562 = vmatprep.subr.mxu1 %v8436_v11 }
 0x502   :  { %7552 = vmatpush3.msra.mxu0 %v8982_v3  ;;  %7563 = vmatpush3.msra.mxu1 %v8988_v4 }
 0x503   :  { %7553 = vmatprep.subr.mxu0 %v8436_v11  ;;  %7564 = vmatprep.subr.mxu1 %v8436_v11 }
 0x504   :  { %7554 = vmatpush3.msra.mxu0 %v8996_v5  ;;  %7555 = vmatprep.mubr.msk.f32.mxu0 %vm8437_vm2, %v8436_v11 }
 0x505   :  { %7565 = vmatpush3.msra.mxu1 %v9004_v6  ;;  %7566 = vmatprep.mubr.msk.f32.mxu1 %vm8437_vm2, %v8436_v11 }
 0x506   :  { %7556 = vmatmul.mubr.msk.f32.vlgmr.msra.gmra.mxu0 %vm182_vm3, %v2199_v61  ;;  %7567 = vmatmul.mubr.msk.f32.vlgmr.msra.gmra.mxu1 %vm182_vm3, %v2199_v61  ;;  %v2532_v61 = vld [vmem:[#allocation2 + $0xf0] sm:$0xff] }
 0x507   :  { %7569 = vmatprep.subr.mxu0 %v8436_v11  ;;  %7580 = vmatprep.subr.mxu1 %v8436_v11 }
 0x508   :  { %7570 = vmatpush3.msra.mxu0 %v9016_v7  ;;  %7581 = vmatpush3.msra.mxu1 %v9022_v8 }
 0x509   :  { %7571 = vmatprep.subr.mxu0 %v8436_v11  ;;  %7582 = vmatprep.subr.mxu1 %v8436_v11 }
 0x50a   :  { %7572 = vmatpush3.msra.mxu0 %v9030_v9  ;;  %7583 = vmatpush3.msra.mxu1 %v9036_v10 }
 0x50b   :  { %7573 = vmatprep.subr.mxu0 %v8436_v11  ;;  %7584 = vmatprep.subr.mxu1 %v8436_v11 }
 0x50c   :  { %7574 = vmatpush3.msra.mxu0 %v9044_v12  ;;  %7585 = vmatpush3.msra.mxu1 %v9050_v29 }
 0x50d   :  { %7575 = vmatprep.subr.mxu0 %v8436_v11  ;;  %7586 = vmatprep.subr.mxu1 %v8436_v11 }
 0x50e   :  { %7576 = vmatpush3.msra.mxu0 %v9058_v30  ;;  %7587 = vmatpush3.msra.mxu1 %v9064_v31 }
 0x50f   :  { %7577 = vmatprep.mubr.msk.f32.mxu0 %vm8437_vm2, %v8436_v11  ;;  %7588 = vmatprep.mubr.msk.f32.mxu1 %vm8437_vm2, %v8436_v11 }
 0x510   :  { %7591 = vmatprep.subr.mxu0 %v8436_v11  ;;  %7602 = vmatprep.subr.mxu1 %v8436_v11 }
 0x5bd   :  { %v2280_v33 = vpop.f32.mrf.mxu0  ;;  %v2351_v35 = vpop.f32.mrf.mxu1 }
 0x5be   :  { %v2284_v36 = vadd.f32 %v2280_v33, %v2201_v32  ;;  %v2355_v37 = vadd.f32 %v2351_v35, %v2204_v34 }
 0x5bf   :  { %v7535_v38 = vpop.f32.mrf.mxu0  ;;  %v7546_v39 = vpop.f32.mrf.mxu1 }
 0x5c0   :  { %v6713_v40 = vmul.f32 -1.442695, %v2284_v36  ;;  %v6714_v41 = vmul.f32 -1.442695, %v2355_v37 }
 0x5c2   :  { %8223 = vpow2.f32 %v6713_v40 }
 0x5c3   :  { %8225 = vpow2.f32 %v6714_v41 }
 0x5c6   :  { %v2422_v42 = vpop.f32.mrf.mxu0  ;;  %v2493_v43 = vpop.f32.mrf.mxu1 }
 0x5c7   :  { %v2497_v13 = vadd.f32 %v2493_v43, %v2210_v44  ;;  %v2426_v18 = vadd.f32 %v2422_v42, %v2207_v16 }
 0x5c8   :  { %v7557_v14 = vpop.f32.mrf.mxu0  ;;  %v7568_v15 = vpop.f32.mrf.mxu1 }
 0x5c9   :  { %v6715_v17 = vmul.f32 -1.442695, %v2497_v13  ;;  %v2845_v13 = vld [vmem:[#allocation2 + $0x38] sm:$0xff] }
 0x5ca   :  { %v2848_v15 = vld [vmem:[#allocation2 + $0x78] sm:$0xff] }
 0x5cb   :  { %8227 = vpow2.f32 %v6715_v17 }
 0x5cc   :  { %8229 = vtanh.f32 %v2426_v18 }
 0x5cf   :  { %v8224_v21 = vpop.eup %8223 }
 0x5d0   :  { %v8226_v19 = vpop.eup %8225  ;;  %v2501_v22 = vadd.f32 1.0, %v8224_v21 }
 0x5d1   :  { %v2507_v20 = vadd.f32 1.0, %v8226_v19 }
 0x5d2   :  { %8231 = vrcp.f32 %v2501_v22 }
 0x5d3   :  { %8233 = vrcp.f32 %v2507_v20 }
 0x5d8   :  { %v8228_v23 = vpop.eup %8227 }
 0x5d9   :  { %v8230_v24 = vpop.eup %8229  ;;  %v2514_v28 = vadd.f32 1.0, %v8228_v23 }
 0x5db   :  { %8235 = vrcp.f32 %v2514_v28 }
 0x5df   :  { %v8232_v25 = vpop.eup %8231 }
 0x5e0   :  { %v8234_v26 = vpop.eup %8233  ;;  %v2518_v27 = vmul.f32 %v8232_v25, %v8230_v24  ;;  %v2854_v25 = vld [vmem:[#allocation2 + $0xf8] sm:$0xff] }
 0x5e1   :  { %v2517_v45 = vmul.f32 %v8234_v26, %v8946_v59 }
 0x5e3   :  { %v9074_v46 = vadd.f32 %v2518_v27, %v2517_v45  ;;  %v2851_v45 = vld [vmem:[#allocation2 + $0xb8] sm:$0xff] }
 0x5e5   :  { %8237 = vtanh.f32 %v9074_v46 }
 0x5e8   :  { %v8236_v47 = vpop.eup %8235 }
 0x5f2   :  { %v8238_v48 = vpop.eup %8237 }
 0x5f3   :  { %v2521_v49 = vmul.f32 %v8238_v48, %v8236_v47 }
 0x5f5   :  { %7578 = vmatmul.mubr.msk.f32.vlgmr.msra.gmra.mxu0 %vm182_vm3, %v2521_v49  ;;  %7589 = vmatmul.mubr.msk.f32.vlgmr.msra.gmra.mxu1 %vm182_vm3, %v2521_v49 }
 0x5f6   :  { %7592 = vmatpush3.msra.mxu0 %v8954_v62  ;;  %7603 = vmatpush3.msra.mxu1 %v8960_v0 }
 0x5f7   :  { %7593 = vmatprep.subr.mxu0 %v8436_v11  ;;  %7604 = vmatprep.subr.mxu1 %v8436_v11 }
 0x5f8   :  { %7594 = vmatpush3.msra.mxu0 %v8968_v1  ;;  %7605 = vmatpush3.msra.mxu1 %v8974_v2 }
 0x5f9   :  { %7595 = vmatprep.subr.mxu0 %v8436_v11  ;;  %7606 = vmatprep.subr.mxu1 %v8436_v11 }
 0x5fa   :  { %7596 = vmatpush3.msra.mxu0 %v8982_v3  ;;  %7607 = vmatpush3.msra.mxu1 %v8988_v4 }
 0x5fb   :  { %7597 = vmatprep.subr.mxu0 %v8436_v11  ;;  %7608 = vmatprep.subr.mxu1 %v8436_v11 }
 0x5fc   :  { %7598 = vmatpush3.msra.mxu0 %v8996_v5  ;;  %7599 = vmatprep.mubr.msk.f32.mxu0 %vm8437_vm2, %v8436_v11 }
 0x5fd   :  { %7609 = vmatpush3.msra.mxu1 %v9004_v6  ;;  %7610 = vmatprep.mubr.msk.f32.mxu1 %vm8437_vm2, %v8436_v11 }
 0x5fe   :  { %7600 = vmatmul.mubr.msk.f32.vlgmr.msra.gmra.mxu0 %vm182_vm3, %v2521_v49  ;;  %7611 = vmatmul.mubr.msk.f32.vlgmr.msra.gmra.mxu1 %vm182_vm3, %v2521_v49 }
 0x5ff   :  { %7613 = vmatprep.subr.mxu0 %v8436_v11  ;;  %7624 = vmatprep.subr.mxu1 %v8436_v11 }
 0x600   :  { %7614 = vmatpush3.msra.mxu0 %v9016_v7  ;;  %7625 = vmatpush3.msra.mxu1 %v9022_v8 }
 0x601   :  { %7615 = vmatprep.subr.mxu0 %v8436_v11  ;;  %7626 = vmatprep.subr.mxu1 %v8436_v11 }
 0x602   :  { %7616 = vmatpush3.msra.mxu0 %v9030_v9  ;;  %7627 = vmatpush3.msra.mxu1 %v9036_v10  ;;  %v2529_v10 = vld [vmem:[#allocation2 + $0xb0] sm:$0xff] }
 0x603   :  { %7617 = vmatprep.subr.mxu0 %v8436_v11  ;;  %7628 = vmatprep.subr.mxu1 %v8436_v11 }
 0x604   :  { %7618 = vmatpush3.msra.mxu0 %v9044_v12  ;;  %7629 = vmatpush3.msra.mxu1 %v9050_v29 }
 0x605   :  { %7619 = vmatprep.subr.mxu0 %v8436_v11  ;;  %7630 = vmatprep.subr.mxu1 %v8436_v11 }
 0x606   :  { %7620 = vmatpush3.msra.mxu0 %v9058_v30  ;;  %7631 = vmatpush3.msra.mxu1 %v9064_v31 }
 0x607   :  { %7621 = vmatprep.mubr.msk.f32.mxu0 %vm8437_vm2, %v8436_v11  ;;  %7632 = vmatprep.mubr.msk.f32.mxu1 %vm8437_vm2, %v8436_v11 }
 0x608   :  { %7635 = vmatprep.subr.mxu0 %v8436_v11  ;;  %7646 = vmatprep.subr.mxu1 %v8436_v11 }
 0x6b5   :  { %v2602_v51 = vpop.f32.mrf.mxu0  ;;  %v2673_v53 = vpop.f32.mrf.mxu1 }
 0x6b6   :  { %v2606_v54 = vadd.f32 %v2602_v51, %v2523_v50  ;;  %v2677_v55 = vadd.f32 %v2673_v53, %v2526_v52 }
 0x6b7   :  { %v7579_v56 = vpop.f32.mrf.mxu0  ;;  %v7590_v57 = vpop.f32.mrf.mxu1 }
 0x6b8   :  { %v6720_v58 = vmul.f32 -1.442695, %v2606_v54  ;;  %v6721_v59 = vmul.f32 -1.442695, %v2677_v55 }
 0x6ba   :  { %8239 = vpow2.f32 %v6720_v58 }
 0x6bb   :  { %8241 = vpow2.f32 %v6721_v59 }
 0x6be   :  { %v2744_v60 = vpop.f32.mrf.mxu0  ;;  %v2815_v63 = vpop.f32.mrf.mxu1 }
 0x6bf   :  { %v2819_v7 = vadd.f32 %v2815_v63, %v2532_v61  ;;  %v2748_v29 = vadd.f32 %v2744_v60, %v2529_v10  ;;  %v6748_v10 = vld [vmem:[%s9986_s4 + $0x70] sm:$0xff] }
 0x6c0   :  { %v7601_v8 = vpop.f32.mrf.mxu0  ;;  %v7612_v9 = vpop.f32.mrf.mxu1 }
 0x6c1   :  { %v6722_v12 = vmul.f32 -1.442695, %v2819_v7  ;;  %v6742_v7 = vld [vmem:[%s9986_s4 + $0x58] sm:$0xff]  ;;  %v6741_v9 = vld [vmem:[%s9986_s4 + $0x50] sm:$0xff] }
 0x6c2   :  { %v6749_v8 = vld [vmem:[%s9986_s4 + $0x78] sm:$0xff] }
 0x6c3   :  { %8243 = vpow2.f32 %v6722_v12  ;;  %v6740_v12 = vld [vmem:[%s9986_s4 + $0x48] sm:$0xff] }
 0x6c4   :  { %8245 = vtanh.f32 %v2748_v29  ;;  %v6747_v29 = vld [vmem:[%s9986_s4 + $0x68] sm:$0xff] }
 0x6c7   :  { %v8240_v30 = vpop.eup %8239 }
 0x6c8   :  { %v8242_v31 = vpop.eup %8241  ;;  %v2823_v32 = vadd.f32 1.0, %v8240_v30  ;;  %v6739_v30 = vld [vmem:[%s9986_s4 + $0x40] sm:$0xff] }
 0x6c9   :  { %v2829_v33 = vadd.f32 1.0, %v8242_v31  ;;  %v6746_v31 = vld [vmem:[%s9986_s4 + $0x60] sm:$0xff] }
 0x6ca   :  { %8247 = vrcp.f32 %v2823_v32  ;;  %v9225_v32 = vld [vmem:[%s9987_s5 + $0x18] sm:$0xff] }
 0x6cb   :  { %8249 = vrcp.f32 %v2829_v33  ;;  %v9230_v33 = vld [vmem:[%s9987_s5 + $0x38] sm:$0xff] }
 0x6d0   :  { %v8244_v34 = vpop.eup %8243 }
 0x6d1   :  { %v8246_v35 = vpop.eup %8245  ;;  %v2836_v39 = vadd.f32 1.0, %v8244_v34  ;;  %v9239_v34 = vld [vmem:[%s9987_s5 + $0x10] sm:$0xff] }
 0x6d3   :  { %8251 = vrcp.f32 %v2836_v39  ;;  %v9274_v39 = vld [vmem:[%s9987_s5 + $0x20] sm:$0xff] }
 0x6d7   :  { %v8248_v36 = vpop.eup %8247 }
 0x6d8   :  { %v8250_v37 = vpop.eup %8249  ;;  %v2840_v38 = vmul.f32 %v8248_v36, %v8246_v35  ;;  %v9244_v35 = vld [vmem:[%s9987_s5 + $0x30] sm:$0xff]  ;;  %v9253_v36 = vld [vmem:[%s9987_s5 + $0x8] sm:$0xff] }
 0x6d9   :  { %v2839_v40 = vmul.f32 %v8250_v37, %v9074_v46  ;;  %v9258_v37 = vld [vmem:[%s9987_s5 + $0x28] sm:$0xff] }
 0x6db   :  { %v9122_v41 = vadd.f32 %v2840_v38, %v2839_v40  ;;  %v9267_v38 = vld [vmem:[%s9987_s5] sm:$0xff]  ;;  %v9287_v40 = vld [vmem:[%s9987_s5 + $0x58] sm:$0xff] }
 0x6dd   :  { %8253 = vtanh.f32 %v9122_v41 }
 0x6e0   :  { %v8252_v42 = vpop.eup %8251 }
 0x6ea   :  { %v8254_v43 = vpop.eup %8253 }
 0x6eb   :  { %v2843_v44 = vmul.f32 %v8254_v43, %v8252_v42  ;;  %v9301_v42 = vld [vmem:[%s9987_s5 + $0x50] sm:$0xff] }
 0x6ec   :  { %v9306_v43 = vld [vmem:[%s9987_s5 + $0x70] sm:$0xff] }
 0x6ed   :  { %7622 = vmatmul.mubr.msk.f32.vlgmr.msra.gmra.mxu0 %vm182_vm3, %v2843_v44  ;;  %7633 = vmatmul.mubr.msk.f32.vlgmr.msra.gmra.mxu1 %vm182_vm3, %v2843_v44 }
 0x6ee   :  { %7636 = vmatpush3.msra.mxu0 %v8954_v62  ;;  %7647 = vmatpush3.msra.mxu1 %v8960_v0  ;;  %v3169_v62 = vld [vmem:[%s9986_s4 + $0x18] sm:$0xff] }
 0x6ef   :  { %7637 = vmatprep.subr.mxu0 %v8436_v11  ;;  %7648 = vmatprep.subr.mxu1 %v8436_v11  ;;  %v6735_v0 = vld [vmem:[%s9986_s4 + $0x38] sm:$0xff] }
 0x6f0   :  { %7638 = vmatpush3.msra.mxu0 %v8968_v1  ;;  %7649 = vmatpush3.msra.mxu1 %v8974_v2  ;;  %v3168_v1 = vld [vmem:[%s9986_s4 + $0x10] sm:$0xff] }
 0x6f1   :  { %7639 = vmatprep.subr.mxu0 %v8436_v11  ;;  %7650 = vmatprep.subr.mxu1 %v8436_v11  ;;  %v6734_v2 = vld [vmem:[%s9986_s4 + $0x30] sm:$0xff] }
 0x6f2   :  { %7640 = vmatpush3.msra.mxu0 %v8982_v3  ;;  %7651 = vmatpush3.msra.mxu1 %v8988_v4  ;;  %v3167_v3 = vld [vmem:[%s9986_s4 + $0x8] sm:$0xff] }
 0x6f3   :  { %7641 = vmatprep.subr.mxu0 %v8436_v11  ;;  %7652 = vmatprep.subr.mxu1 %v8436_v11  ;;  %v6733_v4 = vld [vmem:[%s9986_s4 + $0x28] sm:$0xff] }
 0x6f4   :  { %7642 = vmatpush3.msra.mxu0 %v8996_v5  ;;  %7643 = vmatprep.mubr.msk.f32.mxu0 %vm8437_vm2, %v8436_v11  ;;  %v3166_v5 = vld [vmem:[%s9986_s4] sm:$0xff] }
 0x6f5   :  { %7653 = vmatpush3.msra.mxu1 %v9004_v6  ;;  %7654 = vmatprep.mubr.msk.f32.mxu1 %vm8437_vm2, %v8436_v11  ;;  %v6732_v6 = vld [vmem:[%s9986_s4 + $0x20] sm:$0xff] }
 0x6f6   :  { %7644 = vmatmul.mubr.msk.f32.vlgmr.msra.gmra.mxu0 %vm182_vm3, %v2843_v44  ;;  %7655 = vmatmul.mubr.msk.f32.vlgmr.msra.gmra.mxu1 %vm182_vm3, %v2843_v44  ;;  %v9315_v44 = vld [vmem:[%s9987_s5 + $0x48] sm:$0xff] }
 0x6f7   :  { %7657 = vmatprep.subr.mxu0 %v8436_v11  ;;  %7668 = vmatprep.subr.mxu1 %v8436_v11 }
 0x6f8   :  { %7665 = vmatprep.mubr.msk.f32.mxu0 %vm8437_vm2, %v8436_v11  ;;  %7676 = vmatprep.mubr.msk.f32.mxu1 %vm8437_vm2, %v8436_v11 }
 0x6f9   :  { %7658 = vmatpush3.msra.mxu0 %v3169_v62  ;;  %7669 = vmatpush3.msra.mxu1 %v6735_v0  ;;  %v9320_v62 = vld [vmem:[%s9987_s5 + $0x68] sm:$0xff]  ;;  %v9329_v0 = vld [vmem:[%s9987_s5 + $0x40] sm:$0xff] }
 0x6fa   :  { %7659 = vmatprep.subr.mxu0 %v8436_v11  ;;  %7670 = vmatprep.subr.mxu1 %v8436_v11 }
 0x6fb   :  { %7660 = vmatpush3.msra.mxu0 %v3168_v1  ;;  %7671 = vmatpush3.msra.mxu1 %v6734_v2  ;;  %v9336_v1 = vld [vmem:[%s9987_s5 + $0x60] sm:$0xff]  ;;  %v9365_v2 = vld [vmem:[%s9988_s7 + $0x18] sm:$0xff] }
 0x6fc   :  { %7661 = vmatprep.subr.mxu0 %v8436_v11  ;;  %7672 = vmatprep.subr.mxu1 %v8436_v11 }
 0x6fd   :  { %7662 = vmatpush3.msra.mxu0 %v3167_v3  ;;  %7673 = vmatpush3.msra.mxu1 %v6733_v4  ;;  %v9370_v3 = vld [vmem:[%s9988_s7 + $0x10] sm:$0xff]  ;;  %v9377_v4 = vld [vmem:[%s9988_s7 + $0x8] sm:$0xff] }
 0x6fe   :  { %7663 = vmatprep.subr.mxu0 %v8436_v11  ;;  %7674 = vmatprep.subr.mxu1 %v8436_v11 }
 0x6ff   :  { %7664 = vmatpush3.msra.mxu0 %v3166_v5  ;;  %7675 = vmatpush3.msra.mxu1 %v6732_v6  ;;  %v9384_v5 = vld [vmem:[%s9988_s7] sm:$0xff] }
 0x700   :  { %7679 = vmatprep.subr.mxu0 %v8436_v11  ;;  %7690 = vmatprep.subr.mxu1 %v8436_v11 }
 0x7ad   :  { %v2924_v14 = vpop.f32.mrf.mxu0  ;;  %v2995_v16 = vpop.f32.mrf.mxu1 }
 0x7ae   :  { %v2928_v17 = vadd.f32 %v2924_v14, %v2845_v13  ;;  %v2999_v18 = vadd.f32 %v2995_v16, %v2848_v15 }
 0x7af   :  { %v7623_v21 = vpop.f32.mrf.mxu0  ;;  %v7634_v19 = vpop.f32.mrf.mxu1 }
 0x7b0   :  { %v6727_v22 = vmul.f32 -1.442695, %v2928_v17  ;;  %v6728_v20 = vmul.f32 -1.442695, %v2999_v18  ;;  %v6730_v19 = vld [vmem:[%s9989_s6] ss:$0 sm:$0xff] }
 0x7b2   :  { %8255 = vpow2.f32 %v6727_v22  ;;  %v6737_v22 = vld [vmem:[%s9989_s6 + $0x1] ss:$0 sm:$0xff] }
 0x7b3   :  { %8257 = vpow2.f32 %v6728_v20 }
 0x7b6   :  { %v3066_v23 = vpop.f32.mrf.mxu0  ;;  %v3137_v24 = vpop.f32.mrf.mxu1 }
 0x7b7   :  { %v3141_v26 = vadd.f32 %v3137_v24, %v2854_v25  ;;  %v3070_v47 = vadd.f32 %v3066_v23, %v2851_v45 }
 0x7b8   :  { %v7645_v27 = vpop.f32.mrf.mxu0  ;;  %v7656_v28 = vpop.f32.mrf.mxu1 }
 0x7b9   :  { %v6729_v46 = vmul.f32 -1.442695, %v3141_v26 }
 0x7bb   :  { %8259 = vpow2.f32 %v6729_v46 }
 0x7bc   :  { %8261 = vtanh.f32 %v3070_v47 }
 0x7bf   :  { %v8256_v48 = vpop.eup %8255 }
 0x7c0   :  { %v8258_v49 = vpop.eup %8257  ;;  %v3145_v50 = vadd.f32 1.0, %v8256_v48  ;;  %v6751_v48 = vld [vmem:[%s9989_s6 + $0x3] ss:$0 sm:$0xff] }
 0x7c1   :  { %v3151_v51 = vadd.f32 1.0, %v8258_v49 }
 0x7c2   :  { %8263 = vrcp.f32 %v3145_v50 }
 0x7c3   :  { %8265 = vrcp.f32 %v3151_v51 }
 0x7c8   :  { %v8260_v52 = vpop.eup %8259 }
 0x7c9   :  { %v8262_v53 = vpop.eup %8261  ;;  %v3158_v57 = vadd.f32 1.0, %v8260_v52  ;;  %v6744_v52 = vld [vmem:[%s9989_s6 + $0x2] ss:$0 sm:$0xff] }
 0x7cb   :  { %8267 = vrcp.f32 %v3158_v57 }
 0x7cf   :  { %v8264_v54 = vpop.eup %8263 }
 0x7d0   :  { %v8266_v55 = vpop.eup %8265  ;;  %v3162_v56 = vmul.f32 %v8264_v54, %v8262_v53 }
 0x7d1   :  { %v3161_v58 = vmul.f32 %v8266_v55, %v9122_v41  ;;  %v9292_v41 = vld [vmem:[%s9987_s5 + $0x78] sm:$0xff] }
 0x7d3   :  { %v3163_v59 = vadd.f32 %v3162_v56, %v3161_v58 }
 0x7d5   :  { %8269 = vtanh.f32 %v3163_v59 }
 0x7d8   :  { %v8268_v60 = vpop.eup %8267 }
 0x7e2   :  { %v8270_v63 = vpop.eup %8269 }
 0x7e3   :  { %v3165_v61 = vmul.f32 %v8270_v63, %v8268_v60 }
 0x7e5   :  { %7666 = vmatmul.mubr.msk.f32.vlgmr.msra.gmra.mxu0 %vm182_vm3, %v3165_v61  ;;  %7677 = vmatmul.mubr.msk.f32.vlgmr.msra.gmra.mxu1 %vm182_vm3, %v3165_v61 }
 0x7e6   :  { %7680 = vmatpush3.msra.mxu0 %v6742_v7  ;;  %7691 = vmatpush3.msra.mxu1 %v6749_v8 }
 0x7e7   :  { %7681 = vmatprep.subr.mxu0 %v8436_v11  ;;  %7692 = vmatprep.subr.mxu1 %v8436_v11 }
 0x7e8   :  { %7682 = vmatpush3.msra.mxu0 %v6741_v9  ;;  %7693 = vmatpush3.msra.mxu1 %v6748_v10 }
 0x7e9   :  { %7683 = vmatprep.subr.mxu0 %v8436_v11  ;;  %7694 = vmatprep.subr.mxu1 %v8436_v11 }
 0x7ea   :  { %7684 = vmatpush3.msra.mxu0 %v6740_v12  ;;  %7695 = vmatpush3.msra.mxu1 %v6747_v29 }
 0x7eb   :  { %7685 = vmatprep.subr.mxu0 %v8436_v11  ;;  %7696 = vmatprep.subr.mxu1 %v8436_v11 }
 0x7ec   :  { %7686 = vmatpush3.msra.mxu0 %v6739_v30  ;;  %7687 = vmatprep.mubr.msk.f32.mxu0 %vm8437_vm2, %v8436_v11 }
 0x7ed   :  { %7697 = vmatpush3.msra.mxu1 %v6746_v31  ;;  %7698 = vmatprep.mubr.msk.f32.mxu1 %vm8437_vm2, %v8436_v11 }
 0x7ee   :  { %7688 = vmatmul.mubr.msk.f32.vlgmr.msra.gmra.mxu0 %vm182_vm3, %v3165_v61  ;;  %7699 = vmatmul.mubr.msk.f32.vlgmr.msra.gmra.mxu1 %vm182_vm3, %v3165_v61 }
 0x7ef   :  { %7701 = vmatprep.subr.mxu0 %v8436_v11  ;;  %7712 = vmatprep.subr.mxu1 %v8436_v11 }
 0x7f0   :  { %7702 = vmatpush3.msra.mxu0 %v9225_v32  ;;  %7713 = vmatpush3.msra.mxu1 %v9230_v33 }
 0x7f1   :  { %7703 = vmatprep.subr.mxu0 %v8436_v11  ;;  %7714 = vmatprep.subr.mxu1 %v8436_v11 }
 0x7f2   :  { %7704 = vmatpush3.msra.mxu0 %v9239_v34  ;;  %7715 = vmatpush3.msra.mxu1 %v9244_v35 }
 0x7f3   :  { %7705 = vmatprep.subr.mxu0 %v8436_v11  ;;  %7716 = vmatprep.subr.mxu1 %v8436_v11 }
 0x7f4   :  { %7706 = vmatpush3.msra.mxu0 %v9253_v36  ;;  %7717 = vmatpush3.msra.mxu1 %v9258_v37 }
 0x7f5   :  { %7707 = vmatprep.subr.mxu0 %v8436_v11  ;;  %7718 = vmatprep.subr.mxu1 %v8436_v11 }
 0x7f6   :  { %7708 = vmatpush3.msra.mxu0 %v9267_v38  ;;  %7709 = vmatprep.mubr.msk.f32.mxu0 %vm8437_vm2, %v8436_v11 }
 0x7f7   :  { %7719 = vmatpush3.msra.mxu1 %v9274_v39  ;;  %7720 = vmatprep.mubr.msk.f32.mxu1 %vm8437_vm2, %v8436_v11 }
 0x7f8   :  { %7710 = vmatmul.mubr.f32.vlgmr.msra.gmra.mxu0 %v8436_v11  ;;  %7721 = vmatmul.mubr.f32.vlgmr.msra.gmra.mxu1 %v8436_v11 }
 0x7f9   :  { %7723 = vmatprep.subr.mxu0 %v8436_v11  ;;  %7734 = vmatprep.subr.mxu1 %v8436_v11 }
 0x7fa   :  { %7724 = vmatpush3.msra.mxu0 %v9287_v40  ;;  %7735 = vmatpush3.msra.mxu1 %v9292_v41 }
 0x7fb   :  { %7725 = vmatprep.subr.mxu0 %v8436_v11  ;;  %7736 = vmatprep.subr.mxu1 %v8436_v11 }
 0x7fc   :  { %7726 = vmatpush3.msra.mxu0 %v9301_v42  ;;  %7737 = vmatpush3.msra.mxu1 %v9306_v43 }
 0x7fd   :  { %7727 = vmatprep.subr.mxu0 %v8436_v11  ;;  %7738 = vmatprep.subr.mxu1 %v8436_v11 }
 0x7fe   :  { %7728 = vmatpush3.msra.mxu0 %v9315_v44  ;;  %7739 = vmatpush3.msra.mxu1 %v9320_v62 }
 0x7ff   :  { %7729 = vmatprep.subr.mxu0 %v8436_v11  ;;  %7740 = vmatprep.subr.mxu1 %v8436_v11 }
 0x800   :  { %7730 = vmatpush3.msra.mxu0 %v9329_v0  ;;  %7731 = vmatprep.mubr.msk.f32.mxu0 %vm8437_vm2, %v8436_v11 }
 0x801   :  { %7741 = vmatpush3.msra.mxu1 %v9336_v1  ;;  %7742 = vmatprep.mubr.msk.f32.mxu1 %vm8437_vm2, %v8436_v11 }
 0x802   :  { %7732 = vmatmul.mubr.f32.vlgmr.msra.gmra.mxu0 %v8436_v11  ;;  %7743 = vmatmul.mubr.f32.vlgmr.msra.gmra.mxu1 %v8436_v11 }
 0x803   :  { %7745 = vmatprep.subr.mxu0 %v8436_v11  ;;  %7756 = vmatprep.subr.mxu1 %v8436_v11 }
 0x804   :  { %7757 = vmatpush3.msra.mxu1 %v9225_v32  ;;  %7753 = vmatprep.mubr.msk.f32.mxu0 %vm8437_vm2, %v8436_v11 }
 0x805   :  { %7758 = vmatprep.subr.mxu1 %v8436_v11  ;;  %7764 = vmatprep.mubr.msk.f32.mxu1 %vm8437_vm2, %v8436_v11 }
 0x806   :  { %7759 = vmatpush3.msra.mxu1 %v9239_v34  ;;  %7746 = vmatpush3.msra.mxu0 %v9365_v2 }
 0x807   :  { %7760 = vmatprep.subr.mxu1 %v8436_v11  ;;  %7747 = vmatprep.subr.mxu0 %v8436_v11 }
 0x808   :  { %7761 = vmatpush3.msra.mxu1 %v9253_v36  ;;  %7748 = vmatpush3.msra.mxu0 %v9370_v3 }
 0x809   :  { %7762 = vmatprep.subr.mxu1 %v8436_v11  ;;  %7749 = vmatprep.subr.mxu0 %v8436_v11 }
 0x80a   :  { %7763 = vmatpush3.msra.mxu1 %v9267_v38  ;;  %7750 = vmatpush3.msra.mxu0 %v9377_v4 }
 0x80b   :  { %7778 = vmatprep.subr.mxu1 %v8436_v11  ;;  %7751 = vmatprep.subr.mxu0 %v8436_v11 }
 0x80c   :  { %7752 = vmatpush3.msra.mxu0 %v9384_v5 }
 0x80d   :  { %7767 = vmatprep.subr.mxu0 %v8436_v11 }
 0x8a5   :  { %v3246_v6 = vpop.f32.mrf.mxu0  ;;  %v3329_v13 = vpop.f32.mrf.mxu1 }
 0x8a6   :  { %v9396_v20 = vadd.f32 %v6730_v19, %v3246_v6  ;;  %v9398_v23 = vadd.f32 %v6737_v22, %v3329_v13 }
 0x8a7   :  { %v7667_v14 = vpop.f32.mrf.mxu0  ;;  %v7678_v15 = vpop.f32.mrf.mxu1 }
 0x8a8   :  { %v9475_v15 = vld [vmem:[%s9990_s8] ss:$0 sm:$0xff] }
 0x8ae   :  { %v3412_v16 = vpop.f32.mrf.mxu0  ;;  %v3495_v17 = vpop.f32.mrf.mxu1 }
 0x8af   :  { %v9405_v49 = vadd.f32 %v6751_v48, %v3495_v17  ;;  %v9411_v56 = vadd.f32 %v6744_v52, %v3412_v16 }
 0x8b0   :  { %v7689_v18 = vpop.f32.mrf.mxu0  ;;  %v7700_v21 = vpop.f32.mrf.mxu1 }
 0x8b8   :  { %v3589_v24 = vpop.f32.mrf.mxu0  ;;  %v3660_v25 = vpop.f32.mrf.mxu1 }
 0x8b9   :  { %v3593_v26 = vadd.f32 %v3589_v24, %v9396_v20  ;;  %v3664_v27 = vadd.f32 %v3660_v25, %v9398_v23 }
 0x8ba   :  { %v7711_v28 = vpop.f32.mrf.mxu0  ;;  %v7722_v45 = vpop.f32.mrf.mxu1 }
 0x8bb   :  { %v6765_v46 = vmul.f32 -1.442695, %v3593_v26  ;;  %v6766_v47 = vmul.f32 -1.442695, %v3664_v27 }
 0x8bd   :  { %8271 = vpow2.f32 %v6765_v46 }
 0x8be   :  { %8273 = vpow2.f32 %v6766_v47 }
 0x8c2   :  { %v3731_v50 = vpop.f32.mrf.mxu0  ;;  %v3802_v51 = vpop.f32.mrf.mxu1 }
 0x8c3   :  { %v3806_v53 = vadd.f32 %v3802_v51, %v9405_v49  ;;  %v3735_v58 = vadd.f32 %v3731_v50, %v9411_v56 }
 0x8c4   :  { %v7733_v54 = vpop.f32.mrf.mxu0  ;;  %v7744_v55 = vpop.f32.mrf.mxu1 }
 0x8c5   :  { %v6767_v57 = vmul.f32 -1.442695, %v3806_v53 }
 0x8c7   :  { %8275 = vpow2.f32 %v6767_v57 }
 0x8c8   :  { %8277 = vtanh.f32 %v3735_v58 }
 0x8ca   :  { %v8272_v59 = vpop.eup %8271 }
 0x8cb   :  { %v8274_v60 = vpop.eup %8273  ;;  %v3810_v63 = vadd.f32 1.0, %v8272_v59 }
 0x8cc   :  { %v3816_v61 = vadd.f32 1.0, %v8274_v60 }
 0x8cd   :  { %8279 = vrcp.f32 %v3810_v63 }
 0x8ce   :  { %8281 = vrcp.f32 %v3816_v61 }
 0x8d4   :  { %v8276_v7 = vpop.eup %8275 }
 0x8d5   :  { %v8278_v8 = vpop.eup %8277  ;;  %v3823_v29 = vadd.f32 1.0, %v8276_v7 }
 0x8d7   :  { %8283 = vrcp.f32 %v3823_v29 }
 0x8da   :  { %v8280_v9 = vpop.eup %8279 }
 0x8db   :  { %v8282_v10 = vpop.eup %8281  ;;  %v3827_v12 = vmul.f32 %v8280_v9, %v8278_v8 }
 0x8dc   :  { %v3826_v30 = vmul.f32 0.0, %v8282_v10 }
 0x8de   :  { %v9414_v31 = vadd.f32 %v3827_v12, %v3826_v30 }
 0x8e0   :  { %8285 = vtanh.f32 %v9414_v31 }
 0x8e4   :  { %v8284_v6 = vpop.eup %8283 }
 0x8ed   :  { %v8286_v13 = vpop.eup %8285 }
 0x8ee   :  { %v3830_v14 = vmul.f32 %v8286_v13, %v8284_v6 }
 0x8f0   :  { %7754 = vmatmul.mubr.msk.f32.vlgmr.msra.gmra.mxu0 %vm182_vm3, %v3830_v14  ;;  %7765 = vmatmul.mubr.msk.f32.vlgmr.msra.gmra.mxu1 %vm182_vm3, %v3830_v14 }
 0x8f1   :  { %7768 = vmatpush3.msra.mxu0 %v9230_v33  ;;  %7779 = vmatpush3.msra.mxu1 %v9287_v40 }
 0x8f2   :  { %7769 = vmatprep.subr.mxu0 %v8436_v11  ;;  %7780 = vmatprep.subr.mxu1 %v8436_v11 }
 0x8f3   :  { %7770 = vmatpush3.msra.mxu0 %v9244_v35  ;;  %7781 = vmatpush3.msra.mxu1 %v9301_v42 }
 0x8f4   :  { %7771 = vmatprep.subr.mxu0 %v8436_v11  ;;  %7782 = vmatprep.subr.mxu1 %v8436_v11 }
 0x8f5   :  { %7772 = vmatpush3.msra.mxu0 %v9258_v37  ;;  %7783 = vmatpush3.msra.mxu1 %v9315_v44 }
 0x8f6   :  { %7773 = vmatprep.subr.mxu0 %v8436_v11  ;;  %7784 = vmatprep.subr.mxu1 %v8436_v11 }
 0x8f7   :  { %7774 = vmatpush3.msra.mxu0 %v9274_v39  ;;  %7775 = vmatprep.mubr.msk.f32.mxu0 %vm8437_vm2, %v8436_v11 }
 0x8f8   :  { %7785 = vmatpush3.msra.mxu1 %v9329_v0  ;;  %7786 = vmatprep.mubr.msk.f32.mxu1 %vm8437_vm2, %v8436_v11 }
 0x8f9   :  { %7776 = vmatmul.mubr.msk.f32.vlgmr.msra.gmra.mxu0 %vm182_vm3, %v3830_v14  ;;  %7787 = vmatmul.mubr.msk.f32.vlgmr.msra.gmra.mxu1 %vm182_vm3, %v3830_v14 }
 0x8fa   :  { %7789 = vmatprep.subr.mxu0 %v8436_v11  ;;  %7797 = vmatprep.mubr.msk.f32.mxu0 %vm8437_vm2, %v8436_v11 }
 0x8fb   :  { %7790 = vmatpush3.msra.mxu0 %v9292_v41  ;;  %7800 = vmatprep.subr.mxu1 %v8436_v11 }
 0x8fc   :  { %7791 = vmatprep.subr.mxu0 %v8436_v11  ;;  %7801 = vmatpush3.msra.mxu1 %v9365_v2 }
 0x8fd   :  { %7792 = vmatpush3.msra.mxu0 %v9306_v43  ;;  %7802 = vmatprep.subr.mxu1 %v8436_v11 }
 0x8fe   :  { %7793 = vmatprep.subr.mxu0 %v8436_v11  ;;  %7803 = vmatpush3.msra.mxu1 %v9370_v3 }
 0x8ff   :  { %7794 = vmatpush3.msra.mxu0 %v9320_v62  ;;  %7804 = vmatprep.subr.mxu1 %v8436_v11 }
 0x900   :  { %7795 = vmatprep.subr.mxu0 %v8436_v11  ;;  %7805 = vmatpush3.msra.mxu1 %v9377_v4 }
 0x901   :  { %7796 = vmatpush3.msra.mxu0 %v9336_v1  ;;  %7806 = vmatprep.subr.mxu1 %v8436_v11 }
 0x902   :  { %7798 = vmatmul.mubr.msk.f32.vlgmr.msra.gmra.mxu0 %vm182_vm3, %v3830_v14  ;;  %7811 = vmatprep.subr.mxu0 %v8436_v11 }
 0x903   :  { %7812 = vmatpush3.msra.mxu0 %v9225_v32  ;;  %7807 = vmatpush3.msra.mxu1 %v9384_v5 }
 0x904   :  { %7813 = vmatprep.subr.mxu0 %v8436_v11  ;;  %7808 = vmatprep.mubr.msk.f32.mxu1 %vm8437_vm2, %v8436_v11 }
 0x905   :  { %7814 = vmatpush3.msra.mxu0 %v9239_v34  ;;  %7819 = vmatprep.mubr.msk.f32.mxu0 %vm8437_vm2, %v8436_v11 }
 0x906   :  { %7815 = vmatprep.subr.mxu0 %v8436_v11  ;;  %7822 = vmatprep.subr.mxu1 %v8436_v11 }
 0x907   :  { %7816 = vmatpush3.msra.mxu0 %v9253_v36 }
 0x908   :  { %7817 = vmatprep.subr.mxu0 %v8436_v11 }
 0x909   :  { %7818 = vmatpush3.msra.mxu0 %v9267_v38 }
 0x90a   :  { %7833 = vmatprep.subr.mxu0 %v8436_v11 }
 0x9b0   :  { %v3906_v16 = vpop.f32.mrf.mxu0  ;;  %v3977_v17 = vpop.f32.mrf.mxu1 }
 0x9b1   :  { %v3907_v18 = vadd.f32 %v9475_v15, %v3906_v16  ;;  %v3981_v21 = vadd.f32 %v3977_v17, %v9396_v20 }
 0x9b2   :  { %v7755_v19 = vpop.f32.mrf.mxu0  ;;  %v7766_v22 = vpop.f32.mrf.mxu1 }
 0x9b3   :  { %3910 = vst [vmem:[%s9991_s9] sm:$0xff] %v3907_v18  ;;  %v6774_v24 = vmul.f32 -1.442695, %v3981_v21 }
 0x9b5   :  { %8287 = vpow2.f32 %v6774_v24 }
 0x9b9   :  { %v4048_v25 = vpop.f32.mrf.mxu0  ;;  %v4119_v26 = vpop.f32.mrf.mxu1 }
 0x9ba   :  { %v4052_v27 = vadd.f32 %v4048_v25, %v9398_v23  ;;  %v4123_v54 = vadd.f32 %v4119_v26, %v9411_v56 }
 0x9bb   :  { %v7777_v28 = vpop.f32.mrf.mxu0  ;;  %v7788_v45 = vpop.f32.mrf.mxu1 }
 0x9bc   :  { %v6775_v46 = vmul.f32 -1.442695, %v4052_v27 }
 0x9be   :  { %8289 = vpow2.f32 %v6775_v46 }
 0x9c2   :  { %v4190_v47 = vpop.f32.mrf.mxu0  ;;  %v8288_v51 = vpop.eup %8287 }
 0x9c3   :  { %v4194_v48 = vadd.f32 %v4190_v47, %v9405_v49  ;;  %v4198_v53 = vadd.f32 1.0, %v8288_v51 }
 0x9c4   :  { %v7799_v50 = vpop.f32.mrf.mxu0 }
 0x9c5   :  { %v6776_v52 = vmul.f32 -1.442695, %v4194_v48 }
 0x9c7   :  { %8291 = vpow2.f32 %v6776_v52 }
 0x9c8   :  { %8293 = vrcp.f32 %v4198_v53 }
 0x9c9   :  { %8295 = vtanh.f32 %v4123_v54 }
 0x9cb   :  { %v8290_v55 = vpop.eup %8289 }
 0x9cc   :  { %v4204_v57 = vadd.f32 1.0, %v8290_v55 }
 0x9ce   :  { %8297 = vrcp.f32 %v4204_v57 }
 0x9d4   :  { %v8292_v58 = vpop.eup %8291 }
 0x9d5   :  { %v8294_v59 = vpop.eup %8293  ;;  %v4211_v61 = vadd.f32 1.0, %v8292_v58 }
 0x9d6   :  { %v8296_v60 = vpop.eup %8295 }
 0x9d7   :  { %v4215_v8 = vmul.f32 %v8296_v60, %v8294_v59  ;;  %8299 = vrcp.f32 %v4211_v61 }
 0x9db   :  { %v8298_v63 = vpop.eup %8297 }
 0x9dc   :  { %v4214_v7 = vmul.f32 %v8298_v63, %v9414_v31 }
 0x9de   :  { %v9486_v9 = vadd.f32 %v4215_v8, %v4214_v7 }
 0x9e0   :  { %8301 = vtanh.f32 %v9486_v9 }
 0x9e4   :  { %v8300_v10 = vpop.eup %8299 }
 0x9ed   :  { %v8302_v12 = vpop.eup %8301 }
 0x9ee   :  { %v4218_v29 = vmul.f32 %v8302_v12, %v8300_v10 }
 0x9f0   :  { %7809 = vmatmul.mubr.msk.f32.vlgmr.msra.gmra.mxu1 %vm182_vm3, %v4218_v29  ;;  %7820 = vmatmul.mubr.msk.f32.vlgmr.msra.gmra.mxu0 %vm182_vm3, %v4218_v29 }
 0x9f1   :  { %7823 = vmatpush3.msra.mxu1 %v9230_v33  ;;  %7834 = vmatpush3.msra.mxu0 %v9287_v40 }
 0x9f2   :  { %7824 = vmatprep.subr.mxu1 %v8436_v11  ;;  %7835 = vmatprep.subr.mxu0 %v8436_v11 }
 0x9f3   :  { %7825 = vmatpush3.msra.mxu1 %v9244_v35  ;;  %7836 = vmatpush3.msra.mxu0 %v9301_v42 }
 0x9f4   :  { %7826 = vmatprep.subr.mxu1 %v8436_v11  ;;  %7837 = vmatprep.subr.mxu0 %v8436_v11 }
 0x9f5   :  { %7827 = vmatpush3.msra.mxu1 %v9258_v37  ;;  %7838 = vmatpush3.msra.mxu0 %v9315_v44 }
 0x9f6   :  { %7828 = vmatprep.subr.mxu1 %v8436_v11  ;;  %7839 = vmatprep.subr.mxu0 %v8436_v11 }
 0x9f7   :  { %7829 = vmatpush3.msra.mxu1 %v9274_v39  ;;  %7830 = vmatprep.mubr.msk.f32.mxu1 %vm8437_vm2, %v8436_v11 }
 0x9f8   :  { %7840 = vmatpush3.msra.mxu0 %v9329_v0  ;;  %7841 = vmatprep.mubr.msk.f32.mxu0 %vm8437_vm2, %v8436_v11 }
 0x9f9   :  { %7831 = vmatmul.mubr.msk.f32.vlgmr.msra.gmra.mxu1 %vm182_vm3, %v4218_v29  ;;  %7842 = vmatmul.mubr.msk.f32.vlgmr.msra.gmra.mxu0 %vm182_vm3, %v4218_v29 }
 0x9fa   :  { %7844 = vmatprep.subr.mxu1 %v8436_v11  ;;  %7852 = vmatprep.mubr.msk.f32.mxu1 %vm8437_vm2, %v8436_v11 }
 0x9fb   :  { %7845 = vmatpush3.msra.mxu1 %v9292_v41  ;;  %7855 = vmatprep.subr.mxu0 %v8436_v11 }
 0x9fc   :  { %7846 = vmatprep.subr.mxu1 %v8436_v11  ;;  %7856 = vmatpush3.msra.mxu0 %v9365_v2 }
 0x9fd   :  { %7847 = vmatpush3.msra.mxu1 %v9306_v43  ;;  %7857 = vmatprep.subr.mxu0 %v8436_v11 }
 0x9fe   :  { %7848 = vmatprep.subr.mxu1 %v8436_v11  ;;  %7858 = vmatpush3.msra.mxu0 %v9370_v3 }
 0x9ff   :  { %7849 = vmatpush3.msra.mxu1 %v9320_v62  ;;  %7859 = vmatprep.subr.mxu0 %v8436_v11 }
 0xa00   :  { %7850 = vmatprep.subr.mxu1 %v8436_v11  ;;  %7860 = vmatpush3.msra.mxu0 %v9377_v4 }
 0xa01   :  { %7851 = vmatpush3.msra.mxu1 %v9336_v1  ;;  %7861 = vmatprep.subr.mxu0 %v8436_v11 }
 0xa02   :  { %7853 = vmatmul.mubr.msk.f32.vlgmr.msra.gmra.mxu1 %vm182_vm3, %v4218_v29  ;;  %7866 = vmatprep.subr.mxu1 %v8436_v11 }
 0xa03   :  { %7867 = vmatpush3.msra.mxu1 %v9225_v32  ;;  %7862 = vmatpush3.msra.mxu0 %v9384_v5 }
 0xa04   :  { %7868 = vmatprep.subr.mxu1 %v8436_v11  ;;  %7863 = vmatprep.mubr.msk.f32.mxu0 %vm8437_vm2, %v8436_v11 }
 0xa05   :  { %7869 = vmatpush3.msra.mxu1 %v9239_v34  ;;  %7874 = vmatprep.mubr.msk.f32.mxu1 %vm8437_vm2, %v8436_v11 }
 0xa06   :  { %7870 = vmatprep.subr.mxu1 %v8436_v11  ;;  %7877 = vmatprep.subr.mxu0 %v8436_v11 }
 0xa07   :  { %7871 = vmatpush3.msra.mxu1 %v9253_v36 }
 0xa08   :  { %7872 = vmatprep.subr.mxu1 %v8436_v11 }
 0xa09   :  { %7873 = vmatpush3.msra.mxu1 %v9267_v38 }
 0xa0a   :  { %7888 = vmatprep.subr.mxu1 %v8436_v11 }
 0xab0   :  { %v4288_v30 = vpop.f32.mrf.mxu1  ;;  %v4360_v31 = vpop.f32.mrf.mxu0 }
 0xab1   :  { %v4289_v6 = vadd.f32 %v9475_v15, %v4288_v30  ;;  %v4364_v13 = vadd.f32 %v4360_v31, %v9396_v20 }
 0xab2   :  { %v7810_v14 = vpop.f32.mrf.mxu1  ;;  %v7821_v16 = vpop.f32.mrf.mxu0 }
 0xab3   :  { %6778 = vst [vmem:[%s9991_s9 + $0x8] sm:$0xff] %v4289_v6  ;;  %v6783_v17 = vmul.f32 -1.442695, %v4364_v13 }
 0xab5   :  { %8303 = vpow2.f32 %v6783_v17 }
 0xab9   :  { %v4431_v18 = vpop.f32.mrf.mxu1  ;;  %v4502_v21 = vpop.f32.mrf.mxu0 }
 0xaba   :  { %v4435_v19 = vadd.f32 %v4431_v18, %v9398_v23  ;;  %v4506_v48 = vadd.f32 %v4502_v21, %v9411_v56 }
 0xabb   :  { %v7832_v22 = vpop.f32.mrf.mxu1  ;;  %v7843_v24 = vpop.f32.mrf.mxu0 }
 0xabc   :  { %v6784_v25 = vmul.f32 -1.442695, %v4435_v19 }
 0xabe   :  { %8305 = vpow2.f32 %v6784_v25 }
 0xac2   :  { %v4573_v26 = vpop.f32.mrf.mxu1  ;;  %v8304_v45 = vpop.eup %8303 }
 0xac3   :  { %v4577_v27 = vadd.f32 %v4573_v26, %v9405_v49  ;;  %v4581_v47 = vadd.f32 1.0, %v8304_v45 }
 0xac4   :  { %v7854_v28 = vpop.f32.mrf.mxu1 }
 0xac5   :  { %v6785_v46 = vmul.f32 -1.442695, %v4577_v27 }
 0xac7   :  { %8307 = vpow2.f32 %v6785_v46 }
 0xac8   :  { %8309 = vrcp.f32 %v4581_v47 }
 0xac9   :  { %8311 = vtanh.f32 %v4506_v48 }
 0xacb   :  { %v8306_v50 = vpop.eup %8305 }
 0xacc   :  { %v4587_v51 = vadd.f32 1.0, %v8306_v50 }
 0xace   :  { %8313 = vrcp.f32 %v4587_v51 }
 0xad4   :  { %v8308_v52 = vpop.eup %8307 }
 0xad5   :  { %v8310_v53 = vpop.eup %8309  ;;  %v4594_v57 = vadd.f32 1.0, %v8308_v52 }
 0xad6   :  { %v8312_v54 = vpop.eup %8311 }
 0xad7   :  { %v4598_v59 = vmul.f32 %v8312_v54, %v8310_v53  ;;  %8315 = vrcp.f32 %v4594_v57 }
 0xadb   :  { %v8314_v55 = vpop.eup %8313 }
 0xadc   :  { %v4597_v58 = vmul.f32 %v8314_v55, %v9486_v9 }
 0xade   :  { %v9553_v60 = vadd.f32 %v4598_v59, %v4597_v58 }
 0xae0   :  { %8317 = vtanh.f32 %v9553_v60 }
 0xae4   :  { %v8316_v63 = vpop.eup %8315 }
 0xaed   :  { %v8318_v61 = vpop.eup %8317 }
 0xaee   :  { %v4601_v7 = vmul.f32 %v8318_v61, %v8316_v63 }
 0xaf0   :  { %7864 = vmatmul.mubr.msk.f32.vlgmr.msra.gmra.mxu0 %vm182_vm3, %v4601_v7  ;;  %7875 = vmatmul.mubr.msk.f32.vlgmr.msra.gmra.mxu1 %vm182_vm3, %v4601_v7 }
 0xaf1   :  { %7878 = vmatpush3.msra.mxu0 %v9230_v33  ;;  %7889 = vmatpush3.msra.mxu1 %v9287_v40 }
 0xaf2   :  { %7879 = vmatprep.subr.mxu0 %v8436_v11  ;;  %7890 = vmatprep.subr.mxu1 %v8436_v11 }
 0xaf3   :  { %7880 = vmatpush3.msra.mxu0 %v9244_v35  ;;  %7891 = vmatpush3.msra.mxu1 %v9301_v42 }
 0xaf4   :  { %7881 = vmatprep.subr.mxu0 %v8436_v11  ;;  %7892 = vmatprep.subr.mxu1 %v8436_v11 }
 0xaf5   :  { %7882 = vmatpush3.msra.mxu0 %v9258_v37  ;;  %7893 = vmatpush3.msra.mxu1 %v9315_v44 }
 0xaf6   :  { %7883 = vmatprep.subr.mxu0 %v8436_v11  ;;  %7894 = vmatprep.subr.mxu1 %v8436_v11 }
 0xaf7   :  { %7884 = vmatpush3.msra.mxu0 %v9274_v39  ;;  %7885 = vmatprep.mubr.msk.f32.mxu0 %vm8437_vm2, %v8436_v11 }
 0xaf8   :  { %7895 = vmatpush3.msra.mxu1 %v9329_v0  ;;  %7896 = vmatprep.mubr.msk.f32.mxu1 %vm8437_vm2, %v8436_v11 }
 0xaf9   :  { %7886 = vmatmul.mubr.msk.f32.vlgmr.msra.gmra.mxu0 %vm182_vm3, %v4601_v7  ;;  %7897 = vmatmul.mubr.msk.f32.vlgmr.msra.gmra.mxu1 %vm182_vm3, %v4601_v7 }
 0xafa   :  { %7899 = vmatprep.subr.mxu0 %v8436_v11  ;;  %7907 = vmatprep.mubr.msk.f32.mxu0 %vm8437_vm2, %v8436_v11 }
 0xafb   :  { %7900 = vmatpush3.msra.mxu0 %v9292_v41  ;;  %7910 = vmatprep.subr.mxu1 %v8436_v11 }
 0xafc   :  { %7901 = vmatprep.subr.mxu0 %v8436_v11  ;;  %7911 = vmatpush3.msra.mxu1 %v9365_v2 }
 0xafd   :  { %7902 = vmatpush3.msra.mxu0 %v9306_v43  ;;  %7912 = vmatprep.subr.mxu1 %v8436_v11 }
 0xafe   :  { %7903 = vmatprep.subr.mxu0 %v8436_v11  ;;  %7913 = vmatpush3.msra.mxu1 %v9370_v3 }
 0xaff   :  { %7904 = vmatpush3.msra.mxu0 %v9320_v62  ;;  %7914 = vmatprep.subr.mxu1 %v8436_v11 }
 0xb00   :  { %7905 = vmatprep.subr.mxu0 %v8436_v11  ;;  %7915 = vmatpush3.msra.mxu1 %v9377_v4 }
 0xb01   :  { %7906 = vmatpush3.msra.mxu0 %v9336_v1  ;;  %7916 = vmatprep.subr.mxu1 %v8436_v11 }
 0xb02   :  { %7908 = vmatmul.mubr.msk.f32.vlgmr.msra.gmra.mxu0 %vm182_vm3, %v4601_v7  ;;  %7921 = vmatprep.subr.mxu0 %v8436_v11 }
 0xb03   :  { %7922 = vmatpush3.msra.mxu0 %v9225_v32  ;;  %7917 = vmatpush3.msra.mxu1 %v9384_v5 }
 0xb04   :  { %7923 = vmatprep.subr.mxu0 %v8436_v11  ;;  %7918 = vmatprep.mubr.msk.f32.mxu1 %vm8437_vm2, %v8436_v11 }
 0xb05   :  { %7924 = vmatpush3.msra.mxu0 %v9239_v34  ;;  %7929 = vmatprep.mubr.msk.f32.mxu0 %vm8437_vm2, %v8436_v11 }
 0xb06   :  { %7925 = vmatprep.subr.mxu0 %v8436_v11  ;;  %7932 = vmatprep.subr.mxu1 %v8436_v11 }
 0xb07   :  { %7926 = vmatpush3.msra.mxu0 %v9253_v36 }
 0xb08   :  { %7927 = vmatprep.subr.mxu0 %v8436_v11 }
 0xb09   :  { %7928 = vmatpush3.msra.mxu0 %v9267_v38 }
 0xb0a   :  { %7943 = vmatprep.subr.mxu0 %v8436_v11 }
 0xbb0   :  { %v4671_v8 = vpop.f32.mrf.mxu0  ;;  %v4743_v9 = vpop.f32.mrf.mxu1 }
 0xbb1   :  { %v4672_v10 = vadd.f32 %v9475_v15, %v4671_v8  ;;  %v4747_v12 = vadd.f32 %v4743_v9, %v9396_v20 }
 0xbb2   :  { %v7865_v29 = vpop.f32.mrf.mxu0  ;;  %v7876_v30 = vpop.f32.mrf.mxu1 }
 0xbb3   :  { %6787 = vst [vmem:[%s9991_s9 + $0x10] sm:$0xff] %v4672_v10  ;;  %v6792_v31 = vmul.f32 -1.442695, %v4747_v12 }
 0xbb5   :  { %8319 = vpow2.f32 %v6792_v31 }
 0xbb9   :  { %v4814_v6 = vpop.f32.mrf.mxu0  ;;  %v4885_v13 = vpop.f32.mrf.mxu1 }
 0xbba   :  { %v4818_v14 = vadd.f32 %v4814_v6, %v9398_v23  ;;  %v4889_v27 = vadd.f32 %v4885_v13, %v9411_v56 }
 0xbbb   :  { %v7887_v16 = vpop.f32.mrf.mxu0  ;;  %v7898_v17 = vpop.f32.mrf.mxu1 }
 0xbbc   :  { %v6793_v18 = vmul.f32 -1.442695, %v4818_v14 }
 0xbbe   :  { %8321 = vpow2.f32 %v6793_v18 }
 0xbc2   :  { %v4956_v21 = vpop.f32.mrf.mxu0  ;;  %v8320_v24 = vpop.eup %8319 }
 0xbc3   :  { %v4960_v19 = vadd.f32 %v4956_v21, %v9405_v49  ;;  %v4964_v26 = vadd.f32 1.0, %v8320_v24 }
 0xbc4   :  { %v7909_v22 = vpop.f32.mrf.mxu0 }
 0xbc5   :  { %v6794_v25 = vmul.f32 -1.442695, %v4960_v19 }
 0xbc7   :  { %8323 = vpow2.f32 %v6794_v25 }
 0xbc8   :  { %8325 = vrcp.f32 %v4964_v26 }
 0xbc9   :  { %8327 = vtanh.f32 %v4889_v27 }
 0xbcb   :  { %v8322_v28 = vpop.eup %8321 }
 0xbcc   :  { %v4970_v45 = vadd.f32 1.0, %v8322_v28 }
 0xbce   :  { %8329 = vrcp.f32 %v4970_v45 }
 0xbd4   :  { %v8324_v46 = vpop.eup %8323 }
 0xbd5   :  { %v8326_v47 = vpop.eup %8325  ;;  %v4977_v51 = vadd.f32 1.0, %v8324_v46 }
 0xbd6   :  { %v8328_v48 = vpop.eup %8327 }
 0xbd7   :  { %v4981_v53 = vmul.f32 %v8328_v48, %v8326_v47  ;;  %8331 = vrcp.f32 %v4977_v51 }
 0xbdb   :  { %v8330_v50 = vpop.eup %8329 }
 0xbdc   :  { %v4980_v52 = vmul.f32 %v8330_v50, %v9553_v60 }
 0xbde   :  { %v9620_v54 = vadd.f32 %v4981_v53, %v4980_v52 }
 0xbe0   :  { %8333 = vtanh.f32 %v9620_v54 }
 0xbe4   :  { %v8332_v55 = vpop.eup %8331 }
 0xbed   :  { %v8334_v57 = vpop.eup %8333 }
 0xbee   :  { %v4984_v58 = vmul.f32 %v8334_v57, %v8332_v55 }
 0xbf0   :  { %7919 = vmatmul.mubr.msk.f32.vlgmr.msra.gmra.mxu1 %vm182_vm3, %v4984_v58  ;;  %7930 = vmatmul.mubr.msk.f32.vlgmr.msra.gmra.mxu0 %vm182_vm3, %v4984_v58 }
 0xbf1   :  { %7933 = vmatpush3.msra.mxu1 %v9230_v33  ;;  %7944 = vmatpush3.msra.mxu0 %v9287_v40 }
 0xbf2   :  { %7934 = vmatprep.subr.mxu1 %v8436_v11  ;;  %7945 = vmatprep.subr.mxu0 %v8436_v11 }
 0xbf3   :  { %7935 = vmatpush3.msra.mxu1 %v9244_v35  ;;  %7946 = vmatpush3.msra.mxu0 %v9301_v42 }
 0xbf4   :  { %7936 = vmatprep.subr.mxu1 %v8436_v11  ;;  %7947 = vmatprep.subr.mxu0 %v8436_v11 }
 0xbf5   :  { %7937 = vmatpush3.msra.mxu1 %v9258_v37  ;;  %7948 = vmatpush3.msra.mxu0 %v9315_v44 }
 0xbf6   :  { %7938 = vmatprep.subr.mxu1 %v8436_v11  ;;  %7949 = vmatprep.subr.mxu0 %v8436_v11 }
 0xbf7   :  { %7939 = vmatpush3.msra.mxu1 %v9274_v39  ;;  %7940 = vmatprep.mubr.msk.f32.mxu1 %vm8437_vm2, %v8436_v11 }
 0xbf8   :  { %7950 = vmatpush3.msra.mxu0 %v9329_v0  ;;  %7951 = vmatprep.mubr.msk.f32.mxu0 %vm8437_vm2, %v8436_v11 }
 0xbf9   :  { %7941 = vmatmul.mubr.msk.f32.vlgmr.msra.gmra.mxu1 %vm182_vm3, %v4984_v58  ;;  %7952 = vmatmul.mubr.msk.f32.vlgmr.msra.gmra.mxu0 %vm182_vm3, %v4984_v58 }
 0xbfa   :  { %7954 = vmatprep.subr.mxu1 %v8436_v11  ;;  %7962 = vmatprep.mubr.msk.f32.mxu1 %vm8437_vm2, %v8436_v11 }
 0xbfb   :  { %7955 = vmatpush3.msra.mxu1 %v9292_v41  ;;  %7965 = vmatprep.subr.mxu0 %v8436_v11 }
 0xbfc   :  { %7956 = vmatprep.subr.mxu1 %v8436_v11  ;;  %7966 = vmatpush3.msra.mxu0 %v9365_v2 }
 0xbfd   :  { %7957 = vmatpush3.msra.mxu1 %v9306_v43  ;;  %7967 = vmatprep.subr.mxu0 %v8436_v11 }
 0xbfe   :  { %7958 = vmatprep.subr.mxu1 %v8436_v11  ;;  %7968 = vmatpush3.msra.mxu0 %v9370_v3 }
 0xbff   :  { %7959 = vmatpush3.msra.mxu1 %v9320_v62  ;;  %7969 = vmatprep.subr.mxu0 %v8436_v11 }
 0xc00   :  { %7960 = vmatprep.subr.mxu1 %v8436_v11  ;;  %7970 = vmatpush3.msra.mxu0 %v9377_v4 }
 0xc01   :  { %7961 = vmatpush3.msra.mxu1 %v9336_v1  ;;  %7971 = vmatprep.subr.mxu0 %v8436_v11 }
 0xc02   :  { %7963 = vmatmul.mubr.msk.f32.vlgmr.msra.gmra.mxu1 %vm182_vm3, %v4984_v58  ;;  %7976 = vmatprep.subr.mxu1 %v8436_v11 }
 0xc03   :  { %7977 = vmatpush3.msra.mxu1 %v9225_v32  ;;  %7972 = vmatpush3.msra.mxu0 %v9384_v5 }
 0xc04   :  { %7978 = vmatprep.subr.mxu1 %v8436_v11  ;;  %7973 = vmatprep.mubr.msk.f32.mxu0 %vm8437_vm2, %v8436_v11 }
 0xc05   :  { %7979 = vmatpush3.msra.mxu1 %v9239_v34  ;;  %7984 = vmatprep.mubr.msk.f32.mxu1 %vm8437_vm2, %v8436_v11 }
 0xc06   :  { %7980 = vmatprep.subr.mxu1 %v8436_v11  ;;  %7987 = vmatprep.subr.mxu0 %v8436_v11 }
 0xc07   :  { %7981 = vmatpush3.msra.mxu1 %v9253_v36 }
 0xc08   :  { %7982 = vmatprep.subr.mxu1 %v8436_v11 }
 0xc09   :  { %7983 = vmatpush3.msra.mxu1 %v9267_v38 }
 0xc0a   :  { %7998 = vmatprep.subr.mxu1 %v8436_v11 }
 0xcb0   :  { %v5054_v32 = vpop.f32.mrf.mxu1  ;;  %v5126_v59 = vpop.f32.mrf.mxu0 }
 0xcb1   :  { %v5055_v60 = vadd.f32 %v9475_v15, %v5054_v32  ;;  %v5130_v34 = vadd.f32 %v5126_v59, %v9396_v20 }
 0xcb2   :  { %v7920_v63 = vpop.f32.mrf.mxu1  ;;  %v7931_v61 = vpop.f32.mrf.mxu0 }
 0xcb3   :  { %6796 = vst [vmem:[%s9991_s9 + $0x18] sm:$0xff] %v5055_v60  ;;  %v6801_v7 = vmul.f32 -1.442695, %v5130_v34 }
 0xcb5   :  { %8335 = vpow2.f32 %v6801_v7 }
 0xcb9   :  { %v5197_v36 = vpop.f32.mrf.mxu1  ;;  %v5268_v8 = vpop.f32.mrf.mxu0 }
 0xcba   :  { %v5201_v38 = vadd.f32 %v5197_v36, %v9398_v23  ;;  %v5272_v16 = vadd.f32 %v5268_v8, %v9411_v56 }
 0xcbb   :  { %v7942_v9 = vpop.f32.mrf.mxu1  ;;  %v7953_v10 = vpop.f32.mrf.mxu0 }
 0xcbc   :  { %v6802_v12 = vmul.f32 -1.442695, %v5201_v38 }
 0xcbe   :  { %8337 = vpow2.f32 %v6802_v12  ;;  %v9782_v12 = vld [vmem:[%s9987_s5 + $0x38] sm:$0xff] }
 0xcc2   :  { %v5339_v29 = vpop.f32.mrf.mxu1  ;;  %v8336_v6 = vpop.eup %8335 }
 0xcc3   :  { %v5343_v30 = vadd.f32 %v5339_v29, %v9405_v49  ;;  %v5347_v14 = vadd.f32 1.0, %v8336_v6  ;;  %v9788_v29 = vld [vmem:[%s9987_s5 + $0x58] sm:$0xff]  ;;  %v9810_v6 = vld [vmem:[%s9987_s5 + $0x28] sm:$0xff] }
 0xcc4   :  { %v7964_v31 = vpop.f32.mrf.mxu1 }
 0xcc5   :  { %v6803_v13 = vmul.f32 -1.442695, %v5343_v30  ;;  %v9796_v30 = vld [vmem:[%s9987_s5 + $0x30] sm:$0xff] }
 0xcc6   :  { %v9802_v31 = vld [vmem:[%s9987_s5 + $0x50] sm:$0xff] }
 0xcc7   :  { %8339 = vpow2.f32 %v6803_v13  ;;  %v9816_v13 = vld [vmem:[%s9987_s5 + $0x48] sm:$0xff] }
 0xcc8   :  { %8341 = vrcp.f32 %v5347_v14  ;;  %v9824_v14 = vld [vmem:[%s9987_s5 + $0x20] sm:$0xff] }
 0xcc9   :  { %8343 = vtanh.f32 %v5272_v16  ;;  %v9832_v16 = vld [vmem:[%s9987_s5 + $0x40] sm:$0xff] }
 0xccb   :  { %v8338_v17 = vpop.eup %8337 }
 0xccc   :  { %v5353_v18 = vadd.f32 1.0, %v8338_v17  ;;  %v9845_v17 = vld [vmem:[%s9987_s5 + $0x78] sm:$0xff] }
 0xcce   :  { %8345 = vrcp.f32 %v5353_v18  ;;  %v9853_v18 = vld [vmem:[%s9988_s7 + $0x18] sm:$0xff] }
 0xcd4   :  { %v8340_v21 = vpop.eup %8339 }
 0xcd5   :  { %v8342_v19 = vpop.eup %8341  ;;  %v5360_v25 = vadd.f32 1.0, %v8340_v21  ;;  %v9859_v21 = vld [vmem:[%s9987_s5 + $0x70] sm:$0xff] }
 0xcd6   :  { %v8344_v22 = vpop.eup %8343 }
 0xcd7   :  { %v5364_v27 = vmul.f32 %v8344_v22, %v8342_v19  ;;  %8347 = vrcp.f32 %v5360_v25  ;;  %v9867_v19 = vld [vmem:[%s9988_s7 + $0x10] sm:$0xff]  ;;  %v9873_v22 = vld [vmem:[%s9987_s5 + $0x68] sm:$0xff]  ;;  %v9887_v25 = vld [vmem:[%s9987_s5 + $0x60] sm:$0xff] }
 0xcdb   :  { %v8346_v24 = vpop.eup %8345 }
 0xcdc   :  { %v5363_v26 = vmul.f32 %v8346_v24, %v9620_v54  ;;  %v9881_v24 = vld [vmem:[%s9988_s7 + $0x8] sm:$0xff] }
 0xcde   :  { %v9687_v28 = vadd.f32 %v5364_v27, %v5363_v26  ;;  %v9897_v26 = vld [vmem:[%s9988_s7] sm:$0xff] }
 0xce0   :  { %8349 = vtanh.f32 %v9687_v28 }
 0xce4   :  { %v8348_v45 = vpop.eup %8347 }
 0xced   :  { %v8350_v46 = vpop.eup %8349 }
 0xcee   :  { %v5367_v47 = vmul.f32 %v8350_v46, %v8348_v45 }
 0xcf0   :  { %7974 = vmatmul.mubr.msk.f32.vlgmr.msra.gmra.mxu0 %vm182_vm3, %v5367_v47  ;;  %7985 = vmatmul.mubr.msk.f32.vlgmr.msra.gmra.mxu1 %vm182_vm3, %v5367_v47 }
 0xcf1   :  { %7988 = vmatpush3.msra.mxu0 %v9230_v33  ;;  %7999 = vmatpush3.msra.mxu1 %v9287_v40  ;;  %v9734_v33 = vld [vmem:[%s9987_s5 + $0x18] sm:$0xff] }
 0xcf2   :  { %7989 = vmatprep.subr.mxu0 %v8436_v11  ;;  %8000 = vmatprep.subr.mxu1 %v8436_v11 }
 0xcf3   :  { %7990 = vmatpush3.msra.mxu0 %v9244_v35  ;;  %8001 = vmatpush3.msra.mxu1 %v9301_v42  ;;  %v9744_v35 = vld [vmem:[%s9987_s5 + $0x10] sm:$0xff] }
 0xcf4   :  { %7991 = vmatprep.subr.mxu0 %v8436_v11  ;;  %8002 = vmatprep.subr.mxu1 %v8436_v11 }
 0xcf5   :  { %7992 = vmatpush3.msra.mxu0 %v9258_v37  ;;  %8003 = vmatpush3.msra.mxu1 %v9315_v44  ;;  %v9754_v37 = vld [vmem:[%s9987_s5 + $0x8] sm:$0xff] }
 0xcf6   :  { %7993 = vmatprep.subr.mxu0 %v8436_v11  ;;  %8004 = vmatprep.subr.mxu1 %v8436_v11 }
 0xcf7   :  { %7994 = vmatpush3.msra.mxu0 %v9274_v39  ;;  %7995 = vmatprep.mubr.msk.f32.mxu0 %vm8437_vm2, %v8436_v11  ;;  %v9761_v39 = vld [vmem:[%s9987_s5] sm:$0xff] }
 0xcf8   :  { %8005 = vmatpush3.msra.mxu1 %v9329_v0  ;;  %8006 = vmatprep.mubr.msk.f32.mxu1 %vm8437_vm2, %v8436_v11 }
 0xcf9   :  { %7996 = vmatmul.mubr.msk.f32.vlgmr.msra.gmra.mxu0 %vm182_vm3, %v5367_v47  ;;  %8007 = vmatmul.mubr.msk.f32.vlgmr.msra.gmra.mxu1 %vm182_vm3, %v5367_v47 }
 0xcfa   :  { %8009 = vmatprep.subr.mxu0 %v8436_v11  ;;  %8017 = vmatprep.mubr.msk.f32.mxu0 %vm8437_vm2, %v8436_v11 }
 0xcfb   :  { %8010 = vmatpush3.msra.mxu0 %v9292_v41  ;;  %8020 = vmatprep.subr.mxu1 %v8436_v11 }
 0xcfc   :  { %8011 = vmatprep.subr.mxu0 %v8436_v11  ;;  %8021 = vmatpush3.msra.mxu1 %v9365_v2 }
 0xcfd   :  { %8012 = vmatpush3.msra.mxu0 %v9306_v43  ;;  %8022 = vmatprep.subr.mxu1 %v8436_v11 }
 0xcfe   :  { %8013 = vmatprep.subr.mxu0 %v8436_v11  ;;  %8023 = vmatpush3.msra.mxu1 %v9370_v3 }
 0xcff   :  { %8014 = vmatpush3.msra.mxu0 %v9320_v62  ;;  %8024 = vmatprep.subr.mxu1 %v8436_v11 }
 0xd00   :  { %8015 = vmatprep.subr.mxu0 %v8436_v11  ;;  %8025 = vmatpush3.msra.mxu1 %v9377_v4 }
 0xd01   :  { %8016 = vmatpush3.msra.mxu0 %v9336_v1  ;;  %8026 = vmatprep.subr.mxu1 %v8436_v11 }
 0xd02   :  { %8018 = vmatmul.mubr.msk.f32.vlgmr.msra.gmra.mxu0 %vm182_vm3, %v5367_v47  ;;  %8031 = vmatprep.subr.mxu0 %v8436_v11 }
 0xd03   :  { %8032 = vmatpush3.msra.mxu0 %v9734_v33  ;;  %8027 = vmatpush3.msra.mxu1 %v9384_v5 }
 0xd04   :  { %8033 = vmatprep.subr.mxu0 %v8436_v11  ;;  %8028 = vmatprep.mubr.msk.f32.mxu1 %vm8437_vm2, %v8436_v11 }
 0xd05   :  { %8034 = vmatpush3.msra.mxu0 %v9744_v35  ;;  %8039 = vmatprep.mubr.msk.f32.mxu0 %vm8437_vm2, %v8436_v11 }
 0xd06   :  { %8035 = vmatprep.subr.mxu0 %v8436_v11  ;;  %8042 = vmatprep.subr.mxu1 %v8436_v11 }
 0xd07   :  { %8036 = vmatpush3.msra.mxu0 %v9754_v37 }
 0xd08   :  { %8037 = vmatprep.subr.mxu0 %v8436_v11 }
 0xd09   :  { %8038 = vmatpush3.msra.mxu0 %v9761_v39 }
 0xd0a   :  { %8053 = vmatprep.subr.mxu0 %v8436_v11 }
 0xdb0   :  { %v5437_v40 = vpop.f32.mrf.mxu0  ;;  %v5509_v41 = vpop.f32.mrf.mxu1 }
 0xdb1   :  { %v5438_v42 = vadd.f32 %v9475_v15, %v5437_v40  ;;  %v5513_v43 = vadd.f32 %v5509_v41, %v9396_v20 }
 0xdb2   :  { %v7975_v44 = vpop.f32.mrf.mxu0  ;;  %v7986_v62 = vpop.f32.mrf.mxu1 }
 0xdb3   :  { %6805 = vst [vmem:[%s9991_s9 + $0x20] sm:$0xff] %v5438_v42  ;;  %v6810_v0 = vmul.f32 -1.442695, %v5513_v43 }
 0xdb5   :  { %8351 = vpow2.f32 %v6810_v0 }
 0xdb9   :  { %v5580_v1 = vpop.f32.mrf.mxu0  ;;  %v5651_v2 = vpop.f32.mrf.mxu1 }
 0xdba   :  { %v5584_v3 = vadd.f32 %v5580_v1, %v9398_v23  ;;  %v5655_v57 = vadd.f32 %v5651_v2, %v9411_v56 }
 0xdbb   :  { %v7997_v4 = vpop.f32.mrf.mxu0  ;;  %v8008_v5 = vpop.f32.mrf.mxu1 }
 0xdbc   :  { %v6811_v48 = vmul.f32 -1.442695, %v5584_v3 }
 0xdbe   :  { %8353 = vpow2.f32 %v6811_v48 }
 0xdc2   :  { %v5722_v50 = vpop.f32.mrf.mxu0  ;;  %v8352_v53 = vpop.eup %8351 }
 0xdc3   :  { %v5726_v51 = vadd.f32 %v5722_v50, %v9405_v49  ;;  %v5730_v55 = vadd.f32 1.0, %v8352_v53 }
 0xdc4   :  { %v8019_v52 = vpop.f32.mrf.mxu0 }
 0xdc5   :  { %v6812_v54 = vmul.f32 -1.442695, %v5726_v51 }
 0xdc7   :  { %8355 = vpow2.f32 %v6812_v54 }
 0xdc8   :  { %8357 = vrcp.f32 %v5730_v55 }
 0xdc9   :  { %8359 = vtanh.f32 %v5655_v57 }
 0xdcb   :  { %v8354_v58 = vpop.eup %8353 }
 0xdcc   :  { %v5736_v32 = vadd.f32 1.0, %v8354_v58 }
 0xdce   :  { %8361 = vrcp.f32 %v5736_v32 }
 0xdd4   :  { %v8356_v59 = vpop.eup %8355 }
 0xdd5   :  { %v8358_v60 = vpop.eup %8357  ;;  %v5743_v61 = vadd.f32 1.0, %v8356_v59 }
 0xdd6   :  { %v8360_v34 = vpop.eup %8359 }
 0xdd7   :  { %v5747_v36 = vmul.f32 %v8360_v34, %v8358_v60  ;;  %8363 = vrcp.f32 %v5743_v61 }
 0xddb   :  { %v8362_v63 = vpop.eup %8361 }
 0xddc   :  { %v5746_v7 = vmul.f32 %v8362_v63, %v9687_v28  ;;  %v8435_v63 = vld [vmem:[%s9990_s8] ss:$0 sm:$0xff] }
 0xdde   :  { %v9774_v8 = vadd.f32 %v5747_v36, %v5746_v7 }
 0xde0   :  { %8365 = vtanh.f32 %v9774_v8 }
 0xde4   :  { %v8364_v38 = vpop.eup %8363 }
 0xded   :  { %v8366_v9 = vpop.eup %8365 }
 0xdee   :  { %v5750_v10 = vmul.f32 %v8366_v9, %v8364_v38 }
 0xdf0   :  { %8029 = vmatmul.mubr.msk.f32.vlgmr.msra.gmra.mxu1 %vm182_vm3, %v5750_v10  ;;  %8040 = vmatmul.mubr.msk.f32.vlgmr.msra.gmra.mxu0 %vm182_vm3, %v5750_v10 }
 0xdf1   :  { %8043 = vmatpush3.msra.mxu1 %v9782_v12  ;;  %8054 = vmatpush3.msra.mxu0 %v9788_v29 }
 0xdf2   :  { %8044 = vmatprep.subr.mxu1 %v8436_v11  ;;  %8055 = vmatprep.subr.mxu0 %v8436_v11 }
 0xdf3   :  { %8045 = vmatpush3.msra.mxu1 %v9796_v30  ;;  %8056 = vmatpush3.msra.mxu0 %v9802_v31 }
 0xdf4   :  { %8046 = vmatprep.subr.mxu1 %v8436_v11  ;;  %8057 = vmatprep.subr.mxu0 %v8436_v11 }
 0xdf5   :  { %8047 = vmatpush3.msra.mxu1 %v9810_v6  ;;  %8058 = vmatpush3.msra.mxu0 %v9816_v13 }
 0xdf6   :  { %8048 = vmatprep.subr.mxu1 %v8436_v11  ;;  %8059 = vmatprep.subr.mxu0 %v8436_v11 }
 0xdf7   :  { %8049 = vmatpush3.msra.mxu1 %v9824_v14  ;;  %8050 = vmatprep.mubr.msk.f32.mxu1 %vm8437_vm2, %v8436_v11 }
 0xdf8   :  { %8060 = vmatpush3.msra.mxu0 %v9832_v16  ;;  %8061 = vmatprep.mubr.msk.f32.mxu0 %vm8437_vm2, %v8436_v11 }
 0xdf9   :  { %8051 = vmatmul.mubr.msk.f32.vlgmr.msra.gmra.mxu1 %vm182_vm3, %v5750_v10  ;;  %8062 = vmatmul.mubr.msk.f32.vlgmr.msra.gmra.mxu0 %vm182_vm3, %v5750_v10 }
 0xdfa   :  { %8064 = vmatprep.subr.mxu1 %v8436_v11  ;;  %8072 = vmatprep.mubr.msk.f32.mxu1 %vm8437_vm2, %v8436_v11 }
 0xdfb   :  { %8065 = vmatpush3.msra.mxu1 %v9845_v17  ;;  %8075 = vmatprep.subr.mxu0 %v8436_v11 }
 0xdfc   :  { %8066 = vmatprep.subr.mxu1 %v8436_v11  ;;  %8076 = vmatpush3.msra.mxu0 %v9853_v18 }
 0xdfd   :  { %8067 = vmatpush3.msra.mxu1 %v9859_v21  ;;  %8077 = vmatprep.subr.mxu0 %v8436_v11 }
 0xdfe   :  { %8068 = vmatprep.subr.mxu1 %v8436_v11  ;;  %8078 = vmatpush3.msra.mxu0 %v9867_v19 }
 0xdff   :  { %8069 = vmatpush3.msra.mxu1 %v9873_v22  ;;  %8079 = vmatprep.subr.mxu0 %v8436_v11 }
 0xe00   :  { %8070 = vmatprep.subr.mxu1 %v8436_v11  ;;  %8080 = vmatpush3.msra.mxu0 %v9881_v24 }
 0xe01   :  { %8071 = vmatpush3.msra.mxu1 %v9887_v25  ;;  %8081 = vmatprep.subr.mxu0 %v8436_v11 }
 0xe02   :  { %8073 = vmatmul.mubr.msk.f32.vlgmr.msra.gmra.mxu1 %vm182_vm3, %v5750_v10  ;;  %8086 = vmatprep.subr.mxu1 %v8436_v11 }
 0xe03   :  { %8087 = vmatpush3.msra.mxu1 %v9734_v33  ;;  %8082 = vmatpush3.msra.mxu0 %v9897_v26 }
 0xe04   :  { %8088 = vmatprep.subr.mxu1 %v8436_v11  ;;  %8083 = vmatprep.mubr.msk.f32.mxu0 %vm8437_vm2, %v8436_v11 }
 0xe05   :  { %8089 = vmatpush3.msra.mxu1 %v9744_v35  ;;  %8094 = vmatprep.mubr.msk.f32.mxu1 %vm8437_vm2, %v8436_v11 }
 0xe06   :  { %8090 = vmatprep.subr.mxu1 %v8436_v11  ;;  %8097 = vmatprep.subr.mxu0 %v8436_v11 }
 0xe07   :  { %8091 = vmatpush3.msra.mxu1 %v9754_v37 }
 0xe08   :  { %8092 = vmatprep.subr.mxu1 %v8436_v11 }
 0xe09   :  { %8093 = vmatpush3.msra.mxu1 %v9761_v39 }
 0xe0a   :  { %8108 = vmatprep.subr.mxu1 %v8436_v11 }
 0xeb0   :  { %v5820_v27 = vpop.f32.mrf.mxu1  ;;  %v5892_v28 = vpop.f32.mrf.mxu0 }
 0xeb1   :  { %v5821_v45 = vadd.f32 %v9475_v15, %v5820_v27  ;;  %v5896_v46 = vadd.f32 %v5892_v28, %v9396_v20 }
 0xeb2   :  { %v8030_v47 = vpop.f32.mrf.mxu1  ;;  %v8041_v33 = vpop.f32.mrf.mxu0 }
 0xeb3   :  { %6814 = vst [vmem:[%s9991_s9 + $0x28] sm:$0xff] %v5821_v45  ;;  %v6819_v35 = vmul.f32 -1.442695, %v5896_v46 }
 0xeb5   :  { %8367 = vpow2.f32 %v6819_v35 }
 0xeb9   :  { %v5963_v37 = vpop.f32.mrf.mxu1  ;;  %v6034_v40 = vpop.f32.mrf.mxu0 }
 0xeba   :  { %v5967_v39 = vadd.f32 %v5963_v37, %v9398_v23  ;;  %v6038_v3 = vadd.f32 %v6034_v40, %v9411_v56 }
 0xebb   :  { %v8052_v41 = vpop.f32.mrf.mxu1  ;;  %v8063_v42 = vpop.f32.mrf.mxu0 }
 0xebc   :  { %v6820_v43 = vmul.f32 -1.442695, %v5967_v39 }
 0xebe   :  { %8369 = vpow2.f32 %v6820_v43 }
 0xec2   :  { %v6105_v44 = vpop.f32.mrf.mxu1  ;;  %v8368_v0 = vpop.eup %8367 }
 0xec3   :  { %v6109_v15 = vadd.f32 %v6105_v44, %v9405_v49  ;;  %v6113_v2 = vadd.f32 1.0, %v8368_v0 }
 0xec4   :  { %v8074_v62 = vpop.f32.mrf.mxu1 }
 0xec5   :  { %v6821_v1 = vmul.f32 -1.442695, %v6109_v15 }
 0xec7   :  { %8371 = vpow2.f32 %v6821_v1 }
 0xec8   :  { %8373 = vrcp.f32 %v6113_v2 }
 0xec9   :  { %8375 = vtanh.f32 %v6038_v3 }
 0xecb   :  { %v8370_v4 = vpop.eup %8369 }
 0xecc   :  { %v6119_v5 = vadd.f32 1.0, %v8370_v4 }
 0xece   :  { %8377 = vrcp.f32 %v6119_v5 }
 0xed4   :  { %v8372_v48 = vpop.eup %8371 }
 0xed5   :  { %v8374_v50 = vpop.eup %8373  ;;  %v6126_v53 = vadd.f32 1.0, %v8372_v48 }
 0xed6   :  { %v8376_v51 = vpop.eup %8375 }
 0xed7   :  { %v6130_v55 = vmul.f32 %v8376_v51, %v8374_v50  ;;  %8379 = vrcp.f32 %v6126_v53 }
 0xedb   :  { %v8378_v52 = vpop.eup %8377 }
 0xedc   :  { %v6129_v54 = vmul.f32 %v8378_v52, %v9774_v8 }
 0xede   :  { %v9921_v57 = vadd.f32 %v6130_v55, %v6129_v54 }
 0xee0   :  { %8381 = vtanh.f32 %v9921_v57 }
 0xee4   :  { %v8380_v58 = vpop.eup %8379 }
 0xeed   :  { %v8382_v32 = vpop.eup %8381 }
 0xeee   :  { %v6133_v59 = vmul.f32 %v8382_v32, %v8380_v58 }
 0xef0   :  { %8084 = vmatmul.mubr.msk.f32.vlgmr.msra.gmra.mxu0 %vm182_vm3, %v6133_v59  ;;  %8095 = vmatmul.mubr.msk.f32.vlgmr.msra.gmra.mxu1 %vm182_vm3, %v6133_v59 }
 0xef1   :  { %8098 = vmatpush3.msra.mxu0 %v9782_v12  ;;  %8109 = vmatpush3.msra.mxu1 %v9788_v29 }
 0xef2   :  { %8099 = vmatprep.subr.mxu0 %v8436_v11  ;;  %8110 = vmatprep.subr.mxu1 %v8436_v11 }
 0xef3   :  { %8100 = vmatpush3.msra.mxu0 %v9796_v30  ;;  %8111 = vmatpush3.msra.mxu1 %v9802_v31 }
 0xef4   :  { %8101 = vmatprep.subr.mxu0 %v8436_v11  ;;  %8112 = vmatprep.subr.mxu1 %v8436_v11 }
 0xef5   :  { %8102 = vmatpush3.msra.mxu0 %v9810_v6  ;;  %8113 = vmatpush3.msra.mxu1 %v9816_v13 }
 0xef6   :  { %8103 = vmatprep.subr.mxu0 %v8436_v11  ;;  %8114 = vmatprep.subr.mxu1 %v8436_v11 }
 0xef7   :  { %8104 = vmatpush3.msra.mxu0 %v9824_v14  ;;  %8105 = vmatprep.mubr.msk.f32.mxu0 %vm8437_vm2, %v8436_v11 }
 0xef8   :  { %8115 = vmatpush3.msra.mxu1 %v9832_v16  ;;  %8116 = vmatprep.mubr.msk.f32.mxu1 %vm8437_vm2, %v8436_v11 }
 0xef9   :  { %8106 = vmatmul.mubr.msk.f32.vlgmr.msra.gmra.mxu0 %vm182_vm3, %v6133_v59  ;;  %8117 = vmatmul.mubr.msk.f32.vlgmr.msra.gmra.mxu1 %vm182_vm3, %v6133_v59 }
 0xefa   :  { %8119 = vmatprep.subr.mxu0 %v8436_v11  ;;  %8127 = vmatprep.mubr.msk.f32.mxu0 %vm8437_vm2, %v8436_v11 }
 0xefb   :  { %8120 = vmatpush3.msra.mxu0 %v9845_v17  ;;  %8130 = vmatprep.subr.mxu1 %v8436_v11 }
 0xefc   :  { %8121 = vmatprep.subr.mxu0 %v8436_v11  ;;  %8131 = vmatpush3.msra.mxu1 %v9853_v18 }
 0xefd   :  { %8122 = vmatpush3.msra.mxu0 %v9859_v21  ;;  %8132 = vmatprep.subr.mxu1 %v8436_v11 }
 0xefe   :  { %8123 = vmatprep.subr.mxu0 %v8436_v11  ;;  %8133 = vmatpush3.msra.mxu1 %v9867_v19 }
 0xeff   :  { %8124 = vmatpush3.msra.mxu0 %v9873_v22  ;;  %8134 = vmatprep.subr.mxu1 %v8436_v11 }
 0xf00   :  { %8125 = vmatprep.subr.mxu0 %v8436_v11  ;;  %8135 = vmatpush3.msra.mxu1 %v9881_v24 }
 0xf01   :  { %8126 = vmatpush3.msra.mxu0 %v9887_v25  ;;  %8136 = vmatprep.subr.mxu1 %v8436_v11 }
 0xf02   :  { %8128 = vmatmul.mubr.msk.f32.vlgmr.msra.gmra.mxu0 %vm182_vm3, %v6133_v59  ;;  %8137 = vmatpush3.msra.mxu1 %v9897_v26 }
 0xf03   :  { %8138 = vmatprep.mubr.msk.f32.mxu1 %vm8437_vm2, %v8436_v11 }
 0xfb0   :  { %v6203_v60 = vpop.f32.mrf.mxu0  ;;  %v6275_v34 = vpop.f32.mrf.mxu1 }
 0xfb1   :  { %v6204_v61 = vadd.f32 %v8435_v63, %v6203_v60  ;;  %v6279_v7 = vadd.f32 %v6275_v34, %v9396_v20 }
 0xfb2   :  { %v8085_v36 = vpop.f32.mrf.mxu0  ;;  %v8096_v8 = vpop.f32.mrf.mxu1 }
 0xfb3   :  { %6823 = vst [vmem:[%s9991_s9 + $0x30] sm:$0xff] %v6204_v61  ;;  %v6828_v38 = vmul.f32 -1.442695, %v6279_v7 }
 0xfb5   :  { %8383 = vpow2.f32 %v6828_v38 }
 0xfb9   :  { %v6346_v9 = vpop.f32.mrf.mxu0  ;;  %v6417_v10 = vpop.f32.mrf.mxu1 }
 0xfba   :  { %v6350_v11 = vadd.f32 %v6346_v9, %v9398_v23  ;;  %v6421_v17 = vadd.f32 %v6417_v10, %v9411_v56 }
 0xfbb   :  { %v8107_v12 = vpop.f32.mrf.mxu0  ;;  %v8118_v29 = vpop.f32.mrf.mxu1 }
 0xfbc   :  { %v6829_v30 = vmul.f32 -1.442695, %v6350_v11 }
 0xfbe   :  { %8385 = vpow2.f32 %v6829_v30 }
 0xfc2   :  { %v6488_v31 = vpop.f32.mrf.mxu0  ;;  %v8384_v13 = vpop.eup %8383 }
 0xfc3   :  { %v6492_v6 = vadd.f32 %v6488_v31, %v9405_v49  ;;  %v6496_v16 = vadd.f32 1.0, %v8384_v13 }
 0xfc4   :  { %v8129_v20 = vpop.f32.mrf.mxu0 }
 0xfc5   :  { %v6830_v14 = vmul.f32 -1.442695, %v6492_v6 }
 0xfc7   :  { %8387 = vpow2.f32 %v6830_v14 }
 0xfc8   :  { %8389 = vrcp.f32 %v6496_v16 }
 0xfc9   :  { %8391 = vtanh.f32 %v6421_v17 }
 0xfcb   :  { %v8386_v18 = vpop.eup %8385 }
 0xfcc   :  { %v6502_v21 = vadd.f32 1.0, %v8386_v18 }
 0xfce   :  { %8393 = vrcp.f32 %v6502_v21 }
 0xfd4   :  { %v8388_v23 = vpop.eup %8387 }
 0xfd5   :  { %v8390_v19 = vpop.eup %8389  ;;  %v6509_v25 = vadd.f32 1.0, %v8388_v23 }
 0xfd6   :  { %v8392_v22 = vpop.eup %8391 }
 0xfd7   :  { %v6513_v49 = vmul.f32 %v8392_v22, %v8390_v19  ;;  %8395 = vrcp.f32 %v6509_v25 }
 0xfdb   :  { %v8394_v24 = vpop.eup %8393 }
 0xfdc   :  { %v6512_v26 = vmul.f32 %v8394_v24, %v9921_v57 }
 0xfde   :  { %v6514_v27 = vadd.f32 %v6513_v49, %v6512_v26 }
 0xfe0   :  { %8397 = vtanh.f32 %v6514_v27 }
 0xfe4   :  { %v8396_v28 = vpop.eup %8395 }
 0xfed   :  { %v8398_v45 = vpop.eup %8397 }
 0xfee   :  { %v6516_v56 = vmul.f32 %v8398_v45, %v8396_v28 }
 0xff0   :  { %8139 = vmatmul.mubr.msk.f32.vlgmr.msra.gmra.mxu1 %vm182_vm3, %v6516_v56 }
0x10b0   :  { %v6586_v46 = vpop.f32.mrf.mxu1 }
0x10b1   :  { %v6587_v47 = vadd.f32 %v8435_v63, %v6586_v46 }
0x10b2   :  { %v8140_v33 = vpop.f32.mrf.mxu1 }
0x10b3   :  { %6832 = vst [vmem:[%s9991_s9 + $0x38] sm:$0xff] %v6587_v47 }

</bundles_post_ra>
